<compile_context>
chip_gen: v5e
topology: v5e:2x2
jax: 0.10.0
libtpu: 0.0.40
codegen_flags: <defaults>
</compile_context>

<pallas_src>
import functools

import jax
import jax.numpy as jnp
import numpy as np
from jax.experimental import pallas as pl
from jax.experimental.pallas import tpu as pltpu


def _wide_and_deep_kernel(x_ref, w1_ref, b1_ref, w2_ref, b2_ref, out_ref):
    # Fused first layer: one block-diagonal matmul -> [tile, 3E] = hs | he | hp.
    h = jnp.dot(x_ref[...], w1_ref[...], preferred_element_type=jnp.float32)
    h = jnp.maximum(h + b1_ref[...], 0.0)                      # bias + ReLU in f32 (VPU)
    # Fused second layer: one K=3E matmul replaces three K=E matmuls + two adds.
    out = jnp.dot(h.astype(w2_ref.dtype), w2_ref[...],
                  preferred_element_type=jnp.float32)
    out_ref[...] = (out + b2_ref[...]).astype(out_ref.dtype)


def prepare_params(params, *, compute_dtype=jnp.bfloat16):
    """Pack the six Linear layers into two fused matmul operands (done once,
    hoisted out of the per-call path)."""
    f32 = jnp.float32
    ws1 = jnp.asarray(params["start_fc1_w"], f32).T       # [C, E]
    we1 = jnp.asarray(params["end_fc1_w"], f32).T         # [C, E]
    wp1 = jnp.asarray(params["prototype_fc1_w"], f32).T   # [P, E]
    ws2 = jnp.asarray(params["start_fc2_w"], f32).T       # [E, E]
    we2 = jnp.asarray(params["end_fc2_w"], f32).T         # [E, E]
    wp2 = jnp.asarray(params["prototype_fc2_w"], f32).T   # [E, E]

    C, E = ws1.shape
    P = wp1.shape[0]

    # Block-diagonal first-layer weight: [start|end|proto] input -> hs|he|hp hidden.
    w1 = jnp.zeros((2 * C + P, 3 * E), f32)
    w1 = w1.at[0:C, 0:E].set(ws1)
    w1 = w1.at[C:2 * C, E:2 * E].set(we1)
    w1 = w1.at[2 * C:, 2 * E:].set(wp1)
    b1 = jnp.concatenate([
        jnp.asarray(params["start_fc1_b"], f32),
        jnp.asarray(params["end_fc1_b"], f32),
        jnp.asarray(params["prototype_fc1_b"], f32)]).reshape(1, 3 * E)

    # Fused second layer: concat along K; the final sum is absorbed into the matmul,
    # and the three biases are pre-summed.
    w2 = jnp.concatenate([ws2, we2, wp2], axis=0)          # [3E, E]
    b2 = (jnp.asarray(params["start_fc2_b"], f32)
          + jnp.asarray(params["end_fc2_b"], f32)
          + jnp.asarray(params["prototype_fc2_b"], f32)).reshape(1, E)

    return {
        "w1": w1.astype(compute_dtype),   # bf16 MXU operands, f32 accumulation
        "b1": b1,                         # biases stay f32 (VPU)
        "w2": w2.astype(compute_dtype),
        "b2": b2,
    }


@functools.partial(jax.jit, static_argnames=("batch_tile",))
def wide_and_deep_forward(attr, prototype, packed, *, batch_tile=256):
    """attr: [B, C, S]; prototype: [B, P] -> [B, E] float32."""
    B = attr.shape[0]
    w1, b1, w2, b2 = packed["w1"], packed["b1"], packed["w2"], packed["b2"]
    K, H = w1.shape            # K = 2C + P, H = 3E
    E = w2.shape[1]
    cdt = w1.dtype

    # Glue: slice first/last seq positions and pack everything lane-dense into one
    # [B, 2C+P] activation matrix (single DMA stream instead of three).
    x = jnp.concatenate(
        [attr[:, :, 0].astype(jnp.float32),
         attr[:, :, -1].astype(jnp.float32),
         prototype.astype(jnp.float32)], axis=-1).astype(cdt)

    # Pad batch to a multiple of batch_tile; padded rows are sliced off afterwards.
    n_tiles = pl.cdiv(B, batch_tile)
    Bp = n_tiles * batch_tile
    if Bp != B:
        x = jnp.pad(x, ((0, Bp - B), (0, 0)))

    out = pl.pallas_call(
        _wide_and_deep_kernel,
        out_shape=jax.ShapeDtypeStruct((Bp, E), jnp.float32),
        grid=(n_tiles,),
        in_specs=[
            pl.BlockSpec((batch_tile, K), lambda i: (i, 0)),   # packed activations
            pl.BlockSpec((K, H), lambda i: (0, 0)),            # fused W1 (replicated)
            pl.BlockSpec((1, H), lambda i: (0, 0)),            # fused b1
            pl.BlockSpec((H, E), lambda i: (0, 0)),            # fused W2
            pl.BlockSpec((1, E), lambda i: (0, 0)),            # pre-summed b2
        ],
        out_specs=pl.BlockSpec((batch_tile, E), lambda i: (i, 0)),
        compiler_params=pltpu.CompilerParams(
            dimension_semantics=("parallel",)),  # megacore-shardable over batch tiles
    )(x, w1, b1, w2, b2)

    return out[:B] if Bp != B else out


def init_params(key, in_channels, embedding_dim, proto_dim=512):
    """Deterministic PyTorch-Linear-style init: U(-1/sqrt(fan_in), 1/sqrt(fan_in))."""
    params = {}
    layer_defs = [
        ("start_fc1", in_channels, embedding_dim),
        ("start_fc2", embedding_dim, embedding_dim),
        ("end_fc1", in_channels, embedding_dim),
        ("end_fc2", embedding_dim, embedding_dim),
        ("prototype_fc1", proto_dim, embedding_dim),
        ("prototype_fc2", embedding_dim, embedding_dim),
    ]
    keys = jax.random.split(key, 2 * len(layer_defs))
    for idx, (name, fan_in, fan_out) in enumerate(layer_defs):
        bound = 1.0 / np.sqrt(fan_in)
        params[f"{name}_w"] = jax.random.uniform(
            keys[2 * idx], (fan_out, fan_in), jnp.float32, -bound, bound)
        params[f"{name}_b"] = jax.random.uniform(
            keys[2 * idx + 1], (fan_out,), jnp.float32, -bound, bound)
    return params


def reference_forward(attr, prototype, params):
    def linear(x, w, b):
        return x @ w.T + b

    start_point = attr[:, :, 0].astype(jnp.float32)
    end_point = attr[:, :, -1].astype(jnp.float32)
    sx = jax.nn.relu(linear(start_point, params["start_fc1_w"], params["start_fc1_b"]))
    s = linear(sx, params["start_fc2_w"], params["start_fc2_b"])
    ex = jax.nn.relu(linear(end_point, params["end_fc1_w"], params["end_fc1_b"]))
    e = linear(ex, params["end_fc2_w"], params["end_fc2_b"])
    px = jax.nn.relu(linear(prototype, params["prototype_fc1_w"], params["prototype_fc1_b"]))
    p = linear(px, params["prototype_fc2_w"], params["prototype_fc2_b"])
    return s + e + p


if __name__ == "__main__":
    key = jax.random.PRNGKey(0)
    k_attr, k_proto, k_params = jax.random.split(key, 3)

    B, C, S = 512, 4, 8        # batch (>= 2 grid steps for megacore), channels, seq
    E = 128                    # embedding_dim (small for the example)
    P = 512                    # prototype feature dim (hard-coded 512 in the module)

    attr = jax.random.normal(k_attr, (B, C, S), jnp.float32)
    prototype = jax.random.normal(k_proto, (B, P), jnp.float32)
    params = init_params(k_params, in_channels=C, embedding_dim=E, proto_dim=P)

    # One-time weight packing (bf16 matmul operands, f32 biases).
    packed = prepare_params(params, compute_dtype=jnp.bfloat16)
    packed = jax.tree_util.tree_map(jax.block_until_ready, packed)

    out = wide_and_deep_forward(attr, prototype, packed, batch_tile=256)
    out = jax.block_until_ready(out)

    ref = jax.block_until_ready(reference_forward(attr, prototype, params))
    # bf16 matmul operands with f32 accumulation -> loosen tolerance vs f32 reference.
    np.testing.assert_allclose(np.asarray(out), np.asarray(ref), rtol=3e-2, atol=3e-2)

    print("KERNEL_OK")
</pallas_src>

<mosaic_0001>
module attributes {stable_mosaic.version = 11 : i64} {
  func.func @_wide_and_deep_kernel(%arg0: i32, %arg1: memref<256x520xbf16, #tpu.memory_space<vmem>>, %arg2: memref<520x384xbf16, #tpu.memory_space<vmem>>, %arg3: memref<1x384xf32, #tpu.memory_space<vmem>>, %arg4: memref<384x128xbf16, #tpu.memory_space<vmem>>, %arg5: memref<1x128xf32, #tpu.memory_space<vmem>>, %arg6: memref<256x128xf32, #tpu.memory_space<vmem>>) attributes {dimension_semantics = [#tpu.dimension_semantics<parallel>], iteration_bounds = array<i64: 2>, scalar_prefetch = 0 : i64, scratch_operands = 0 : i64, tpu.core_type = #tpu.core_type<tc>, window_params = [{transform_indices = @transform_0, window_bounds = array<i64: 256, 520>}, {pipeline_mode = #tpu.pipeline_mode<synchronous>, transform_indices = @transform_1, window_bounds = array<i64: 520, 384>}, {pipeline_mode = #tpu.pipeline_mode<synchronous>, transform_indices = @transform_2, window_bounds = array<i64: 1, 384>}, {pipeline_mode = #tpu.pipeline_mode<synchronous>, transform_indices = @transform_3, window_bounds = array<i64: 384, 128>}, {pipeline_mode = #tpu.pipeline_mode<synchronous>, transform_indices = @transform_4, window_bounds = array<i64: 1, 128>}, {transform_indices = @transform_5, window_bounds = array<i64: 256, 128>}]} {
    %c0 = arith.constant 0 : index
    %c0_0 = arith.constant 0 : index
    %0 = vector.load %arg1[%c0, %c0_0] : memref<256x520xbf16, #tpu.memory_space<vmem>>, vector<256x520xbf16>
    %c0_1 = arith.constant 0 : index
    %c0_2 = arith.constant 0 : index
    %1 = vector.load %arg2[%c0_1, %c0_2] : memref<520x384xbf16, #tpu.memory_space<vmem>>, vector<520x384xbf16>
    %cst = arith.constant dense<0.000000e+00> : vector<256x384xf32>
    %2 = tpu.matmul %0, %1, %cst {dimension_numbers = #tpu.dot_dimension_numbers<[1], [0], [0], [1], [0, 0, 1, 1], [], []>} : vector<256x520xbf16>, vector<520x384xbf16>, vector<256x384xf32> -> vector<256x384xf32>
    %c0_3 = arith.constant 0 : index
    %c0_4 = arith.constant 0 : index
    %3 = vector.load %arg3[%c0_3, %c0_4] : memref<1x384xf32, #tpu.memory_space<vmem>>, vector<1x384xf32>
    %4 = vector.broadcast %3 : vector<1x384xf32> to vector<256x384xf32>
    %5 = arith.addf %2, %4 : vector<256x384xf32>
    %cst_5 = arith.constant 0.000000e+00 : f32
    %6 = vector.broadcast %cst_5 : f32 to vector<256x384xf32>
    %7 = arith.maximumf %5, %6 : vector<256x384xf32>
    %8 = arith.truncf %7 : vector<256x384xf32> to vector<256x384xbf16>
    %c0_6 = arith.constant 0 : index
    %c0_7 = arith.constant 0 : index
    %9 = vector.load %arg4[%c0_6, %c0_7] : memref<384x128xbf16, #tpu.memory_space<vmem>>, vector<384x128xbf16>
    %cst_8 = arith.constant dense<0.000000e+00> : vector<256x128xf32>
    %10 = tpu.matmul %8, %9, %cst_8 {dimension_numbers = #tpu.dot_dimension_numbers<[1], [0], [0], [1], [0, 0, 1, 1], [], []>} : vector<256x384xbf16>, vector<384x128xbf16>, vector<256x128xf32> -> vector<256x128xf32>
    %c0_9 = arith.constant 0 : index
    %c0_10 = arith.constant 0 : index
    %11 = vector.load %arg5[%c0_9, %c0_10] : memref<1x128xf32, #tpu.memory_space<vmem>>, vector<1x128xf32>
    %12 = vector.broadcast %11 : vector<1x128xf32> to vector<256x128xf32>
    %13 = arith.addf %10, %12 : vector<256x128xf32>
    %c0_11 = arith.constant 0 : index
    %c0_12 = arith.constant 0 : index
    %14 = vector.load %arg6[%c0_11, %c0_12] : memref<256x128xf32, #tpu.memory_space<vmem>>, vector<256x128xf32>
    tpu.vector_store %arg6[%c0_11, %c0_12], %13 {strides = array<i32>} : memref<256x128xf32, #tpu.memory_space<vmem>>, vector<256x128xf32>,
    return
  }
  func.func @transform_0(%arg0: i32) -> (i32, i32) {
    %c0_i32 = arith.constant 0 : i32
    %c0_i32_0 = arith.constant 0 : i32
    return %arg0, %c0_i32 : i32, i32
  }
  func.func @transform_1(%arg0: i32) -> (i32, i32) {
    %c0_i32 = arith.constant 0 : i32
    %c0_i32_0 = arith.constant 0 : i32
    %c0_i32_1 = arith.constant 0 : i32
    return %c0_i32, %c0_i32_0 : i32, i32
  }
  func.func @transform_2(%arg0: i32) -> (i32, i32) {
    %c0_i32 = arith.constant 0 : i32
    %c0_i32_0 = arith.constant 0 : i32
    %c0_i32_1 = arith.constant 0 : i32
    return %c0_i32, %c0_i32_0 : i32, i32
  }
  func.func @transform_3(%arg0: i32) -> (i32, i32) {
    %c0_i32 = arith.constant 0 : i32
    %c0_i32_0 = arith.constant 0 : i32
    %c0_i32_1 = arith.constant 0 : i32
    return %c0_i32, %c0_i32_0 : i32, i32
  }
  func.func @transform_4(%arg0: i32) -> (i32, i32) {
    %c0_i32 = arith.constant 0 : i32
    %c0_i32_0 = arith.constant 0 : i32
    %c0_i32_1 = arith.constant 0 : i32
    return %c0_i32, %c0_i32_0 : i32, i32
  }
  func.func @transform_5(%arg0: i32) -> (i32, i32) {
    %c0_i32 = arith.constant 0 : i32
    %c0_i32_0 = arith.constant 0 : i32
    return %arg0, %c0_i32 : i32, i32
  }
}

</mosaic_0001>

<bundles_post_ra>
// kernel: wide_and_deep_forward.1
= control target key start
LH: loop header
LB: loop body
LE: loop exit
PB: predicated region body
PF: predicated region fallthrough
CT: control target
= control target key end

     0   :  { %10 = vsyncpa [#allocation3], 0  ;;  %s6699_s0 = inlined_call_operand.vmem [shape: bf16[512,520], index: 0, kind: input, shape index: {}]   ;;  %s6700_s1 = inlined_call_operand.vmem [shape: bf16[520,384], index: 1, kind: input, shape index: {}]   ;;  %s6701_s2 = inlined_call_operand.vmem [shape: f32[1,384], index: 2, kind: input, shape index: {}]   ;;  %s6702_s3 = inlined_call_operand.vmem [shape: bf16[384,128], index: 3, kind: input, shape index: {}]   ;;  %s6703_s4 = inlined_call_operand.vmem [shape: f32[1,128], index: 4, kind: input, shape index: {}]   ;;  %s6704_s5 = inlined_call_operand.hbm [shape: f32[512,128], index: 5, kind: output, shape index: {}]  }
   0x1   :  { %12 = vsyncpa [#allocation3 + $0x1], 0  ;;  %s4713_s18 = smov 0   ;;  %s4715_s19 = smov 0  }
   0x2   :  { %s4717_s20 = smov 0   ;;  %s4719_s21 = smov 0  }
   0x3 LB: > { %s4734_s22 = sadd.s32 4294967295, %s4679_s21   ;;  %s3495_s23 = sadd.s32 4294967294, %s4679_s21   ;;  %s4679_s21 = sphi %s4719_s21, %s7049_s21   ;;  %s4675_s20 = sphi %s4717_s20, %s7048_s20   ;;  %s4671_s19 = sphi %s4715_s19, %s7047_s19   ;;  %s4667_s18 = sphi %s4713_s18, %s7046_s18  }
   0x4   : > { %s4738_s24 = sadd.s32 1, %s4679_s21   ;;  %s135_s25 = sadd.s32 1, %s4675_s20 }
   0x5   : > { %s132_s26 = ssub.s32 %s4679_s21, %s4738_s24  ;;  %p145_p0 = scmp.ne.s32.totalorder %s4675_s20, %s4671_s19 }
   0x6   : > { %p133_p1 = scmp.eq.s32.totalorder %s132_s26, 0  ;;  %p146_p2 = scmp.eq.s32.totalorder %s4734_s22, 1 }
   0x7   : > { %p151_p3 = scmp.ne.s32.totalorder %s4671_s19, %s4667_s18  ;;  %p152_p4 = scmp.eq.s32.totalorder %s3495_s23, 1 }
   0x8   : > { %s4749_s27 = scalar_select %p133_p1, %s4675_s20, %s135_s25  }
   0x9   : > { %p4751_p5 = por %p146_p2, %p145_p0  ;;  %p4755_p6 = por %p152_p4, %p151_p3 }
   0xa   : > { %p3498_p7 = scmp.ge.s32.totalorder %s4679_s21, 1  ;;  %p192_p8 = scmp.lt.s32.totalorder %s4679_s21, 3 }
   0xc   : > { %p193_p9 = pnand %p3498_p7, %p192_p8 }
   0xe   : > { %196 = sbr.rel (%p193_p9) target bundleno = 1475 (0x5c3), region = 40 }
  0x13   : > { %v3908_v0 = vld [vmem:[%s6700_s1 + $0xa8] sm:$0xf]  ;;  %v4457_v1 = vld [vmem:[%s6700_s1 + $0xb0] sm:$0xf0]  ;;  %v3896_v5 = vld [vmem:[%s6700_s1 + $0x90] sm:$0xf] }
  0x14   : > { %v4004_v2 = vld [vmem:[%s6700_s1 + $0x168] sm:$0xf]  ;;  %v3909_v3 = vor.u32 %v4457_v1, %v3908_v0  ;;  %v4481_v4 = vld [vmem:[%s6700_s1 + $0x170] sm:$0xf0]  ;;  %v4454_v6 = vld [vmem:[%s6700_s1 + $0x98] sm:$0xf0] }
  0x15   : > { %v4005_v7 = vor.u32 %v4481_v4, %v4004_v2  ;;  %v3992_v8 = vld [vmem:[%s6700_s1 + $0x150] sm:$0xf]  ;;  %v4478_v9 = vld [vmem:[%s6700_s1 + $0x158] sm:$0xf0]  ;;  %v3897_v10 = vor.u32 %v4454_v6, %v3896_v5  ;;  %v3884_v12 = vld [vmem:[%s6700_s1 + $0x78] sm:$0xf] }
  0x16   : > { %1443 = vmatpush.bf16.msra.mxu0 %v3909_v3  ;;  %4556 = vmatpush.bf16.msra.mxu2 %v3909_v3  ;;  %v3993_v11 = vor.u32 %v4478_v9, %v3992_v8  ;;  %v4451_v13 = vld [vmem:[%s6700_s1 + $0x80] sm:$0xf0]  ;;  %v3980_v14 = vld [vmem:[%s6700_s1 + $0x138] sm:$0xf]  ;;  %v3872_v18 = vld [vmem:[%s6700_s1 + $0x60] sm:$0xf] }
  0x17   : > { %4564 = vmatpush.bf16.msra.mxu3 %v4005_v7  ;;  %1532 = vmatpush.bf16.msra.mxu1 %v4005_v7  ;;  %v4475_v15 = vld [vmem:[%s6700_s1 + $0x140] sm:$0xf0]  ;;  %v3885_v16 = vor.u32 %v4451_v13, %v3884_v12  ;;  %v4448_v19 = vld [vmem:[%s6700_s1 + $0x68] sm:$0xf0]  ;;  %v3968_v20 = vld [vmem:[%s6700_s1 + $0x120] sm:$0xf] }
  0x18   : > { %v3981_v17 = vor.u32 %v4475_v15, %v3980_v14  ;;  %v4472_v21 = vld [vmem:[%s6700_s1 + $0x128] sm:$0xf0]  ;;  %s3500_s30 = sshll.u32 %s4734_s22, 5  ;;  %v3873_v22 = vor.u32 %v4448_v19, %v3872_v18  ;;  %v3860_v24 = vld [vmem:[%s6700_s1 + $0x48] sm:$0xf]  ;;  %vm1433_vm0 = vcmask 1043456  }
  0x19   : > { %p222_p10 = scmp.lt.s32.totalorder %s3500_s30, 63  ;;  %v3969_v23 = vor.u32 %v4472_v21, %v3968_v20  ;;  %v4445_v25 = vld [vmem:[%s6700_s1 + $0x50] sm:$0xf0]  ;;  %v3956_v26 = vld [vmem:[%s6700_s1 + $0x108] sm:$0xf]  ;;  %vm1384_vm1 = vcmask 64512  }
  0x1a   : > { %1444 = vmatpush.bf16.msra.mxu0 %v3897_v10  ;;  %4557 = vmatpush.bf16.msra.mxu2 %v3897_v10  ;;  %v4469_v27 = vld [vmem:[%s6700_s1 + $0x110] sm:$0xf0]  ;;  %v3861_v28 = vor.u32 %v4445_v25, %v3860_v24  ;;  %v3848_v30 = vld [vmem:[%s6700_s1 + $0x30] sm:$0xf]  ;;  %v4442_v31 = vld [vmem:[%s6700_s1 + $0x38] sm:$0xf0] }
  0x1b   : > { %4565 = vmatpush.bf16.msra.mxu3 %v3993_v11  ;;  %1533 = vmatpush.bf16.msra.mxu1 %v3993_v11  ;;  %s7051_s30 = smov (!%p222_p10, %s3500_s30), 63  ;;  %v3957_v29 = vor.u32 %v4469_v27, %v3956_v26  ;;  %v3944_v32 = vld [vmem:[%s6700_s1 + $0xf0] sm:$0xf]  ;;  %v4466_v33 = vld [vmem:[%s6700_s1 + $0xf8] sm:$0xf0]  ;;  %v3849_v34 = vor.u32 %v4442_v31, %v3848_v30  ;;  %s218_s25 = sand.u32 1, %s4671_s19  }
  0x1c   : > { %s4572_s7 = smul.u32 20, %s7051_s30  ;;  %v3945_v35 = vor.u32 %v4466_v33, %v3944_v32  ;;  %v3836_v36 = vld [vmem:[%s6700_s1 + $0x18] sm:$0xf]  ;;  %v4439_v37 = vld [vmem:[%s6700_s1 + $0x20] sm:$0xf0]  ;;  %s3499_s26 = sshll.u32 %s218_s25, 8 }
  0x1d   : > { %v3932_v38 = vld [vmem:[%s6700_s1 + $0xd8] sm:$0xf]  ;;  %v4463_v39 = vld [vmem:[%s6700_s1 + $0xe0] sm:$0xf0]  ;;  %v3837_v40 = vor.u32 %v4439_v37, %v3836_v36  ;;  %v3824_v42 = vld [vmem:[%s6700_s1] sm:$0xf] }
  0x1e   : > { %1445 = vmatpush.bf16.msra.mxu0 %v3885_v16  ;;  %4558 = vmatpush.bf16.msra.mxu2 %v3885_v16  ;;  %s4849_s17 = scalar_lea.vmem %s6699_s0, %s4572_s7  ;;  %v3933_v41 = vor.u32 %v4463_v39, %v3932_v38  ;;  %v4436_v43 = vld [vmem:[%s6700_s1 + $0x8] sm:$0xf0]  ;;  %v3920_v44 = vld [vmem:[%s6700_s1 + $0xc0] sm:$0xf]  ;;  %v4100_v46 = vld [vmem:[%s6700_s1 + $0x228] sm:$0xf] }
  0x1f   : > { %4566 = vmatpush.bf16.msra.mxu3 %v3981_v17  ;;  %1534 = vmatpush.bf16.msra.mxu1 %v3981_v17  ;;  %v4460_v45 = vld [vmem:[%s6700_s1 + $0xc8] sm:$0xf0]  ;;  %v4505_v47 = vld [vmem:[%s6700_s1 + $0x230] sm:$0xf0]  ;;  %v3504_v48 = vld [vmem:[%s4849_s17] sm:$0xf]  ;;  %v3825_v49 = vor.u32 %v4436_v43, %v3824_v42 }
  0x20   : > { %v4357_v50 = vld [vmem:[%s4849_s17 + $0x10] sm:$0xf0]  ;;  %v3664_v51 = vld [vmem:[%s4849_s17 + $0x140] sm:$0xf]  ;;  %v3921_v53 = vor.u32 %v4460_v45, %v3920_v44  ;;  %v4395_v54 = vld [vmem:[%s4849_s17 + $0x144] sm:$0xf]  ;;  %v4101_v56 = vor.u32 %v4505_v47, %v4100_v46 }
  0x21   : > { %v4397_v52 = vld [vmem:[%s4849_s17 + $0x150] sm:$0xf0]  ;;  %v3666_v55 = vld [vmem:[%s4849_s17 + $0x154] sm:$0xf0]  ;;  %v4355_v57 = vld [vmem:[%s4849_s17 + $0x4] sm:$0xf]  ;;  %v4883_v61 = vor.u32 %v4357_v50, %v3504_v48 }
  0x22   : > { %1446 = vmatpush.bf16.msra.mxu0 %v3873_v22  ;;  %4559 = vmatpush.bf16.msra.mxu2 %v3873_v22  ;;  %v3506_v58 = vld [vmem:[%s4849_s17 + $0x14] sm:$0xf0]  ;;  %v4088_v59 = vld [vmem:[%s6700_s1 + $0x210] sm:$0xf]  ;;  %v4502_v60 = vld [vmem:[%s6700_s1 + $0x218] sm:$0xf0]  ;;  %v4885_v62 = vor.u32 %v4397_v52, %v3664_v51  ;;  %v4887_v63 = vor.u32 %v4395_v54, %v3666_v55 }
  0x23   : > { %4567 = vmatpush.bf16.msra.mxu3 %v3969_v23  ;;  %1535 = vmatpush.bf16.msra.mxu1 %v3969_v23  ;;  %6801 = vst [vmem:[#allocation5_spill] sm:$0xff] %v4883_v61  ;;  %v4889_v0 = vor.u32 %v4355_v57, %v3506_v58  ;;  %v4089_v1 = vor.u32 %v4502_v60, %v4088_v59  ;;  %v4076_v2 = vld [vmem:[%s6700_s1 + $0x1f8] sm:$0xf]  ;;  %v4499_v3 = vld [vmem:[%s6700_s1 + $0x200] sm:$0xf0]  ;;  %s6579_s6 = scalar_lea.vmem [#allocation2], %s3499_s26 }
  0x24   : > { %6802 = vst [vmem:[#allocation6_spill] sm:$0xff] %v4885_v62  ;;  %v4077_v4 = vor.u32 %v4499_v3, %v4076_v2  ;;  %v3524_v5 = vld [vmem:[%s4849_s17 + $0x28] sm:$0xf]  ;;  %v4362_v6 = vld [vmem:[%s4849_s17 + $0x38] sm:$0xf0]  ;;  %s4555_s8 = sshll.u32 %s4734_s22, 8 }
  0x25   : > { %6803 = vst [vmem:[#allocation7_spill] sm:$0xff] %v4887_v63  ;;  %v3684_v7 = vld [vmem:[%s4849_s17 + $0x168] sm:$0xf]  ;;  %v4402_v8 = vld [vmem:[%s4849_s17 + $0x178] sm:$0xf0]  ;;  %v4909_v13 = vor.u32 %v4362_v6, %v3524_v5  ;;  %s3429_s10 = scalar_lea.hbm %s6704_s5, %s4555_s8  ;;  %s3430_s11 = sshll.u32 %s6579_s6, 4  ;;  %s3431_s11 = int_to_ptr.vmem [resolvable:$true] %s3430_s11 }
  0x26   : > { %1447 = vmatpush.bf16.msra.mxu0 %v3861_v28  ;;  %4560 = vmatpush.bf16.msra.mxu2 %v3861_v28  ;;  %v4400_v9 = vld [vmem:[%s4849_s17 + $0x16c] sm:$0xf]  ;;  %v3686_v10 = vld [vmem:[%s4849_s17 + $0x17c] sm:$0xf0]  ;;  %v4911_v14 = vor.u32 %v4402_v8, %v3684_v7  ;;  %v3544_v20 = vld [vmem:[%s4849_s17 + $0x50] sm:$0xf] }
  0x27   : > { %4568 = vmatpush.bf16.msra.mxu3 %v3957_v29  ;;  %1536 = vmatpush.bf16.msra.mxu1 %v3957_v29  ;;  %v4360_v11 = vld [vmem:[%s4849_s17 + $0x2c] sm:$0xf]  ;;  %v3526_v12 = vld [vmem:[%s4849_s17 + $0x3c] sm:$0xf0]  ;;  %6804 = vst [vmem:[#allocation8_spill] sm:$0xff] %v4909_v13  ;;  %v4913_v15 = vor.u32 %v4400_v9, %v3686_v10  ;;  %s3432_s12 = sshll.u32 %s3429_s10, 4  ;;  %s3433_s12 = int_to_ptr.hbm [resolvable:$true] %s3432_s12 }
  0x28   : > { %6805 = vst [vmem:[#allocation9_spill] sm:$0xff] %v4911_v14  ;;  %v4915_v16 = vor.u32 %v4360_v11, %v3526_v12  ;;  %v4064_v17 = vld [vmem:[%s6700_s1 + $0x1e0] sm:$0xf]  ;;  %v4496_v18 = vld [vmem:[%s6700_s1 + $0x1e8] sm:$0xf0]  ;;  %s3418_s22 = scalar_lea.sflag [#allocation3], %s218_s25 }
  0x29   : > { %6806 = vst [vmem:[#allocation10_spill] sm:$0xff] %v4913_v15  ;;  %v4065_v19 = vor.u32 %v4496_v18, %v4064_v17  ;;  %v4367_v21 = vld [vmem:[%s4849_s17 + $0x60] sm:$0xf0]  ;;  %v3704_v22 = vld [vmem:[%s4849_s17 + $0x190] sm:$0xf]  ;;  %s4631_s13 = sshra.s32 %s3433_s12, 4  ;;  %s4632_s13 = int_to_ptr.hbm [resolvable:$true] %s4631_s13 }
  0x2a   : > { %1448 = vmatpush.bf16.msra.mxu0 %v3849_v34  ;;  %4561 = vmatpush.bf16.msra.mxu2 %v3849_v34  ;;  %v4407_v23 = vld [vmem:[%s4849_s17 + $0x1a0] sm:$0xf0]  ;;  %v4405_v24 = vld [vmem:[%s4849_s17 + $0x194] sm:$0xf]  ;;  %v3706_v25 = vld [vmem:[%s4849_s17 + $0x1a4] sm:$0xf0]  ;;  %v4935_v28 = vor.u32 %v4367_v21, %v3544_v20  ;;  %p4638_p0 = scmp.lt.s32.totalorder %s4632_s13, %s6704_s5 }
  0x2b   : > { %4569 = vmatpush.bf16.msra.mxu3 %v3945_v35  ;;  %1537 = vmatpush.bf16.msra.mxu1 %v3945_v35  ;;  %v4365_v26 = vld [vmem:[%s4849_s17 + $0x54] sm:$0xf]  ;;  %v3546_v27 = vld [vmem:[%s4849_s17 + $0x64] sm:$0xf0]  ;;  %v4937_v29 = vor.u32 %v4407_v23, %v3704_v22  ;;  %v4939_v30 = vor.u32 %v4405_v24, %v3706_v25  ;;  %v3564_v35 = vld [vmem:[%s4849_s17 + $0x78] sm:$0xf] }
  0x2c   : > { %6807 = vst [vmem:[#allocation11_spill] sm:$0xff] %v4935_v28  ;;  %v4941_v31 = vor.u32 %v4365_v26, %v3546_v27  ;;  %v4052_v32 = vld [vmem:[%s6700_s1 + $0x1c8] sm:$0xf]  ;;  %v4493_v33 = vld [vmem:[%s6700_s1 + $0x1d0] sm:$0xf0]  ;;  %s4633_s14 = scalar_lea.hbm %s4632_s13, 256 }
  0x2d   : > { %6808 = vst [vmem:[#allocation12_spill] sm:$0xff] %v4937_v29  ;;  %v4053_v34 = vor.u32 %v4493_v33, %v4052_v32  ;;  %v4372_v36 = vld [vmem:[%s4849_s17 + $0x88] sm:$0xf0]  ;;  %v3724_v37 = vld [vmem:[%s4849_s17 + $0x1b8] sm:$0xf]  ;;  %p4634_p11 = scmp.ne.s32.totalorder %s4632_s13, %s4633_s14  ;;  %s4637_s30 = scalar_lea.hbm %s6704_s5, 512 }
  0x2e   : > { %1449 = vmatpush.bf16.msra.mxu0 %v3837_v40  ;;  %4562 = vmatpush.bf16.msra.mxu2 %v3837_v40  ;;  %6809 = vst [vmem:[#allocation13_spill] sm:$0xff] %v4939_v30  ;;  %v4412_v38 = vld [vmem:[%s4849_s17 + $0x1c8] sm:$0xf0]  ;;  %v4410_v39 = vld [vmem:[%s4849_s17 + $0x1bc] sm:$0xf]  ;;  %v4961_v43 = vor.u32 %v4372_v36, %v3564_v35  ;;  %p4639_p1 = scmp.lt.s32.totalorder %s4637_s30, %s4633_s14 }
  0x2f   : > { %4570 = vmatpush.bf16.msra.mxu3 %v3933_v41  ;;  %1538 = vmatpush.bf16.msra.mxu1 %v3933_v41  ;;  %v3726_v40 = vld [vmem:[%s4849_s17 + $0x1cc] sm:$0xf0]  ;;  %v4370_v41 = vld [vmem:[%s4849_s17 + $0x7c] sm:$0xf]  ;;  %v4963_v44 = vor.u32 %v4412_v38, %v3724_v37  ;;  %v3584_v50 = vld [vmem:[%s4849_s17 + $0xa0] sm:$0xf]  ;;  %p4635_p12 = pnand %p4634_p11, %p4751_p5 }
  0x30   : > { %v3566_v42 = vld [vmem:[%s4849_s17 + $0x8c] sm:$0xf0]  ;;  %6810 = vst [vmem:[#allocation14_spill] sm:$0xff] %v4961_v43  ;;  %v4965_v45 = vor.u32 %v4410_v39, %v3726_v40  ;;  %v4490_v48 = vld [vmem:[%s6700_s1 + $0x1b8] sm:$0xf0]  ;;  %p4640_p2 = por %p4639_p1, %p4638_p0 }
  0x31   : > { %6811 = vst [vmem:[#allocation15_spill] sm:$0xff] %v4963_v44  ;;  %v4967_v46 = vor.u32 %v4370_v41, %v3566_v42  ;;  %v4040_v47 = vld [vmem:[%s6700_s1 + $0x1b0] sm:$0xf]  ;;  %v4377_v51 = vld [vmem:[%s4849_s17 + $0xb0] sm:$0xf0]  ;;  %p4636_p13 = pneg %p4635_p12 }
  0x32   : > { %1450 = vmatpush.bf16.msra.mxu0 %v3825_v49  ;;  %4563 = vmatpush.bf16.msra.mxu2 %v3825_v49  ;;  %6812 = vst [vmem:[#allocation16_spill] sm:$0xff] %v4965_v45  ;;  %v4041_v49 = vor.u32 %v4490_v48, %v4040_v47  ;;  %v3744_v52 = vld [vmem:[%s4849_s17 + $0x1e0] sm:$0xf]  ;;  %v4415_v54 = vld [vmem:[%s4849_s17 + $0x1e4] sm:$0xf]  ;;  %v4987_v58 = vor.u32 %v4377_v51, %v3584_v50 }
  0x33   : > { %4571 = vmatpush.bf16.msra.mxu3 %v3921_v53  ;;  %1539 = vmatpush.bf16.msra.mxu1 %v3921_v53  ;;  %v4417_v53 = vld [vmem:[%s4849_s17 + $0x1f0] sm:$0xf0]  ;;  %v3746_v55 = vld [vmem:[%s4849_s17 + $0x1f4] sm:$0xf0]  ;;  %v4196_v2 = vld [vmem:[%s6700_s1 + $0x2e8] sm:$0xf]  ;;  %p4641_p3 = pnand %p4640_p2, %p4636_p13 }
  0x34   : > { %v3586_v57 = vld [vmem:[%s4849_s17 + $0xb4] sm:$0xf0]  ;;  %6813 = vst [vmem:[#allocation17_spill] sm:$0xff] %v4987_v58  ;;  %v4989_v59 = vor.u32 %v4417_v53, %v3744_v52  ;;  %v4991_v60 = vor.u32 %v4415_v54, %v3746_v55  ;;  %v4529_v3 = vld [vmem:[%s6700_s1 + $0x2f0] sm:$0xf0] }
  0x35   : > { %1451 = vmatmul.bf16.vlgmr.msra.gmra.mxu0 %v4883_v61  ;;  %1491 = vmatmul.bf16.vlgmr.msra.gmra.mxu2 %v4885_v62  ;;  %v4028_v5 = vld [vmem:[%s6700_s1 + $0x198] sm:$0xf]  ;;  %v4487_v6 = vld [vmem:[%s6700_s1 + $0x1a0] sm:$0xf0]  ;;  %v4184_v7 = vld [vmem:[%s6700_s1 + $0x2d0] sm:$0xf] }
  0x36   : > { %1621 = vmatpush.bf16.msrb.mxu2 %v4101_v56  ;;  %1580 = vmatmul.bf16.vlgmr.msra.gmra.mxu3 %v4887_v63  ;;  %v4375_v56 = vld [vmem:[%s4849_s17 + $0xa4] sm:$0xf]  ;;  %6814 = vst [vmem:[#allocation18_spill] sm:$0xff] %v4989_v59  ;;  %v4029_v8 = vor.u32 %v4487_v6, %v4028_v5  ;;  %v4526_v9 = vld [vmem:[%s6700_s1 + $0x2d8] sm:$0xf0] }
  0x37   : > { %1540 = vmatmul.bf16.vlgmr.msra.gmra.mxu1 %v4889_v0  ;;  %6815 = vst [vmem:[#allocation19_spill] sm:$0xff] %v4991_v60  ;;  %v4185_v10 = vor.u32 %v4526_v9, %v4184_v7  ;;  %v4172_v11 = vld [vmem:[%s6700_s1 + $0x2b8] sm:$0xf]  ;;  %v4523_v12 = vld [vmem:[%s6700_s1 + $0x2c0] sm:$0xf0] }
  0x38   : > { %v4456_v17 = vld [vmem:[%s6700_s1 + $0xac] sm:$0xf]  ;;  %v3910_v18 = vld [vmem:[%s6700_s1 + $0xb4] sm:$0xf0]  ;;  %v4173_v20 = vor.u32 %v4523_v12, %v4172_v11  ;;  %v4160_v21 = vld [vmem:[%s6700_s1 + $0x2a0] sm:$0xf] }
  0x39   : > { %v4520_v22 = vld [vmem:[%s6700_s1 + $0x2a8] sm:$0xf0]  ;;  %v3604_v23 = vld [vmem:[%s4849_s17 + $0xc8] sm:$0xf]  ;;  %v4382_v24 = vld [vmem:[%s4849_s17 + $0xd8] sm:$0xf0] }
  0x3a   : > { %1622 = vmatpush.bf16.msrb.mxu2 %v4089_v1  ;;  %v4993_v1 = vor.u32 %v4375_v56, %v3586_v57  ;;  %v3764_v25 = vld [vmem:[%s4849_s17 + $0x208] sm:$0xf]  ;;  %v4422_v26 = vld [vmem:[%s4849_s17 + $0x218] sm:$0xf0]  ;;  %v4420_v27 = vld [vmem:[%s4849_s17 + $0x20c] sm:$0xf]  ;;  %v4161_v33 = vor.u32 %v4520_v22, %v4160_v21  ;;  %v5043_v36 = vor.u32 %v4382_v24, %v3604_v23 }
  0x3b   : > { %v3766_v32 = vld [vmem:[%s4849_s17 + $0x21c] sm:$0xf0]  ;;  %v5045_v37 = vor.u32 %v4422_v26, %v3764_v25  ;;  %v4148_v40 = vld [vmem:[%s6700_s1 + $0x288] sm:$0xf]  ;;  %v4517_v41 = vld [vmem:[%s6700_s1 + $0x290] sm:$0xf0] }
  0x3c   : > { %6816 = vst [vmem:[#allocation20_spill] sm:$0xff] %v4993_v1  ;;  %v3606_v35 = vld [vmem:[%s4849_s17 + $0xdc] sm:$0xf0]  ;;  %v5047_v38 = vor.u32 %v4420_v27, %v3766_v32  ;;  %v4149_v42 = vor.u32 %v4517_v41, %v4148_v40  ;;  %v4453_v47 = vld [vmem:[%s6700_s1 + $0x94] sm:$0xf] }
  0x3d   : > { %6817 = vst [vmem:[#allocation21_spill] sm:$0xff] %v5043_v36  ;;  %v3898_v48 = vld [vmem:[%s6700_s1 + $0x9c] sm:$0xf0]  ;;  %v4484_v50 = vld [vmem:[%s6700_s1 + $0x188] sm:$0xf0] }
  0x3e   : > { %1623 = vmatpush.bf16.msrb.mxu2 %v4077_v4  ;;  %v4197_v4 = vor.u32 %v4529_v3, %v4196_v2  ;;  %6818 = vst [vmem:[#allocation22_spill] sm:$0xff] %v5045_v37  ;;  %v3901_v51 = vor.u32 %v4453_v47, %v3898_v48  ;;  %v4136_v52 = vld [vmem:[%s6700_s1 + $0x270] sm:$0xf]  ;;  %v4514_v54 = vld [vmem:[%s6700_s1 + $0x278] sm:$0xf0]  ;;  %v5102_v11 = vld [vmem:[%s6700_s1 + $0x300] sm:$0xff] }
  0x3f   : > { %6819 = vst [vmem:[#allocation23_spill] sm:$0xff] %v5047_v38  ;;  %v4450_v55 = vld [vmem:[%s6700_s1 + $0x7c] sm:$0xf]  ;;  %v3886_v56 = vld [vmem:[%s6700_s1 + $0x84] sm:$0xf0]  ;;  %v4137_v57 = vor.u32 %v4514_v54, %v4136_v52 }
  0x40   : > { %1710 = vmatpush.bf16.msrb.mxu3 %v4197_v4  ;;  %v3889_v2 = vor.u32 %v4450_v55, %v3886_v56  ;;  %v4124_v3 = vld [vmem:[%s6700_s1 + $0x258] sm:$0xf]  ;;  %v4511_v4 = vld [vmem:[%s6700_s1 + $0x260] sm:$0xf0]  ;;  %v3874_v6 = vld [vmem:[%s6700_s1 + $0x6c] sm:$0xf0] }
  0x41   : > { %v4447_v5 = vld [vmem:[%s6700_s1 + $0x64] sm:$0xf]  ;;  %v4125_v7 = vor.u32 %v4511_v4, %v4124_v3  ;;  %v3624_v9 = vld [vmem:[%s4849_s17 + $0xf0] sm:$0xf]  ;;  %v4385_v21 = vld [vmem:[%s4849_s17 + $0xf4] sm:$0xf] }
  0x42   : > { %1624 = vmatpush.bf16.msrb.mxu2 %v4065_v19  ;;  %v3913_v19 = vor.u32 %v4456_v17, %v3910_v18  ;;  %v3784_v12 = vld [vmem:[%s4849_s17 + $0x230] sm:$0xf]  ;;  %v4427_v17 = vld [vmem:[%s4849_s17 + $0x240] sm:$0xf0]  ;;  %v4425_v18 = vld [vmem:[%s4849_s17 + $0x234] sm:$0xf] }
  0x43   : > { %v3626_v22 = vld [vmem:[%s4849_s17 + $0x104] sm:$0xf0]  ;;  %v4112_v23 = vld [vmem:[%s6700_s1 + $0x240] sm:$0xf]  ;;  %v4508_v24 = vld [vmem:[%s6700_s1 + $0x248] sm:$0xf0]  ;;  %v5122_v32 = vor.u32 %v4427_v17, %v3784_v12 }
  0x44   : > { %1711 = vmatpush.bf16.msrb.mxu3 %v4185_v10  ;;  %1888 = vmatpush.bf16.msrb.mxu1 %v3913_v19  ;;  %v4387_v10 = vld [vmem:[%s4849_s17 + $0x100] sm:$0xf0]  ;;  %v1186_v19 = vunpack.c.l.b16 %v5102_v11  ;;  %v4444_v26 = vld [vmem:[%s6700_s1 + $0x4c] sm:$0xf]  ;;  %v4441_v47 = vld [vmem:[%s6700_s1 + $0x34] sm:$0xf] }
  0x45   : > { %1456 = vmatmul.bf16.gmra.mxu0 %v4909_v13  ;;  %1496 = vmatmul.bf16.gmra.mxu2 %v4911_v14  ;;  %v5120_v27 = vor.u32 %v4387_v10, %v3624_v9  ;;  %6822 = vst [vmem:[#allocation26_spill] sm:$0xff] %v5122_v32  ;;  %v3850_v48 = vld [vmem:[%s6700_s1 + $0x3c] sm:$0xf0]  ;;  %v3838_v54 = vld [vmem:[%s6700_s1 + $0x24] sm:$0xf0] }
  0x46   : > { %1585 = vmatmul.bf16.gmra.mxu3 %v4913_v15  ;;  %1625 = vmatpush.bf16.msrb.mxu2 %v4053_v34  ;;  %v4380_v34 = vld [vmem:[%s4849_s17 + $0xcc] sm:$0xf]  ;;  %v1285_v25 = vpack.c.b16 %v1186_v19, %v1186_v19  ;;  %v4435_v56 = vld [vmem:[%s6700_s1 + $0x4] sm:$0xf]  ;;  %v3644_v3 = vld [vmem:[%s4849_s17 + $0x118] sm:$0xf] }
  0x47   : > { %1545 = vmatmul.bf16.gmra.mxu1 %v4915_v16  ;;  %v5049_v39 = vor.u32 %v4380_v34, %v3606_v35  ;;  %6821 = vst [vmem:[#allocation25_spill] sm:$0xff] %v5120_v27  ;;  %v3862_v34 = vld [vmem:[%s6700_s1 + $0x54] sm:$0xf0]  ;;  %v4392_v4 = vld [vmem:[%s4849_s17 + $0x128] sm:$0xf0] }
  0x48   : > { %1712 = vmatpush.bf16.msrb.mxu3 %v4173_v20  ;;  %1889 = vmatpush.bf16.msrb.mxu1 %v3901_v51  ;;  %v3786_v20 = vld [vmem:[%s4849_s17 + $0x244] sm:$0xf0]  ;;  %v1435_v40 = vsel %vm1433_vm0, %v1285_v25, 0  ;;  %v3865_v41 = vor.u32 %v4444_v26, %v3862_v34  ;;  %v3853_v51 = vor.u32 %v4441_v47, %v3850_v48  ;;  %v4390_v9 = vld [vmem:[%s4849_s17 + $0x11c] sm:$0xf]  ;;  %v5168_v12 = vor.u32 %v4392_v4, %v3644_v3 }
  0x49   : > { %6820 = vst [vmem:[#allocation24_spill] sm:$0xff] %v5049_v39  ;;  %v5127_v35 = vor.u32 %v4425_v18, %v3786_v20  ;;  %1806 = vmatpush.bf16.msrb.mxu0 %v1435_v40  ;;  %v3646_v10 = vld [vmem:[%s4849_s17 + $0x12c] sm:$0xf0]  ;;  %v456_v20 = vld [vmem:[%s6701_s2] sm:$0x7] }
  0x4a   : > { %1626 = vmatpush.bf16.msrb.mxu2 %v4041_v49  ;;  %v4016_v49 = vld [vmem:[%s6700_s1 + $0x180] sm:$0xf]  ;;  %6825 = vst [vmem:[#allocation29_spill] sm:$0xff] %v5168_v12  ;;  %v5174_v19 = vor.u32 %v4390_v9, %v3646_v10  ;;  %v4356_v25 = vld [vmem:[%s4849_s17 + $0xc] sm:$0xf] }
  0x4b   : > { %v4017_v53 = vor.u32 %v4484_v50, %v4016_v49  ;;  %6823 = vst [vmem:[#allocation27_spill] sm:$0xff] %v5127_v35  ;;  %v4480_v49 = vld [vmem:[%s6700_s1 + $0x16c] sm:$0xf]  ;;  %v4006_v50 = vld [vmem:[%s6700_s1 + $0x174] sm:$0xf0] }
  0x4c   : > { %1713 = vmatpush.bf16.msrb.mxu3 %v4161_v33  ;;  %1890 = vmatpush.bf16.msrb.mxu1 %v3889_v2  ;;  %v4113_v33 = vor.u32 %v4508_v24, %v4112_v23  ;;  %v4009_v52 = vor.u32 %v4480_v49, %v4006_v50  ;;  %6828 = vst [vmem:[#allocation32_spill] sm:$0xff] %v5174_v19  ;;  %v3520_v23 = vld [vmem:[%s4849_s17 + $0x10] sm:$0xf]  ;;  %v4359_v24 = vld [vmem:[%s4849_s17 + $0x20] sm:$0xf0] }
  0x4d   : > { %v3514_v26 = vld [vmem:[%s4849_s17 + $0x1c] sm:$0xf0]  ;;  %v5193_v40 = vor.u32 %v4359_v24, %v3520_v23  ;;  %v4364_v9 = vld [vmem:[%s4849_s17 + $0x48] sm:$0xf0]  ;;  %v4361_v10 = vld [vmem:[%s4849_s17 + $0x34] sm:$0xf] }
  0x4e   : > { %1627 = vmatpush.bf16.msrb.mxu2 %v4029_v8  ;;  %v3877_v8 = vor.u32 %v4447_v5, %v3874_v6  ;;  %v3804_v5 = vld [vmem:[%s4849_s17 + $0x258] sm:$0xf]  ;;  %v4432_v6 = vld [vmem:[%s4849_s17 + $0x268] sm:$0xf0]  ;;  %v5195_v47 = vor.u32 %v4356_v25, %v3514_v26 }
  0x4f   : > { %v5170_v17 = vor.u32 %v4432_v6, %v3804_v5  ;;  %6829 = vst [vmem:[#allocation33_spill] sm:$0xff] %v5193_v40  ;;  %v3532_v5 = vld [vmem:[%s4849_s17 + $0x30] sm:$0xf] }
  0x50   : > { %1714 = vmatpush.bf16.msrb.mxu3 %v4149_v42  ;;  %1891 = vmatpush.bf16.msrb.mxu1 %v3877_v8  ;;  %v5130_v42 = vor.u32 %v4385_v21, %v3626_v22  ;;  %v3806_v8 = vld [vmem:[%s4849_s17 + $0x26c] sm:$0xf0]  ;;  %v3512_v21 = vld [vmem:[%s4849_s17 + $0x8] sm:$0xf]  ;;  %v4358_v22 = vld [vmem:[%s4849_s17 + $0x18] sm:$0xf0] }
  0x51   : > { %6826 = vst [vmem:[#allocation30_spill] sm:$0xff] %v5170_v17  ;;  %v5191_v34 = vor.u32 %v4358_v22, %v3512_v21 }
  0x52   : > { %1628 = vmatpush.bf16.msrb.mxu2 %v4017_v53  ;;  %6824 = vst [vmem:[#allocation28_spill] sm:$0xff] %v5130_v42  ;;  %v4438_v53 = vld [vmem:[%s6700_s1 + $0x1c] sm:$0xf] }
  0x53   : > { %v3841_v55 = vor.u32 %v4438_v53, %v3838_v54 }
  0x54   : > { %1715 = vmatpush.bf16.msrb.mxu3 %v4137_v57  ;;  %1892 = vmatpush.bf16.msrb.mxu1 %v3865_v41  ;;  %v3826_v57 = vld [vmem:[%s6700_s1 + $0xc] sm:$0xf0] }
  0x55   : > { %1461 = vmatmul.bf16.gmra.mxu0 %v4935_v28  ;;  %1501 = vmatmul.bf16.gmra.mxu2 %v4937_v29  ;;  %v3829_v2 = vor.u32 %v4435_v56, %v3826_v57 }
  0x56   : > { %1590 = vmatmul.bf16.gmra.mxu3 %v4939_v30  ;;  %1977 = vmatpush.bf16.msra.mxu2 %v4009_v52  ;;  %v3994_v52 = vld [vmem:[%s6700_s1 + $0x15c] sm:$0xf0] }
  0x57   : > { %1550 = vmatmul.bf16.gmra.mxu1 %v4941_v31  ;;  %v3594_v30 = vld [vmem:[%s4849_s17 + $0xbc] sm:$0xf0] }
  0x58   : > { %1716 = vmatpush.bf16.msrb.mxu3 %v4125_v7  ;;  %1893 = vmatpush.bf16.msrb.mxu1 %v3853_v51  ;;  %v4430_v7 = vld [vmem:[%s4849_s17 + $0x25c] sm:$0xf]  ;;  %v4477_v51 = vld [vmem:[%s6700_s1 + $0x154] sm:$0xf] }
  0x59   : > { %v5172_v18 = vor.u32 %v4430_v7, %v3806_v8  ;;  %v3997_v53 = vor.u32 %v4477_v51, %v3994_v52  ;;  %v4363_v7 = vld [vmem:[%s4849_s17 + $0x40] sm:$0xf0]  ;;  %v3540_v8 = vld [vmem:[%s4849_s17 + $0x38] sm:$0xf] }
  0x5a   : > { %v5224_v24 = vor.u32 %v4363_v7, %v3532_v5  ;;  %v5226_v25 = vor.u32 %v4364_v9, %v3540_v8  ;;  %v3552_v5 = vld [vmem:[%s4849_s17 + $0x58] sm:$0xf]  ;;  %v4368_v8 = vld [vmem:[%s4849_s17 + $0x68] sm:$0xf0]  ;;  %v3560_v9 = vld [vmem:[%s4849_s17 + $0x60] sm:$0xf] }
  0x5b   : > { %6827 = vst [vmem:[#allocation31_spill] sm:$0xff] %v5172_v18  ;;  %1978 = vmatpush.bf16.msra.mxu2 %v3997_v53 }
  0x5c   : > { %1717 = vmatpush.bf16.msrb.mxu3 %v4113_v33  ;;  %1894 = vmatpush.bf16.msrb.mxu1 %v3841_v55  ;;  %v5189_v33 = vperm.slane %v456_v20, 0  ;;  %v3534_v20 = vld [vmem:[%s4849_s17 + $0x44] sm:$0xf0]  ;;  %6830 = vst [vmem:[#allocation34_spill] sm:$0xff] %v5226_v25 }
  0x60   : > { %1895 = vmatpush.bf16.msrb.mxu1 %v3829_v2 }
  0x65   : > { %1466 = vmatmul.bf16.gmra.mxu0 %v4961_v43  ;;  %1506 = vmatmul.bf16.gmra.mxu2 %v4963_v44 }
  0x66   : > { %1595 = vmatmul.bf16.gmra.mxu3 %v4965_v45  ;;  %v4376_v45 = vld [vmem:[%s4849_s17 + $0xac] sm:$0xf] }
  0x67   : > { %1555 = vmatmul.bf16.gmra.mxu1 %v4967_v46 }
  0x75   : > { %1471 = vmatmul.bf16.gmra.mxu0 %v4987_v58  ;;  %1511 = vmatmul.bf16.gmra.mxu2 %v4989_v59 }
  0x76   : > { %1600 = vmatmul.bf16.gmra.mxu3 %v4991_v60  ;;  %v4379_v60 = vld [vmem:[%s4849_s17 + $0xc0] sm:$0xf0] }
  0x77   : > { %1560 = vmatmul.bf16.gmra.mxu1 %v4993_v1 }
  0x85   : > { %1476 = vmatmul.bf16.gmra.mxu0 %v5043_v36  ;;  %1516 = vmatmul.bf16.gmra.mxu2 %v5045_v37 }
  0x86   : > { %1605 = vmatmul.bf16.gmra.mxu3 %v5047_v38 }
  0x87   : > { %1565 = vmatmul.bf16.gmra.mxu1 %v5049_v39  ;;  %v4383_v39 = vld [vmem:[%s4849_s17 + $0xe0] sm:$0xf0] }
  0x95   : > { %1481 = vmatmul.bf16.gmra.mxu0 %v5120_v27  ;;  %1521 = vmatmul.bf16.gmra.mxu2 %v5122_v32 }
  0x96   : > { %1610 = vmatmul.bf16.gmra.mxu3 %v5127_v35  ;;  %v3574_v35 = vld [vmem:[%s4849_s17 + $0x94] sm:$0xf0] }
  0x97   : > { %1570 = vmatmul.bf16.gmra.mxu1 %v5130_v42 }
  0xa5   : > { %1486 = vmatmul.bf16.gmra.mxu0 %v5168_v12  ;;  %1526 = vmatmul.bf16.gmra.mxu2 %v5170_v17 }
  0xa6   : > { %1615 = vmatmul.bf16.gmra.mxu3 %v5172_v18  ;;  %v4374_v18 = vld [vmem:[%s4849_s17 + $0x98] sm:$0xf0] }
  0xa7   : > { %1575 = vmatmul.bf16.gmra.mxu1 %v5174_v19 }
  0xb2   : > { %v1452_v41 = vpop.f32.mrf.mxu0 }
  0xb3   : > { %v1453_v48 = vadd.f32 %v1452_v41, %v5189_v33  ;;  %v5228_v41 = vor.u32 %v4361_v10, %v3534_v20  ;;  %v4369_v10 = vld [vmem:[%s4849_s17 + $0x70] sm:$0xf0]  ;;  %v4366_v20 = vld [vmem:[%s4849_s17 + $0x5c] sm:$0xf] }
  0xb4   : > { %v1541_v49 = vpop.f32.mrf.mxu1 }
  0xb5   : > { %1629 = vmatmul.bf16.vlgmr.msrb.gmra.mxu2 %v5191_v34  ;;  %4206 = vmatmul.msk.bf16.vlgmr.msrb.gmra.mxu0 %vm1384_vm1, %v5193_v40  ;;  %v5201_v50 = vadd.f32 %v1541_v49, %v1453_v48 }
  0xb6   : > { %1718 = vmatmul.bf16.vlgmr.msrb.gmra.mxu3 %v5195_v47 }
  0xb7   : > { %1896 = vmatmul.bf16.vlgmr.msrb.gmra.mxu1 %v4883_v61  ;;  %v3580_v61 = vld [vmem:[%s4849_s17 + $0x88] sm:$0xf] }
  0xb8   : > { %v1492_v54 = vpop.f32.mrf.mxu2 }
  0xb9   : > { %v1493_v55 = vadd.f32 %v1492_v54, %v5189_v33  ;;  %v1581_v56 = vpop.f32.mrf.mxu3 }
  0xba   : > { %v1454_v57 = vpop.f32.mrf.mxu0 }
  0xbb   : > { %v5212_v2 = vadd.f32 %v1581_v56, %v1493_v55  ;;  %v1455_v3 = vadd.f32 %v1454_v57, %v5189_v33 }
  0xbc   : > { %v1543_v4 = vpop.f32.mrf.mxu1 }
  0xbd   : > { %v5216_v6 = vadd.f32 %v1543_v4, %v1455_v3 }
  0xc0   : > { %v1494_v21 = vpop.f32.mrf.mxu2 }
  0xc1   : > { %v1495_v22 = vadd.f32 %v1494_v21, %v5189_v33  ;;  %v1583_v23 = vpop.f32.mrf.mxu3  ;;  %v3554_v21 = vld [vmem:[%s4849_s17 + $0x6c] sm:$0xf0] }
  0xc2   : > { %v1457_v26 = vpop.f32.mrf.mxu0 }
  0xc3   : > { %v5230_v48 = vadd.f32 %v1583_v23, %v1495_v22  ;;  %v1458_v49 = vadd.f32 %v1457_v26, %v5189_v33 }
  0xc4   : > { %v1546_v51 = vpop.f32.mrf.mxu1 }
  0xc5   : > { %1634 = vmatmul.bf16.gmra.mxu2 %v5224_v24  ;;  %4207 = vmatmul.msk.bf16.gmra.mxu0 %vm1384_vm1, %v5226_v25  ;;  %v5236_v52 = vadd.f32 %v1546_v51, %v1458_v49  ;;  %v5253_v49 = vor.u32 %v4368_v8, %v3552_v5  ;;  %v5255_v51 = vor.u32 %v4369_v10, %v3560_v9  ;;  %v4474_v5 = vld [vmem:[%s6700_s1 + $0x13c] sm:$0xf]  ;;  %v3982_v8 = vld [vmem:[%s6700_s1 + $0x144] sm:$0xf0] }
  0xc6   : > { %1723 = vmatmul.bf16.gmra.mxu3 %v5228_v41  ;;  %v3985_v9 = vor.u32 %v4474_v5, %v3982_v8 }
  0xc7   : > { %1901 = vmatmul.bf16.gmra.mxu1 %v4909_v13  ;;  %6831 = vst [vmem:[#allocation35_spill] sm:$0xff] %v5255_v51  ;;  %v4373_v13 = vld [vmem:[%s4849_s17 + $0x90] sm:$0xf0] }
  0xc8   : > { %v1497_v53 = vpop.f32.mrf.mxu2  ;;  %1979 = vmatpush.bf16.msra.mxu2 %v3985_v9  ;;  %v5290_v9 = vor.u32 %v4374_v18, %v3580_v61 }
  0xc9   : > { %v1498_v54 = vadd.f32 %v1497_v53, %v5189_v33  ;;  %v1586_v55 = vpop.f32.mrf.mxu3 }
  0xca   : > { %v1459_v56 = vpop.f32.mrf.mxu0  ;;  %6833 = vst [vmem:[#allocation37_spill] sm:$0xff] %v5290_v9 }
  0xcb   : > { %v5241_v57 = vadd.f32 %v1586_v55, %v1498_v54  ;;  %v1460_v3 = vadd.f32 %v1459_v56, %v5189_v33  ;;  %v5257_v54 = vor.u32 %v4366_v20, %v3554_v21 }
  0xcc   : > { %v1548_v4 = vpop.f32.mrf.mxu1 }
  0xcd   : > { %v5245_v7 = vadd.f32 %v1548_v4, %v1460_v3 }
  0xd0   : > { %v1499_v22 = vpop.f32.mrf.mxu2 }
  0xd1   : > { %v1500_v23 = vadd.f32 %v1499_v22, %v5189_v33  ;;  %v1588_v26 = vpop.f32.mrf.mxu3 }
  0xd2   : > { %v1462_v53 = vpop.f32.mrf.mxu0 }
  0xd3   : > { %v5259_v55 = vadd.f32 %v1588_v26, %v1500_v23  ;;  %v1463_v56 = vadd.f32 %v1462_v53, %v5189_v33 }
  0xd4   : > { %v1551_v3 = vpop.f32.mrf.mxu1 }
  0xd5   : > { %1639 = vmatmul.bf16.gmra.mxu2 %v5253_v49  ;;  %4208 = vmatmul.msk.bf16.gmra.mxu0 %vm1384_vm1, %v5255_v51  ;;  %v5265_v4 = vadd.f32 %v1551_v3, %v1463_v56  ;;  %v3572_v56 = vld [vmem:[%s4849_s17 + $0x80] sm:$0xf] }
  0xd6   : > { %1728 = vmatmul.bf16.gmra.mxu3 %v5257_v54  ;;  %v5288_v38 = vor.u32 %v4373_v13, %v3572_v56 }
  0xd7   : > { %1906 = vmatmul.bf16.gmra.mxu1 %v4935_v28  ;;  %v4371_v28 = vld [vmem:[%s4849_s17 + $0x84] sm:$0xf] }
  0xd8   : > { %v1502_v10 = vpop.f32.mrf.mxu2  ;;  %6832 = vst [vmem:[#allocation36_spill] sm:$0xff] %v5288_v38 }
  0xd9   : > { %v1503_v20 = vadd.f32 %v1502_v10, %v5189_v33  ;;  %v1591_v21 = vpop.f32.mrf.mxu3 }
  0xda   : > { %v1464_v22 = vpop.f32.mrf.mxu0 }
  0xdb   : > { %v5276_v23 = vadd.f32 %v1591_v21, %v1503_v20  ;;  %v1465_v26 = vadd.f32 %v1464_v22, %v5189_v33  ;;  %v5292_v21 = vor.u32 %v4371_v28, %v3574_v35 }
  0xdc   : > { %v1553_v53 = vpop.f32.mrf.mxu1 }
  0xdd   : > { %v5280_v3 = vadd.f32 %v1553_v53, %v1465_v26  ;;  %6834 = vst [vmem:[#allocation38_spill] sm:$0xff] %v5292_v21 }
  0xe0   : > { %v1504_v5 = vpop.f32.mrf.mxu2 }
  0xe1   : > { %v1505_v8 = vadd.f32 %v1504_v5, %v5189_v33  ;;  %v1593_v10 = vpop.f32.mrf.mxu3 }
  0xe2   : > { %v1467_v20 = vpop.f32.mrf.mxu0 }
  0xe3   : > { %v5294_v22 = vadd.f32 %v1593_v10, %v1505_v8  ;;  %v1468_v26 = vadd.f32 %v1467_v20, %v5189_v33  ;;  %v3592_v10 = vld [vmem:[%s4849_s17 + $0xa8] sm:$0xf] }
  0xe4   : > { %v1556_v53 = vpop.f32.mrf.mxu1 }
  0xe5   : > { %1644 = vmatmul.bf16.gmra.mxu2 %v5288_v38  ;;  %4209 = vmatmul.msk.bf16.gmra.mxu0 %vm1384_vm1, %v5290_v9  ;;  %v5300_v61 = vadd.f32 %v1556_v53, %v1468_v26  ;;  %v4378_v26 = vld [vmem:[%s4849_s17 + $0xb8] sm:$0xf0]  ;;  %v3600_v53 = vld [vmem:[%s4849_s17 + $0xb0] sm:$0xf] }
  0xe6   : > { %1733 = vmatmul.bf16.gmra.mxu3 %v5292_v21  ;;  %v5319_v19 = vor.u32 %v4379_v60, %v3600_v53  ;;  %v1187_v21 = vunpack.c.h.b16 %v5102_v11  ;;  %v4528_v11 = vld [vmem:[%s6700_s1 + $0x2ec] sm:$0xf] }
  0xe7   : > { %1911 = vmatmul.bf16.gmra.mxu1 %v4961_v43 }
  0xe8   : > { %v1507_v13 = vpop.f32.mrf.mxu2  ;;  %6837 = vst [vmem:[#allocation41_spill] sm:$0xff] %v5319_v19 }
  0xe9   : > { %v1508_v28 = vadd.f32 %v1507_v13, %v5189_v33  ;;  %v1596_v35 = vpop.f32.mrf.mxu3  ;;  %v5317_v13 = vor.u32 %v4378_v26, %v3592_v10 }
  0xea   : > { %v1469_v18 = vpop.f32.mrf.mxu0 }
  0xeb   : > { %v5305_v56 = vadd.f32 %v1596_v35, %v1508_v28  ;;  %v1470_v5 = vadd.f32 %v1469_v18, %v5189_v33  ;;  %6836 = vst [vmem:[#allocation40_spill] sm:$0xff] %v5317_v13  ;;  %v5321_v35 = vor.u32 %v4376_v45, %v3594_v30  ;;  %v3970_v30 = vld [vmem:[%s6700_s1 + $0x12c] sm:$0xf0] }
  0xec   : > { %v1558_v8 = vpop.f32.mrf.mxu1 }
  0xed   : > { %6835 = vst [vmem:[#allocation39_spill] sm:$0xff] %v5305_v56  ;;  %v5309_v20 = vadd.f32 %v1558_v8, %v1470_v5 }
  0xee   : > { %6838 = vst [vmem:[#allocation42_spill] sm:$0xff] %v5321_v35 }
  0xf0   : > { %v1509_v15 = vpop.f32.mrf.mxu2 }
  0xf1   : > { %v1510_v43 = vadd.f32 %v1509_v15, %v5189_v33  ;;  %v1598_v63 = vpop.f32.mrf.mxu3 }
  0xf2   : > { %v1472_v28 = vpop.f32.mrf.mxu0 }
  0xf3   : > { %v5323_v18 = vadd.f32 %v1598_v63, %v1510_v43  ;;  %v1473_v5 = vadd.f32 %v1472_v28, %v5189_v33  ;;  %v4471_v63 = vld [vmem:[%s6700_s1 + $0x124] sm:$0xf] }
  0xf4   : > { %v1561_v8 = vpop.f32.mrf.mxu1  ;;  %v3973_v43 = vor.u32 %v4471_v63, %v3970_v30 }
  0xf5   : > { %6839 = vst [vmem:[#allocation43_spill] sm:$0xff] %v5323_v18  ;;  %1649 = vmatmul.bf16.gmra.mxu2 %v5317_v13  ;;  %4210 = vmatmul.msk.bf16.gmra.mxu0 %vm1384_vm1, %v5319_v19  ;;  %v5329_v15 = vadd.f32 %v1561_v8, %v1473_v5  ;;  %v3612_v8 = vld [vmem:[%s4849_s17 + $0xd0] sm:$0xf]  ;;  %v3620_v19 = vld [vmem:[%s4849_s17 + $0xd8] sm:$0xf] }
  0xf6   : > { %1738 = vmatmul.bf16.gmra.mxu3 %v5321_v35  ;;  %1980 = vmatpush.bf16.msra.mxu2 %v3973_v43  ;;  %v4384_v13 = vld [vmem:[%s4849_s17 + $0xe8] sm:$0xf0]  ;;  %v3614_v35 = vld [vmem:[%s4849_s17 + $0xe4] sm:$0xf0]  ;;  %v5352_v1 = vor.u32 %v4383_v39, %v3612_v8 }
  0xf7   : > { %1916 = vmatmul.bf16.gmra.mxu1 %v4987_v58  ;;  %v4381_v58 = vld [vmem:[%s4849_s17 + $0xd4] sm:$0xf]  ;;  %v5354_v43 = vor.u32 %v4384_v13, %v3620_v19 }
  0xf8   : > { %v1512_v45 = vpop.f32.mrf.mxu2  ;;  %6841 = vst [vmem:[#allocation45_spill] sm:$0xff] %v5352_v1 }
  0xf9   : > { %v1513_v60 = vadd.f32 %v1512_v45, %v5189_v33  ;;  %v1601_v10 = vpop.f32.mrf.mxu3  ;;  %6842 = vst [vmem:[#allocation46_spill] sm:$0xff] %v5354_v43 }
  0xfa   : > { %v1474_v26 = vpop.f32.mrf.mxu0 }
  0xfb   : > { %v5340_v53 = vadd.f32 %v1601_v10, %v1513_v60  ;;  %v1475_v28 = vadd.f32 %v1474_v26, %v5189_v33  ;;  %v5356_v10 = vor.u32 %v4381_v58, %v3614_v35 }
  0xfc   : > { %v1563_v5 = vpop.f32.mrf.mxu1 }
  0xfd   : > { %6840 = vst [vmem:[#allocation44_spill] sm:$0xff] %v5340_v53  ;;  %v5344_v42 = vadd.f32 %v1563_v5, %v1475_v28 }
  0xfe   : > { %6843 = vst [vmem:[#allocation47_spill] sm:$0xff] %v5356_v10 }
 0x100   : > { %v1514_v63 = vpop.f32.mrf.mxu2 }
 0x101   : > { %v1515_v30 = vadd.f32 %v1514_v63, %v5189_v33  ;;  %v1603_v45 = vpop.f32.mrf.mxu3 }
 0x102   : > { %v1477_v60 = vpop.f32.mrf.mxu0 }
 0x103   : > { %v5358_v26 = vadd.f32 %v1603_v45, %v1515_v30  ;;  %v1478_v28 = vadd.f32 %v1477_v60, %v5189_v33  ;;  %v3632_v45 = vld [vmem:[%s4849_s17 + $0xf8] sm:$0xf] }
 0x104   : > { %v1566_v5 = vpop.f32.mrf.mxu1 }
 0x105   : > { %6844 = vst [vmem:[#allocation48_spill] sm:$0xff] %v5358_v26  ;;  %1654 = vmatmul.bf16.gmra.mxu2 %v5352_v1  ;;  %4211 = vmatmul.msk.bf16.gmra.mxu0 %vm1384_vm1, %v5354_v43  ;;  %v5364_v39 = vadd.f32 %v1566_v5, %v1478_v28  ;;  %v4388_v28 = vld [vmem:[%s4849_s17 + $0x108] sm:$0xf0]  ;;  %v3640_v5 = vld [vmem:[%s4849_s17 + $0x100] sm:$0xf] }
 0x106   : > { %1743 = vmatmul.bf16.gmra.mxu3 %v5356_v10  ;;  %v4389_v43 = vld [vmem:[%s4849_s17 + $0x110] sm:$0xf0]  ;;  %v4386_v1 = vld [vmem:[%s4849_s17 + $0xfc] sm:$0xf]  ;;  %v3634_v10 = vld [vmem:[%s4849_s17 + $0x10c] sm:$0xf0] }
 0x107   : > { %1921 = vmatmul.bf16.gmra.mxu1 %v5043_v36  ;;  %v5383_v18 = vor.u32 %v4389_v43, %v3640_v5 }
 0x108   : > { %v1517_v58 = vpop.f32.mrf.mxu2 }
 0x109   : > { %v1518_v19 = vadd.f32 %v1517_v58, %v5189_v33  ;;  %v1606_v13 = vpop.f32.mrf.mxu3  ;;  %v5381_v58 = vor.u32 %v4388_v28, %v3632_v45  ;;  %6847 = vst [vmem:[#allocation51_spill] sm:$0xff] %v5383_v18 }
 0x10a   : > { %v1479_v35 = vpop.f32.mrf.mxu0 }
 0x10b   : > { %v5369_v8 = vadd.f32 %v1606_v13, %v1518_v19  ;;  %v1480_v63 = vadd.f32 %v1479_v35, %v5189_v33  ;;  %6846 = vst [vmem:[#allocation50_spill] sm:$0xff] %v5381_v58  ;;  %v5385_v13 = vor.u32 %v4386_v1, %v3634_v10  ;;  %v4468_v1 = vld [vmem:[%s6700_s1 + $0x10c] sm:$0xf] }
 0x10c   : > { %v1568_v30 = vpop.f32.mrf.mxu1 }
 0x10d   : > { %6845 = vst [vmem:[#allocation49_spill] sm:$0xff] %v5369_v8  ;;  %v5373_v60 = vadd.f32 %v1568_v30, %v1480_v63  ;;  %v3654_v8 = vld [vmem:[%s4849_s17 + $0x134] sm:$0xf0] }
 0x10e   : > { %6848 = vst [vmem:[#allocation52_spill] sm:$0xff] %v5385_v13 }
 0x110   : > { %v1519_v26 = vpop.f32.mrf.mxu2 }
 0x111   : > { %v1520_v36 = vadd.f32 %v1519_v26, %v5189_v33  ;;  %v1608_v53 = vpop.f32.mrf.mxu3 }
 0x112   : > { %v1482_v19 = vpop.f32.mrf.mxu0 }
 0x113   : > { %v5387_v35 = vadd.f32 %v1608_v53, %v1520_v36  ;;  %v1483_v63 = vadd.f32 %v1482_v19, %v5189_v33  ;;  %v3958_v36 = vld [vmem:[%s6700_s1 + $0x114] sm:$0xf0] }
 0x114   : > { %v1571_v30 = vpop.f32.mrf.mxu1  ;;  %v3961_v53 = vor.u32 %v4468_v1, %v3958_v36  ;;  %v4504_v1 = vld [vmem:[%s6700_s1 + $0x22c] sm:$0xf]  ;;  %v4102_v36 = vld [vmem:[%s6700_s1 + $0x234] sm:$0xf0] }
 0x115   : > { %6849 = vst [vmem:[#allocation53_spill] sm:$0xff] %v5387_v35  ;;  %1659 = vmatmul.bf16.gmra.mxu2 %v5381_v58  ;;  %4212 = vmatmul.msk.bf16.gmra.mxu0 %vm1384_vm1, %v5383_v18  ;;  %v5393_v26 = vadd.f32 %v1571_v30, %v1483_v63  ;;  %v3652_v30 = vld [vmem:[%s4849_s17 + $0x120] sm:$0xf]  ;;  %v4393_v18 = vld [vmem:[%s4849_s17 + $0x130] sm:$0xf0] }
 0x116   : > { %1748 = vmatmul.bf16.gmra.mxu3 %v5385_v13  ;;  %1981 = vmatpush.bf16.msra.mxu2 %v3961_v53  ;;  %v4391_v13 = vld [vmem:[%s4849_s17 + $0x124] sm:$0xf]  ;;  %v3660_v35 = vld [vmem:[%s4849_s17 + $0x128] sm:$0xf] }
 0x117   : > { %1926 = vmatmul.bf16.gmra.mxu1 %v5120_v27  ;;  %v4394_v27 = vld [vmem:[%s4849_s17 + $0x138] sm:$0xf0] }
 0x118   : > { %v1522_v43 = vpop.f32.mrf.mxu2 }
 0x119   : > { %v1523_v10 = vadd.f32 %v1522_v43, %v5189_v33  ;;  %v1611_v45 = vpop.f32.mrf.mxu3  ;;  %v4105_v43 = vor.u32 %v4504_v1, %v4102_v36 }
 0x11a   : > { %v1484_v28 = vpop.f32.mrf.mxu0 }
 0x11b   : > { %v5404_v5 = vadd.f32 %v1611_v45, %v1523_v10  ;;  %v1485_v19 = vadd.f32 %v1484_v28, %v5189_v33  ;;  %v5422_v28 = vor.u32 %v4393_v18, %v3652_v30  ;;  %2066 = vmatpush.bf16.msra.mxu3 %v4105_v43 }
 0x11c   : > { %v1573_v63 = vpop.f32.mrf.mxu1 }
 0x11d   : > { %6850 = vst [vmem:[#allocation54_spill] sm:$0xff] %v5404_v5  ;;  %v5409_v58 = vadd.f32 %v1573_v63, %v1485_v19  ;;  %v5424_v19 = vor.u32 %v4394_v27, %v3660_v35  ;;  %v5426_v5 = vor.u32 %v4391_v13, %v3654_v8 }
 0x11e   : > { %6851 = vst [vmem:[#allocation55_spill] sm:$0xff] %v5422_v28 }
 0x11f   : > { %6852 = vst [vmem:[#allocation56_spill] sm:$0xff] %v5424_v19 }
 0x120   : > { %v1524_v53 = vpop.f32.mrf.mxu2  ;;  %6853 = vst [vmem:[#allocation57_spill] sm:$0xff] %v5426_v5 }
 0x121   : > { %v1525_v10 = vadd.f32 %v1524_v53, %v5189_v33  ;;  %v1613_v45 = vpop.f32.mrf.mxu3 }
 0x122   : > { %v1487_v63 = vpop.f32.mrf.mxu0 }
 0x123   : > { %v5428_v56 = vadd.f32 %v1613_v45, %v1525_v10  ;;  %v1488_v9 = vadd.f32 %v1487_v63, %v5189_v33  ;;  %v3672_v10 = vld [vmem:[%s4849_s17 + $0x148] sm:$0xf]  ;;  %v4398_v63 = vld [vmem:[%s4849_s17 + $0x158] sm:$0xf0] }
 0x124   : > { %v1576_v38 = vpop.f32.mrf.mxu1 }
 0x125   : > { %1664 = vmatmul.bf16.gmra.mxu2 %v5422_v28  ;;  %4213 = vmatmul.msk.bf16.gmra.mxu0 %vm1384_vm1, %v5424_v19  ;;  %v5435_v18 = vadd.f32 %v1576_v38, %v1488_v9  ;;  %v4198_v38 = vld [vmem:[%s6700_s1 + $0x2f4] sm:$0xf0]  ;;  %v1286_v9 = vpack.c.b16 %v1187_v21, %v1187_v21  ;;  %v4396_v19 = vld [vmem:[%s4849_s17 + $0x14c] sm:$0xf]  ;;  %v3674_v28 = vld [vmem:[%s4849_s17 + $0x15c] sm:$0xf0] }
 0x126   : > { %1753 = vmatmul.bf16.gmra.mxu3 %v5426_v5  ;;  %v4201_v30 = vor.u32 %v4528_v11, %v4198_v38 }
 0x127   : > { %1931 = vmatmul.bf16.gmra.mxu1 %v5168_v12  ;;  %v1438_v53 = vsel %vm1433_vm0, %v1286_v9, 0  ;;  %v4399_v12 = vld [vmem:[%s4849_s17 + $0x160] sm:$0xf0] }
 0x128   : > { %v1527_v27 = vpop.f32.mrf.mxu2  ;;  %2155 = vmatpush.bf16.msra.mxu0 %v4201_v30  ;;  %2251 = vmatpush.bf16.msra.mxu1 %v1438_v53 }
 0x129   : > { %v1528_v8 = vadd.f32 %v1527_v27, %v5189_v33  ;;  %v1616_v13 = vpop.f32.mrf.mxu3  ;;  %v3680_v27 = vld [vmem:[%s4849_s17 + $0x150] sm:$0xf] }
 0x12a   : > { %v1489_v35 = vpop.f32.mrf.mxu0  ;;  %v5461_v38 = vor.u32 %v4399_v12, %v3680_v27  ;;  %v4465_v12 = vld [vmem:[%s6700_s1 + $0xf4] sm:$0xf] }
 0x12b   : > { %v5446_v1 = vadd.f32 %v1616_v13, %v1528_v8  ;;  %v1490_v36 = vadd.f32 %v1489_v35, %v5189_v33  ;;  %v5459_v13 = vor.u32 %v4398_v63, %v3672_v10  ;;  %v5463_v35 = vor.u32 %v4396_v19, %v3674_v28 }
 0x12c   : > { %v1578_v43 = vpop.f32.mrf.mxu1  ;;  %6856 = vst [vmem:[#allocation60_spill] sm:$0xff] %v5461_v38 }
 0x12d   : > { %6854 = vst [vmem:[#allocation58_spill] sm:$0xff] %v5446_v1  ;;  %v5451_v45 = vadd.f32 %v1578_v43, %v1490_v36 }
 0x12e   : > { %6855 = vst [vmem:[#allocation59_spill] sm:$0xff] %v5459_v13 }
 0x12f   : > { %6857 = vst [vmem:[#allocation61_spill] sm:$0xff] %v5463_v35 }
 0x130   : > { %v1529_v21 = vpop.f32.mrf.mxu2 }
 0x131   : > { %v1530_v11 = vadd.f32 %v1529_v21, %v5189_v33  ;;  %v1618_v8 = vpop.f32.mrf.mxu3  ;;  %v3946_v33 = vld [vmem:[%s6700_s1 + $0xfc] sm:$0xf0] }
 0x132   : > { %v1808_v9 = vpop.f32.mrf.mxu0  ;;  %v3949_v19 = vor.u32 %v4465_v12, %v3946_v33 }
 0x133   : > { %v5465_v30 = vadd.f32 %v1618_v8, %v1530_v11  ;;  %v3692_v11 = vld [vmem:[%s4849_s17 + $0x170] sm:$0xf]  ;;  %v4403_v8 = vld [vmem:[%s4849_s17 + $0x180] sm:$0xf0] }
 0x134   : > { %v5467_v36 = vpop.f32.mrf.mxu1  ;;  %1982 = vmatpush.bf16.msra.mxu2 %v3949_v19 }
 0x135   : > { %6858 = vst [vmem:[#allocation62_spill] sm:$0xff] %v5465_v30  ;;  %1669 = vmatmul.bf16.gmra.mxu2 %v5459_v13  ;;  %4214 = vmatmul.msk.bf16.gmra.mxu0 %vm1384_vm1, %v5461_v38  ;;  %v3700_v38 = vld [vmem:[%s4849_s17 + $0x178] sm:$0xf]  ;;  %v3694_v13 = vld [vmem:[%s4849_s17 + $0x184] sm:$0xf0] }
 0x136   : > { %6859 = vst [vmem:[#allocation63_spill] sm:$0xff] %v5467_v36  ;;  %1758 = vmatmul.bf16.gmra.mxu3 %v5463_v35  ;;  %v4404_v36 = vld [vmem:[%s4849_s17 + $0x188] sm:$0xf0]  ;;  %v4501_v35 = vld [vmem:[%s6700_s1 + $0x214] sm:$0xf] }
 0x137   : > { %1936 = vmatmul.bf16.gmra.mxu1 %v4885_v62  ;;  %v4401_v62 = vld [vmem:[%s4849_s17 + $0x174] sm:$0xf] }
 0x138   : > { %v1630_v28 = vpop.f32.mrf.mxu2 }
 0x139   : > { %v1631_v53 = vadd.f32 %v1630_v28, %v5201_v50  ;;  %v1719_v43 = vpop.f32.mrf.mxu3  ;;  %v4090_v50 = vld [vmem:[%s6700_s1 + $0x21c] sm:$0xf0] }
 0x13a   : > { %v1810_v10 = vpop.f32.mrf.mxu0  ;;  %v4093_v33 = vor.u32 %v4501_v35, %v4090_v50 }
 0x13b   : > { %v1720_v63 = vadd.f32 %v1719_v43, %v1631_v53  ;;  %v5498_v53 = vor.u32 %v4404_v36, %v3700_v38 }
 0x13c   : > { %v5481_v27 = vpop.f32.mrf.mxu1  ;;  %2067 = vmatpush.bf16.msra.mxu3 %v4093_v33  ;;  %v4408_v33 = vld [vmem:[%s4849_s17 + $0x1a8] sm:$0xf0] }
 0x13d   : > { %6860 = vst [vmem:[#allocation64_spill] sm:$0xff] %v5481_v27  ;;  %v1809_v21 = vadd.f32 %v1808_v9, %v1720_v63  ;;  %v5496_v9 = vor.u32 %v4403_v8, %v3692_v11  ;;  %v5500_v63 = vor.u32 %v4401_v62, %v3694_v13  ;;  %v4525_v62 = vld [vmem:[%s6700_s1 + $0x2d4] sm:$0xf]  ;;  %v4186_v13 = vld [vmem:[%s6700_s1 + $0x2dc] sm:$0xf0] }
 0x13e   : > { %6862 = vst [vmem:[#allocation66_spill] sm:$0xff] %v5498_v53  ;;  %v4189_v36 = vor.u32 %v4525_v62, %v4186_v13 }
 0x13f   : > { %6861 = vst [vmem:[#allocation65_spill] sm:$0xff] %v5496_v9 }
 0x140   : > { %v1632_v12 = vpop.f32.mrf.mxu2  ;;  %6863 = vst [vmem:[#allocation67_spill] sm:$0xff] %v5500_v63  ;;  %2156 = vmatpush.bf16.msra.mxu0 %v4189_v36 }
 0x141   : > { %v1633_v28 = vadd.f32 %v1632_v12, %v5216_v6  ;;  %v1721_v19 = vpop.f32.mrf.mxu3  ;;  %v2778_v6 = vmax.f32 %v1809_v21, 0.0  ;;  %v3712_v12 = vld [vmem:[%s4849_s17 + $0x198] sm:$0xf] }
 0x142   : > { %v1813_v43 = vpop.f32.mrf.mxu0 }
 0x143   : > { %v1722_v27 = vadd.f32 %v1721_v19, %v1633_v28  ;;  %v3720_v28 = vld [vmem:[%s4849_s17 + $0x1a0] sm:$0xf]  ;;  %v4409_v19 = vld [vmem:[%s4849_s17 + $0x1b0] sm:$0xf0] }
 0x144   : > { %v5502_v30 = vpop.f32.mrf.mxu1 }
 0x145   : > { %6864 = vst [vmem:[#allocation68_spill] sm:$0xff] %v5502_v30  ;;  %v1811_v1 = vadd.f32 %v1810_v10, %v1722_v27  ;;  %1674 = vmatmul.bf16.gmra.mxu2 %v5496_v9  ;;  %4215 = vmatmul.msk.bf16.gmra.mxu0 %vm1384_vm1, %v5498_v53  ;;  %v3714_v53 = vld [vmem:[%s4849_s17 + $0x1ac] sm:$0xf0] }
 0x146   : > { %1763 = vmatmul.bf16.gmra.mxu3 %v5500_v63 }
 0x147   : > { %v2781_v38 = vmax.f32 %v1811_v1, 0.0  ;;  %1941 = vmatmul.bf16.gmra.mxu1 %v4911_v14  ;;  %v4406_v14 = vld [vmem:[%s4849_s17 + $0x19c] sm:$0xf] }
 0x148   : > { %v1635_v35 = vpop.f32.mrf.mxu2 }
 0x149   : > { %v5515_v10 = vpack.c.bf16 %v2781_v38, %v2778_v6  ;;  %v1636_v1 = vadd.f32 %v1635_v35, %v5236_v52  ;;  %v1724_v27 = vpop.f32.mrf.mxu3  ;;  %v5527_v38 = vor.u32 %v4408_v33, %v3712_v12  ;;  %v5529_v52 = vor.u32 %v4409_v19, %v3720_v28 }
 0x14a   : > { %v1815_v21 = vpop.f32.mrf.mxu0  ;;  %v5531_v35 = vor.u32 %v4406_v14, %v3714_v53  ;;  %v4462_v14 = vld [vmem:[%s6700_s1 + $0xdc] sm:$0xf]  ;;  %v3934_v53 = vld [vmem:[%s6700_s1 + $0xe4] sm:$0xf0] }
 0x14b   : > { %6865 = vst [vmem:[#allocation69_spill] sm:$0xff] %v5515_v10  ;;  %v1725_v11 = vadd.f32 %v1724_v27, %v1636_v1  ;;  %v3740_v10 = vld [vmem:[%s4849_s17 + $0x1c8] sm:$0xf] }
 0x14c   : > { %v5518_v8 = vpop.f32.mrf.mxu1  ;;  %6866 = vst [vmem:[#allocation70_spill] sm:$0xff] %v5529_v52 }
 0x14d   : > { %v1814_v50 = vadd.f32 %v1813_v43, %v1725_v11 }
 0x150   : > { %v1637_v30 = vpop.f32.mrf.mxu2 }
 0x151   : > { %v1638_v62 = vadd.f32 %v1637_v30, %v5245_v7  ;;  %v1726_v6 = vpop.f32.mrf.mxu3  ;;  %v2784_v7 = vmax.f32 %v1814_v50, 0.0 }
 0x152   : > { %v1818_v13 = vpop.f32.mrf.mxu0 }
 0x153   : > { %v1727_v36 = vadd.f32 %v1726_v6, %v1638_v62  ;;  %v3732_v6 = vld [vmem:[%s4849_s17 + $0x1c0] sm:$0xf] }
 0x154   : > { %v5533_v1 = vpop.f32.mrf.mxu1 }
 0x155   : > { %v1816_v43 = vadd.f32 %v1815_v21, %v1727_v36  ;;  %1679 = vmatmul.bf16.gmra.mxu2 %v5527_v38  ;;  %4216 = vmatmul.msk.bf16.gmra.mxu0 %vm1384_vm1, %v5529_v52  ;;  %v3937_v21 = vor.u32 %v4462_v14, %v3934_v53  ;;  %v4413_v36 = vld [vmem:[%s4849_s17 + $0x1d0] sm:$0xf0]  ;;  %v3734_v52 = vld [vmem:[%s4849_s17 + $0x1d4] sm:$0xf0]  ;;  %v4498_v14 = vld [vmem:[%s6700_s1 + $0x1fc] sm:$0xf] }
 0x156   : > { %1768 = vmatmul.bf16.gmra.mxu3 %v5531_v35 }
 0x157   : > { %v2787_v30 = vmax.f32 %v1816_v43, 0.0  ;;  %1946 = vmatmul.bf16.gmra.mxu1 %v4937_v29  ;;  %1983 = vmatpush.bf16.msra.mxu2 %v3937_v21  ;;  %v4411_v43 = vld [vmem:[%s4849_s17 + $0x1c4] sm:$0xf]  ;;  %v4414_v29 = vld [vmem:[%s4849_s17 + $0x1d8] sm:$0xf0] }
 0x158   : > { %v1640_v27 = vpop.f32.mrf.mxu2  ;;  %v5566_v21 = vor.u32 %v4414_v29, %v3740_v10  ;;  %v4522_v10 = vld [vmem:[%s6700_s1 + $0x2bc] sm:$0xf] }
 0x159   : > { %v1641_v11 = vadd.f32 %v1640_v27, %v5265_v4  ;;  %v1729_v50 = vpop.f32.mrf.mxu3  ;;  %v5547_v12 = vpack.c.bf16 %v2787_v30, %v2784_v7  ;;  %v4078_v4 = vld [vmem:[%s6700_s1 + $0x204] sm:$0xf0] }
 0x15a   : > { %v1820_v33 = vpop.f32.mrf.mxu0  ;;  %v4081_v30 = vor.u32 %v4498_v14, %v4078_v4  ;;  %6869 = vst [vmem:[#allocation73_spill] sm:$0xff] %v5566_v21 }
 0x15b   : > { %6867 = vst [vmem:[#allocation71_spill] sm:$0xff] %v5547_v12  ;;  %v1730_v28 = vadd.f32 %v1729_v50, %v1641_v11  ;;  %v5568_v50 = vor.u32 %v4411_v43, %v3734_v52  ;;  %v4174_v52 = vld [vmem:[%s6700_s1 + $0x2c4] sm:$0xf0] }
 0x15c   : > { %v5549_v19 = vpop.f32.mrf.mxu1  ;;  %2068 = vmatpush.bf16.msra.mxu3 %v4081_v30  ;;  %v3752_v30 = vld [vmem:[%s4849_s17 + $0x1e8] sm:$0xf] }
 0x15d   : > { %6868 = vst [vmem:[#allocation72_spill] sm:$0xff] %v5549_v19  ;;  %v1819_v62 = vadd.f32 %v1818_v13, %v1730_v28  ;;  %v5564_v13 = vor.u32 %v4413_v36, %v3732_v6  ;;  %v4177_v6 = vor.u32 %v4522_v10, %v4174_v52 }
 0x15f   : > { %2157 = vmatpush.bf16.msra.mxu0 %v4177_v6 }
 0x160   : > { %v1642_v7 = vpop.f32.mrf.mxu2 }
 0x161   : > { %v1643_v53 = vadd.f32 %v1642_v7, %v5280_v3  ;;  %v1731_v27 = vpop.f32.mrf.mxu3  ;;  %v2790_v3 = vmax.f32 %v1819_v62, 0.0 }
 0x162   : > { %v1823_v11 = vpop.f32.mrf.mxu0 }
 0x163   : > { %v1732_v28 = vadd.f32 %v1731_v27, %v1643_v53  ;;  %v4418_v53 = vld [vmem:[%s4849_s17 + $0x1f8] sm:$0xf0]  ;;  %v3760_v27 = vld [vmem:[%s4849_s17 + $0x1f0] sm:$0xf] }
 0x164   : > { %v5570_v12 = vpop.f32.mrf.mxu1 }
 0x165   : > { %6870 = vst [vmem:[#allocation74_spill] sm:$0xff] %v5570_v12  ;;  %v1821_v19 = vadd.f32 %v1820_v33, %v1732_v28  ;;  %1684 = vmatmul.bf16.gmra.mxu2 %v5564_v13  ;;  %4217 = vmatmul.msk.bf16.gmra.mxu0 %vm1384_vm1, %v5566_v21  ;;  %v4419_v28 = vld [vmem:[%s4849_s17 + $0x200] sm:$0xf0]  ;;  %v3754_v21 = vld [vmem:[%s4849_s17 + $0x1fc] sm:$0xf0] }
 0x166   : > { %1773 = vmatmul.bf16.gmra.mxu3 %v5568_v50 }
 0x167   : > { %v2793_v29 = vmax.f32 %v1821_v19, 0.0  ;;  %1951 = vmatmul.bf16.gmra.mxu1 %v4963_v44  ;;  %v4416_v44 = vld [vmem:[%s4849_s17 + $0x1ec] sm:$0xf] }
 0x168   : > { %v1645_v33 = vpop.f32.mrf.mxu2 }
 0x169   : > { %v1646_v62 = vadd.f32 %v1645_v33, %v5300_v61  ;;  %v1734_v36 = vpop.f32.mrf.mxu3  ;;  %v5584_v19 = vpack.c.bf16 %v2793_v29, %v2790_v3  ;;  %v5595_v61 = vor.u32 %v4418_v53, %v3752_v30  ;;  %v5597_v3 = vor.u32 %v4419_v28, %v3760_v27 }
 0x16a   : > { %v1825_v43 = vpop.f32.mrf.mxu0  ;;  %v5599_v33 = vor.u32 %v4416_v44, %v3754_v21  ;;  %v4459_v44 = vld [vmem:[%s6700_s1 + $0xc4] sm:$0xf]  ;;  %v3922_v21 = vld [vmem:[%s6700_s1 + $0xcc] sm:$0xf0] }
 0x16b   : > { %6871 = vst [vmem:[#allocation75_spill] sm:$0xff] %v5584_v19  ;;  %v1735_v14 = vadd.f32 %v1734_v36, %v1646_v62  ;;  %v3780_v19 = vld [vmem:[%s4849_s17 + $0x218] sm:$0xf] }
 0x16c   : > { %v5586_v4 = vpop.f32.mrf.mxu1  ;;  %6872 = vst [vmem:[#allocation76_spill] sm:$0xff] %v5597_v3 }
 0x16d   : > { %v1824_v7 = vadd.f32 %v1823_v11, %v1735_v14 }
 0x170   : > { %v1647_v12 = vpop.f32.mrf.mxu2 }
 0x171   : > { %v1648_v10 = vadd.f32 %v1647_v12, %v5309_v20  ;;  %v1736_v52 = vpop.f32.mrf.mxu3  ;;  %v2796_v20 = vmax.f32 %v1824_v7, 0.0 }
 0x172   : > { %v1828_v29 = vpop.f32.mrf.mxu0 }
 0x173   : > { %v1737_v6 = vadd.f32 %v1736_v52, %v1648_v10  ;;  %v3772_v52 = vld [vmem:[%s4849_s17 + $0x210] sm:$0xf] }
 0x174   : > { %v5601_v62 = vpop.f32.mrf.mxu1 }
 0x175   : > { %6873 = vst [vmem:[#allocation77_spill] sm:$0xff] %v5601_v62  ;;  %v1826_v11 = vadd.f32 %v1825_v43, %v1737_v6  ;;  %1689 = vmatmul.bf16.gmra.mxu2 %v5595_v61  ;;  %4218 = vmatmul.msk.bf16.gmra.mxu0 %vm1384_vm1, %v5597_v3  ;;  %v3925_v43 = vor.u32 %v4459_v44, %v3922_v21  ;;  %v4423_v6 = vld [vmem:[%s4849_s17 + $0x220] sm:$0xf0]  ;;  %v3774_v3 = vld [vmem:[%s4849_s17 + $0x224] sm:$0xf0] }
 0x176   : > { %1778 = vmatmul.bf16.gmra.mxu3 %v5599_v33  ;;  %v4495_v44 = vld [vmem:[%s6700_s1 + $0x1e4] sm:$0xf]  ;;  %v4162_v21 = vld [vmem:[%s6700_s1 + $0x2ac] sm:$0xf0] }
 0x177   : > { %v2799_v12 = vmax.f32 %v1826_v11, 0.0  ;;  %1956 = vmatmul.bf16.gmra.mxu1 %v4989_v59  ;;  %1984 = vmatpush.bf16.msra.mxu2 %v3925_v43  ;;  %v4421_v11 = vld [vmem:[%s4849_s17 + $0x214] sm:$0xf]  ;;  %v4424_v59 = vld [vmem:[%s4849_s17 + $0x228] sm:$0xf0] }
 0x178   : > { %v1650_v36 = vpop.f32.mrf.mxu2 }
 0x179   : > { %v1651_v14 = vadd.f32 %v1650_v36, %v5329_v15  ;;  %v1739_v7 = vpop.f32.mrf.mxu3  ;;  %v5615_v30 = vpack.c.bf16 %v2799_v12, %v2796_v20  ;;  %v4066_v15 = vld [vmem:[%s6700_s1 + $0x1ec] sm:$0xf0] }
 0x17a   : > { %v1830_v53 = vpop.f32.mrf.mxu0  ;;  %v4069_v12 = vor.u32 %v4495_v44, %v4066_v15 }
 0x17b   : > { %6874 = vst [vmem:[#allocation78_spill] sm:$0xff] %v5615_v30  ;;  %v1740_v27 = vadd.f32 %v1739_v7, %v1651_v14  ;;  %v5638_v14 = vor.u32 %v4423_v6, %v3772_v52  ;;  %v5640_v7 = vor.u32 %v4424_v59, %v3780_v19  ;;  %v4492_v59 = vld [vmem:[%s6700_s1 + $0x1cc] sm:$0xf] }
 0x17c   : > { %v5617_v28 = vpop.f32.mrf.mxu1  ;;  %2069 = vmatpush.bf16.msra.mxu3 %v4069_v12  ;;  %v4516_v19 = vld [vmem:[%s6700_s1 + $0x28c] sm:$0xf]  ;;  %v4489_v12 = vld [vmem:[%s6700_s1 + $0x1b4] sm:$0xf] }
 0x17d   : > { %6875 = vst [vmem:[#allocation79_spill] sm:$0xff] %v5617_v28  ;;  %v1829_v10 = vadd.f32 %v1828_v29, %v1740_v27  ;;  %v4519_v29 = vld [vmem:[%s6700_s1 + $0x2a4] sm:$0xf]  ;;  %v5642_v28 = vor.u32 %v4421_v11, %v3774_v3 }
 0x17e   : > { %6876 = vst [vmem:[#allocation80_spill] sm:$0xff] %v5638_v14  ;;  %v4165_v27 = vor.u32 %v4519_v29, %v4162_v21  ;;  %v4042_v29 = vld [vmem:[%s6700_s1 + $0x1bc] sm:$0xf0]  ;;  %v4513_v21 = vld [vmem:[%s6700_s1 + $0x274] sm:$0xf] }
 0x17f   : > { %6877 = vst [vmem:[#allocation81_spill] sm:$0xff] %v5640_v7  ;;  %v2802_v52 = vmax.f32 %v1829_v10, 0.0 }
 0x180   : > { %v1652_v20 = vpop.f32.mrf.mxu2  ;;  %2158 = vmatpush.bf16.msra.mxu0 %v4165_v27 }
 0x181   : > { %v1653_v36 = vadd.f32 %v1652_v20, %v5344_v42  ;;  %v1741_v43 = vpop.f32.mrf.mxu3  ;;  %v4054_v42 = vld [vmem:[%s6700_s1 + $0x1d4] sm:$0xf0] }
 0x182   : > { %v1833_v30 = vpop.f32.mrf.mxu0  ;;  %v4057_v3 = vor.u32 %v4492_v59, %v4054_v42 }
 0x183   : > { %v1742_v44 = vadd.f32 %v1741_v43, %v1653_v36  ;;  %v4045_v36 = vor.u32 %v4489_v12, %v4042_v29  ;;  %v4138_v43 = vld [vmem:[%s6700_s1 + $0x27c] sm:$0xf0]  ;;  %v4428_v12 = vld [vmem:[%s4849_s17 + $0x248] sm:$0xf0] }
 0x184   : > { %v5644_v15 = vpop.f32.mrf.mxu1  ;;  %2070 = vmatpush.bf16.msra.mxu3 %v4057_v3  ;;  %v4141_v59 = vor.u32 %v4513_v21, %v4138_v43  ;;  %v4030_v3 = vld [vmem:[%s6700_s1 + $0x1a4] sm:$0xf0]  ;;  %v3800_v29 = vld [vmem:[%s4849_s17 + $0x240] sm:$0xf]  ;;  %v4429_v21 = vld [vmem:[%s4849_s17 + $0x250] sm:$0xf0] }
 0x185   : > { %6878 = vst [vmem:[#allocation82_spill] sm:$0xff] %v5644_v15  ;;  %v1831_v62 = vadd.f32 %v1830_v53, %v1742_v44  ;;  %1694 = vmatmul.bf16.gmra.mxu2 %v5638_v14  ;;  %4219 = vmatmul.msk.bf16.gmra.mxu0 %vm1384_vm1, %v5640_v7  ;;  %v4150_v53 = vld [vmem:[%s6700_s1 + $0x294] sm:$0xf0] }
 0x186   : > { %1783 = vmatmul.bf16.gmra.mxu3 %v5642_v28  ;;  %v4153_v11 = vor.u32 %v4516_v19, %v4150_v53  ;;  %v4510_v53 = vld [vmem:[%s6700_s1 + $0x25c] sm:$0xf] }
 0x187   : > { %v2805_v6 = vmax.f32 %v1831_v62, 0.0  ;;  %1961 = vmatmul.bf16.gmra.mxu1 %v5045_v37 }
 0x188   : > { %v1655_v20 = vpop.f32.mrf.mxu2  ;;  %2159 = vmatpush.bf16.msra.mxu0 %v4153_v11  ;;  %2071 = vmatpush.bf16.msra.mxu3 %v4045_v36  ;;  %v3794_v36 = vld [vmem:[%s4849_s17 + $0x24c] sm:$0xf0] }
 0x189   : > { %v1656_v62 = vadd.f32 %v1655_v20, %v5364_v39  ;;  %v1744_v10 = vpop.f32.mrf.mxu3  ;;  %v5676_v27 = vpack.c.bf16 %v2805_v6, %v2802_v52  ;;  %v4486_v39 = vld [vmem:[%s6700_s1 + $0x19c] sm:$0xf]  ;;  %v3792_v6 = vld [vmem:[%s4849_s17 + $0x238] sm:$0xf]  ;;  %v4126_v20 = vld [vmem:[%s6700_s1 + $0x264] sm:$0xf0] }
 0x18a   : > { %v1835_v44 = vpop.f32.mrf.mxu0  ;;  %v4033_v11 = vor.u32 %v4486_v39, %v4030_v3  ;;  %v5708_v3 = vor.u32 %v4428_v12, %v3792_v6 }
 0x18b   : > { %6879 = vst [vmem:[#allocation83_spill] sm:$0xff] %v5676_v27  ;;  %v1745_v42 = vadd.f32 %v1744_v10, %v1656_v62  ;;  %v4129_v62 = vor.u32 %v4510_v53, %v4126_v20  ;;  %v4426_v10 = vld [vmem:[%s4849_s17 + $0x23c] sm:$0xf]  ;;  %v4483_v27 = vld [vmem:[%s6700_s1 + $0x184] sm:$0xf]  ;;  %v5710_v53 = vor.u32 %v4429_v21, %v3800_v29 }
 0x18c   : > { %v5678_v19 = vpop.f32.mrf.mxu1  ;;  %2160 = vmatpush.bf16.msra.mxu0 %v4141_v59  ;;  %2072 = vmatpush.bf16.msra.mxu3 %v4033_v11  ;;  %v4507_v59 = vld [vmem:[%s6700_s1 + $0x244] sm:$0xf]  ;;  %v4114_v20 = vld [vmem:[%s6700_s1 + $0x24c] sm:$0xf0] }
 0x18d   : > { %6880 = vst [vmem:[#allocation84_spill] sm:$0xff] %v5678_v19  ;;  %v1834_v52 = vadd.f32 %v1833_v30, %v1745_v42  ;;  %v4018_v30 = vld [vmem:[%s6700_s1 + $0x18c] sm:$0xf0]  ;;  %v5715_v19 = vor.u32 %v4426_v10, %v3794_v36  ;;  %v4117_v7 = vor.u32 %v4507_v59, %v4114_v20  ;;  %v4433_v59 = vld [vmem:[%s4849_s17 + $0x270] sm:$0xf0] }
 0x18e   : > { %6881 = vst [vmem:[#allocation85_spill] sm:$0xff] %v5710_v53  ;;  %v4021_v11 = vor.u32 %v4483_v27, %v4018_v30  ;;  %v3812_v30 = vld [vmem:[%s4849_s17 + $0x260] sm:$0xf]  ;;  %v3814_v20 = vld [vmem:[%s4849_s17 + $0x274] sm:$0xf0] }
 0x18f   : > { %v2808_v27 = vmax.f32 %v1834_v52, 0.0 }
 0x190   : > { %v1657_v43 = vpop.f32.mrf.mxu2  ;;  %2161 = vmatpush.bf16.msra.mxu0 %v4129_v62  ;;  %2073 = vmatpush.bf16.msra.mxu3 %v4021_v11  ;;  %v4431_v11 = vld [vmem:[%s4849_s17 + $0x264] sm:$0xf] }
 0x191   : > { %v1658_v42 = vadd.f32 %v1657_v43, %v5373_v60  ;;  %v1746_v39 = vpop.f32.mrf.mxu3 }
 0x192   : > { %v1838_v37 = vpop.f32.mrf.mxu0 }
 0x193   : > { %v1747_v15 = vadd.f32 %v1746_v39, %v1658_v42  ;;  %v3820_v42 = vld [vmem:[%s4849_s17 + $0x268] sm:$0xf]  ;;  %v4434_v39 = vld [vmem:[%s4849_s17 + $0x278] sm:$0xf0] }
 0x194   : > { %v5717_v14 = vpop.f32.mrf.mxu1  ;;  %2162 = vmatpush.bf16.msra.mxu0 %v4117_v7 }
 0x195   : > { %v1836_v60 = vadd.f32 %v1835_v44, %v1747_v15  ;;  %1699 = vmatmul.bf16.gmra.mxu2 %v5708_v3  ;;  %4220 = vmatmul.msk.bf16.gmra.mxu0 %vm1384_vm1, %v5710_v53  ;;  %v3916_v15 = vld [vmem:[%s6700_s1 + $0xb0] sm:$0xf]  ;;  %v4458_v44 = vld [vmem:[%s6700_s1 + $0xb8] sm:$0xf0] }
 0x196   : > { %1788 = vmatmul.bf16.gmra.mxu3 %v5715_v19  ;;  %v3917_v7 = vor.u32 %v4458_v44, %v3916_v15 }
 0x197   : > { %v2811_v6 = vmax.f32 %v1836_v60, 0.0  ;;  %1966 = vmatmul.bf16.gmra.mxu1 %v5122_v32  ;;  %v6896_v32 = vld [vmem:[#allocation20_spill] sm:$0xff] }
 0x198   : > { %v1660_v12 = vpop.f32.mrf.mxu2  ;;  %2333 = vmatpush.bf16.msrb.mxu2 %v3917_v7 }
 0x199   : > { %v1661_v52 = vadd.f32 %v1660_v12, %v5393_v26  ;;  %v1749_v29 = vpop.f32.mrf.mxu3  ;;  %v5731_v21 = vpack.c.bf16 %v2811_v6, %v2808_v27  ;;  %v5742_v26 = vor.u32 %v4433_v59, %v3812_v30  ;;  %v5744_v27 = vor.u32 %v4434_v39, %v3820_v42 }
 0x19a   : > { %v1840_v62 = vpop.f32.mrf.mxu0  ;;  %v5746_v12 = vor.u32 %v4431_v11, %v3814_v20 }
 0x19b   : > { %6882 = vst [vmem:[#allocation86_spill] sm:$0xff] %v5731_v21  ;;  %v1750_v10 = vadd.f32 %v1749_v29, %v1661_v52 }
 0x19c   : > { %v5733_v36 = vpop.f32.mrf.mxu1  ;;  %6883 = vst [vmem:[#allocation87_spill] sm:$0xff] %v5744_v27 }
 0x19d   : > { %v1839_v43 = vadd.f32 %v1838_v37, %v1750_v10 }
 0x1a0   : > { %v1662_v60 = vpop.f32.mrf.mxu2 }
 0x1a1   : > { %v1663_v15 = vadd.f32 %v1662_v60, %v5409_v58  ;;  %v1751_v44 = vpop.f32.mrf.mxu3  ;;  %v2814_v58 = vmax.f32 %v1839_v43, 0.0 }
 0x1a2   : > { %v1843_v6 = vpop.f32.mrf.mxu0 }
 0x1a3   : > { %v1752_v7 = vadd.f32 %v1751_v44, %v1663_v15 }
 0x1a4   : > { %v5748_v52 = vpop.f32.mrf.mxu1 }
 0x1a5   : > { %v1841_v37 = vadd.f32 %v1840_v62, %v1752_v7  ;;  %1704 = vmatmul.bf16.gmra.mxu2 %v5742_v26  ;;  %4221 = vmatmul.msk.bf16.gmra.mxu0 %vm1384_vm1, %v5744_v27 }
 0x1a6   : > { %1793 = vmatmul.bf16.gmra.mxu3 %v5746_v12 }
 0x1a7   : > { %v2817_v29 = vmax.f32 %v1841_v37, 0.0  ;;  %1971 = vmatmul.bf16.gmra.mxu1 %v5170_v17 }
 0x1a8   : > { %v1665_v10 = vpop.f32.mrf.mxu2 }
 0x1a9   : > { %v1666_v30 = vadd.f32 %v1665_v10, %v5435_v18  ;;  %v1754_v59 = vpop.f32.mrf.mxu3  ;;  %v5756_v42 = vpack.c.bf16 %v2817_v29, %v2814_v58 }
 0x1aa   : > { %v1845_v39 = vpop.f32.mrf.mxu0 }
 0x1ab   : > { %6884 = vst [vmem:[#allocation88_spill] sm:$0xff] %v5756_v42  ;;  %v1755_v11 = vadd.f32 %v1754_v59, %v1666_v30 }
 0x1ac   : > { %v5758_v62 = vpop.f32.mrf.mxu1 }
 0x1ad   : > { %v1844_v20 = vadd.f32 %v1843_v6, %v1755_v11  ;;  %v4455_v6 = vld [vmem:[%s6700_s1 + $0xa0] sm:$0xf0] }
 0x1af   : > { %v2820_v18 = vmax.f32 %v1844_v20, 0.0 }
 0x1b0   : > { %v1667_v60 = vpop.f32.mrf.mxu2 }
 0x1b1   : > { %v1668_v15 = vadd.f32 %v1667_v60, %v5451_v45  ;;  %v1756_v44 = vpop.f32.mrf.mxu3  ;;  %v3904_v45 = vld [vmem:[%s6700_s1 + $0x98] sm:$0xf] }
 0x1b2   : > { %v1848_v7 = vpop.f32.mrf.mxu0  ;;  %v3905_v10 = vor.u32 %v4455_v6, %v3904_v45 }
 0x1b3   : > { %v1757_v43 = vadd.f32 %v1756_v44, %v1668_v15 }
 0x1b4   : > { %v5761_v37 = vpop.f32.mrf.mxu1  ;;  %2334 = vmatpush.bf16.msrb.mxu2 %v3905_v10 }
 0x1b5   : > { %v1846_v21 = vadd.f32 %v1845_v39, %v1757_v43  ;;  %1985 = vmatmul.bf16.vlgmr.msra.gmra.mxu2 %v4889_v0  ;;  %2163 = vmatmul.bf16.vlgmr.msra.gmra.mxu0 %v5195_v47 }
 0x1b6   : > { %2074 = vmatmul.bf16.vlgmr.msra.gmra.mxu3 %v5191_v34 }
 0x1b7   : > { %v2823_v58 = vmax.f32 %v1846_v21, 0.0  ;;  %4222 = vmatmul.msk.bf16.vlgmr.msra.gmra.mxu1 %vm1384_vm1, %v5193_v40 }
 0x1b8   : > { %v1670_v29 = vpop.f32.mrf.mxu2 }
 0x1b9   : > { %v1671_v30 = vadd.f32 %v1670_v29, %v5212_v2  ;;  %v1759_v59 = vpop.f32.mrf.mxu3  ;;  %v5775_v39 = vpack.c.bf16 %v2823_v58, %v2820_v18 }
 0x1ba   : > { %v1850_v11 = vpop.f32.mrf.mxu0 }
 0x1bb   : > { %6885 = vst [vmem:[#allocation89_spill] sm:$0xff] %v5775_v39  ;;  %v1760_v21 = vadd.f32 %v1759_v59, %v1671_v30 }
 0x1bc   : > { %v5777_v20 = vpop.f32.mrf.mxu1 }
 0x1bd   : > { %v1849_v60 = vadd.f32 %v1848_v7, %v1760_v21 }
 0x1bf   : > { %v2826_v2 = vmax.f32 %v1849_v60, 0.0 }
 0x1c0   : > { %v1672_v15 = vpop.f32.mrf.mxu2 }
 0x1c1   : > { %v1673_v44 = vadd.f32 %v1672_v15, %v5230_v48  ;;  %v1761_v43 = vpop.f32.mrf.mxu3 }
 0x1c2   : > { %v1853_v42 = vpop.f32.mrf.mxu0 }
 0x1c3   : > { %v1762_v40 = vadd.f32 %v1761_v43, %v1673_v44 }
 0x1c4   : > { %v5780_v17 = vpop.f32.mrf.mxu1 }
 0x1c5   : > { %v1851_v45 = vadd.f32 %v1850_v11, %v1762_v40  ;;  %1990 = vmatmul.bf16.gmra.mxu2 %v4915_v16  ;;  %2168 = vmatmul.bf16.gmra.mxu0 %v5228_v41 }
 0x1c6   : > { %2079 = vmatmul.bf16.gmra.mxu3 %v5224_v24 }
 0x1c7   : > { %v2829_v18 = vmax.f32 %v1851_v45, 0.0  ;;  %4223 = vmatmul.msk.bf16.gmra.mxu1 %vm1384_vm1, %v5226_v25 }
 0x1c8   : > { %v1675_v7 = vpop.f32.mrf.mxu2 }
 0x1c9   : > { %v1676_v48 = vadd.f32 %v1675_v7, %v5241_v57  ;;  %v1764_v58 = vpop.f32.mrf.mxu3  ;;  %v5788_v6 = vpack.c.bf16 %v2829_v18, %v2826_v2 }
 0x1ca   : > { %v1855_v29 = vpop.f32.mrf.mxu0 }
 0x1cb   : > { %6886 = vst [vmem:[#allocation90_spill] sm:$0xff] %v5788_v6  ;;  %v1765_v10 = vadd.f32 %v1764_v58, %v1676_v48 }
 0x1cc   : > { %v5790_v40 = vpop.f32.mrf.mxu1 }
 0x1cd   : > { %v1854_v30 = vadd.f32 %v1853_v42, %v1765_v10  ;;  %v4452_v42 = vld [vmem:[%s6700_s1 + $0x88] sm:$0xf0] }
 0x1cf   : > { %v2832_v57 = vmax.f32 %v1854_v30, 0.0 }
 0x1d0   : > { %v1677_v59 = vpop.f32.mrf.mxu2 }
 0x1d1   : > { %v1678_v11 = vadd.f32 %v1677_v59, %v5259_v55  ;;  %v1766_v21 = vpop.f32.mrf.mxu3  ;;  %v3892_v55 = vld [vmem:[%s6700_s1 + $0x80] sm:$0xf] }
 0x1d2   : > { %v1858_v60 = vpop.f32.mrf.mxu0  ;;  %v3893_v18 = vor.u32 %v4452_v42, %v3892_v55 }
 0x1d3   : > { %v1767_v15 = vadd.f32 %v1766_v21, %v1678_v11 }
 0x1d4   : > { %v5793_v44 = vpop.f32.mrf.mxu1  ;;  %2335 = vmatpush.bf16.msrb.mxu2 %v3893_v18  ;;  %v6891_v18 = vld [vmem:[#allocation39_spill] sm:$0xff] }
 0x1d5   : > { %v1856_v43 = vadd.f32 %v1855_v29, %v1767_v15  ;;  %1995 = vmatmul.bf16.gmra.mxu2 %v4941_v31  ;;  %2173 = vmatmul.bf16.gmra.mxu0 %v5257_v54 }
 0x1d6   : > { %2084 = vmatmul.bf16.gmra.mxu3 %v5253_v49 }
 0x1d7   : > { %v2835_v45 = vmax.f32 %v1856_v43, 0.0  ;;  %4224 = vmatmul.msk.bf16.gmra.mxu1 %vm1384_vm1, %v5255_v51 }
 0x1d8   : > { %v1680_v2 = vpop.f32.mrf.mxu2 }
 0x1d9   : > { %v1681_v7 = vadd.f32 %v1680_v2, %v5276_v23  ;;  %v1769_v48 = vpop.f32.mrf.mxu3  ;;  %v5807_v58 = vpack.c.bf16 %v2835_v45, %v2832_v57  ;;  %v6888_v23 = vld [vmem:[#allocation38_spill] sm:$0xff]  ;;  %v6889_v57 = vld [vmem:[#allocation36_spill] sm:$0xff]  ;;  %v6890_v2 = vld [vmem:[#allocation37_spill] sm:$0xff] }
 0x1da   : > { %v1860_v29 = vpop.f32.mrf.mxu0 }
 0x1db   : > { %6887 = vst [vmem:[#allocation91_spill] sm:$0xff] %v5807_v58  ;;  %v1770_v10 = vadd.f32 %v1769_v48, %v1681_v7 }
 0x1dc   : > { %v5809_v30 = vpop.f32.mrf.mxu1 }
 0x1dd   : > { %v1859_v59 = vadd.f32 %v1858_v60, %v1770_v10 }
 0x1df   : > { %v2838_v45 = vmax.f32 %v1859_v59, 0.0 }
 0x1e0   : > { %v1682_v11 = vpop.f32.mrf.mxu2 }
 0x1e1   : > { %v1683_v21 = vadd.f32 %v1682_v11, %v5294_v22  ;;  %v1771_v15 = vpop.f32.mrf.mxu3 }
 0x1e2   : > { %v1863_v43 = vpop.f32.mrf.mxu0 }
 0x1e3   : > { %v1772_v6 = vadd.f32 %v1771_v15, %v1683_v21  ;;  %v6894_v15 = vld [vmem:[#allocation43_spill] sm:$0xff] }
 0x1e4   : > { %v5812_v39 = vpop.f32.mrf.mxu1 }
 0x1e5   : > { %v1861_v55 = vadd.f32 %v1860_v29, %v1772_v6  ;;  %2000 = vmatmul.bf16.gmra.mxu2 %v4967_v46  ;;  %2178 = vmatmul.bf16.gmra.mxu0 %v6888_v23 }
 0x1e6   : > { %2089 = vmatmul.bf16.gmra.mxu3 %v6889_v57 }
 0x1e7   : > { %v2841_v42 = vmax.f32 %v1861_v55, 0.0  ;;  %4225 = vmatmul.msk.bf16.gmra.mxu1 %vm1384_vm1, %v6890_v2 }
 0x1e8   : > { %v1685_v60 = vpop.f32.mrf.mxu2 }
 0x1e9   : > { %v1686_v22 = vadd.f32 %v1685_v60, %v6891_v18  ;;  %v1774_v7 = vpop.f32.mrf.mxu3  ;;  %v5820_v48 = vpack.c.bf16 %v2841_v42, %v2838_v45  ;;  %v6897_v60 = vld [vmem:[#allocation42_spill] sm:$0xff]  ;;  %v6898_v45 = vld [vmem:[#allocation40_spill] sm:$0xff] }
 0x1ea   : > { %v1865_v10 = vpop.f32.mrf.mxu0 }
 0x1eb   : > { %6892 = vst [vmem:[#allocation36_spill] sm:$0xff] %v5820_v48  ;;  %v1775_v11 = vadd.f32 %v1774_v7, %v1686_v22  ;;  %v6899_v22 = vld [vmem:[#allocation41_spill] sm:$0xff] }
 0x1ec   : > { %v5822_v6 = vpop.f32.mrf.mxu1 }
 0x1ed   : > { %6893 = vst [vmem:[#allocation39_spill] sm:$0xff] %v5822_v6  ;;  %v1864_v29 = vadd.f32 %v1863_v43, %v1775_v11  ;;  %v3880_v43 = vld [vmem:[%s6700_s1 + $0x68] sm:$0xf] }
 0x1ef   : > { %v2844_v42 = vmax.f32 %v1864_v29, 0.0 }
 0x1f0   : > { %v1687_v21 = vpop.f32.mrf.mxu2 }
 0x1f1   : > { %v1688_v58 = vadd.f32 %v1687_v21, %v6894_v15  ;;  %v1776_v51 = vpop.f32.mrf.mxu3 }
 0x1f2   : > { %v1868_v59 = vpop.f32.mrf.mxu0 }
 0x1f3   : > { %v1777_v55 = vadd.f32 %v1776_v51, %v1688_v58  ;;  %v4449_v51 = vld [vmem:[%s6700_s1 + $0x70] sm:$0xf0] }
 0x1f4   : > { %v5825_v25 = vpop.f32.mrf.mxu1  ;;  %v3881_v7 = vor.u32 %v4449_v51, %v3880_v43  ;;  %v6904_v51 = vld [vmem:[#allocation24_spill] sm:$0xff] }
 0x1f5   : > { %6895 = vst [vmem:[#allocation43_spill] sm:$0xff] %v5825_v25  ;;  %v1866_v2 = vadd.f32 %v1865_v10, %v1777_v55  ;;  %2005 = vmatmul.bf16.gmra.mxu2 %v6896_v32  ;;  %2183 = vmatmul.bf16.gmra.mxu0 %v6897_v60  ;;  %v6900_v10 = vld [vmem:[#allocation44_spill] sm:$0xff] }
 0x1f6   : > { %2094 = vmatmul.bf16.gmra.mxu3 %v6898_v45  ;;  %2336 = vmatpush.bf16.msrb.mxu2 %v3881_v7  ;;  %v6902_v60 = vld [vmem:[#allocation48_spill] sm:$0xff] }
 0x1f7   : > { %v2847_v18 = vmax.f32 %v1866_v2, 0.0  ;;  %4226 = vmatmul.msk.bf16.gmra.mxu1 %vm1384_vm1, %v6899_v22 }
 0x1f8   : > { %v1690_v58 = vpop.f32.mrf.mxu2 }
 0x1f9   : > { %v1691_v11 = vadd.f32 %v1690_v58, %v6900_v10  ;;  %v1779_v21 = vpop.f32.mrf.mxu3  ;;  %v5839_v15 = vpack.c.bf16 %v2847_v18, %v2844_v42  ;;  %v6905_v58 = vld [vmem:[#allocation47_spill] sm:$0xff]  ;;  %v6906_v42 = vld [vmem:[#allocation45_spill] sm:$0xff]  ;;  %v6907_v10 = vld [vmem:[#allocation46_spill] sm:$0xff] }
 0x1fa   : > { %v1870_v29 = vpop.f32.mrf.mxu0 }
 0x1fb   : > { %6901 = vst [vmem:[#allocation44_spill] sm:$0xff] %v5839_v15  ;;  %v1780_v2 = vadd.f32 %v1779_v21, %v1691_v11  ;;  %v6908_v11 = vld [vmem:[#allocation49_spill] sm:$0xff] }
 0x1fc   : > { %v5841_v55 = vpop.f32.mrf.mxu1  ;;  %v6910_v15 = vld [vmem:[#allocation53_spill] sm:$0xff] }
 0x1fd   : > { %v1869_v48 = vadd.f32 %v1868_v59, %v1780_v2 }
 0x1ff   : > { %v2850_v18 = vmax.f32 %v1869_v48, 0.0 }
 0x200   : > { %v1692_v22 = vpop.f32.mrf.mxu2 }
 0x201   : > { %v1693_v25 = vadd.f32 %v1692_v22, %v6902_v60  ;;  %v1781_v32 = vpop.f32.mrf.mxu3 }
 0x202   : > { %v1873_v45 = vpop.f32.mrf.mxu0 }
 0x203   : > { %v1782_v6 = vadd.f32 %v1781_v32, %v1693_v25 }
 0x204   : > { %v5844_v23 = vpop.f32.mrf.mxu1 }
 0x205   : > { %6903 = vst [vmem:[#allocation48_spill] sm:$0xff] %v5844_v23  ;;  %v1871_v43 = vadd.f32 %v1870_v29, %v1782_v6  ;;  %2010 = vmatmul.bf16.gmra.mxu2 %v6904_v51  ;;  %2188 = vmatmul.bf16.gmra.mxu0 %v6905_v58 }
 0x206   : > { %2099 = vmatmul.bf16.gmra.mxu3 %v6906_v42  ;;  %v6912_v42 = vld [vmem:[#allocation28_spill] sm:$0xff] }
 0x207   : > { %v2853_v7 = vmax.f32 %v1871_v43, 0.0  ;;  %4227 = vmatmul.msk.bf16.gmra.mxu1 %vm1384_vm1, %v6907_v10 }
 0x208   : > { %v1695_v59 = vpop.f32.mrf.mxu2 }
 0x209   : > { %v1696_v60 = vadd.f32 %v1695_v59, %v6908_v11  ;;  %v1784_v22 = vpop.f32.mrf.mxu3  ;;  %v5852_v21 = vpack.c.bf16 %v2853_v7, %v2850_v18  ;;  %v6913_v59 = vld [vmem:[#allocation52_spill] sm:$0xff]  ;;  %v6914_v18 = vld [vmem:[#allocation50_spill] sm:$0xff] }
 0x20a   : > { %v1875_v32 = vpop.f32.mrf.mxu0 }
 0x20b   : > { %6909 = vst [vmem:[#allocation49_spill] sm:$0xff] %v5852_v21  ;;  %v1785_v25 = vadd.f32 %v1784_v22, %v1696_v60  ;;  %v6915_v60 = vld [vmem:[#allocation51_spill] sm:$0xff]  ;;  %v6916_v22 = vld [vmem:[#allocation54_spill] sm:$0xff]  ;;  %v4482_v21 = vld [vmem:[%s6700_s1 + $0x178] sm:$0xf0] }
 0x20c   : > { %v5854_v6 = vpop.f32.mrf.mxu1 }
 0x20d   : > { %v1874_v29 = vadd.f32 %v1873_v45, %v1785_v25  ;;  %v3868_v45 = vld [vmem:[%s6700_s1 + $0x50] sm:$0xf] }
 0x20f   : > { %v2856_v7 = vmax.f32 %v1874_v29, 0.0 }
 0x210   : > { %v1697_v2 = vpop.f32.mrf.mxu2 }
 0x211   : > { %v1698_v58 = vadd.f32 %v1697_v2, %v6910_v15  ;;  %v1786_v23 = vpop.f32.mrf.mxu3 }
 0x212   : > { %v1878_v48 = vpop.f32.mrf.mxu0 }
 0x213   : > { %v1787_v43 = vadd.f32 %v1786_v23, %v1698_v58  ;;  %v4446_v23 = vld [vmem:[%s6700_s1 + $0x58] sm:$0xf0] }
 0x214   : > { %v5857_v51 = vpop.f32.mrf.mxu1  ;;  %v3869_v58 = vor.u32 %v4446_v23, %v3868_v45 }
 0x215   : > { %6911 = vst [vmem:[#allocation53_spill] sm:$0xff] %v5857_v51  ;;  %v1876_v10 = vadd.f32 %v1875_v32, %v1787_v43  ;;  %2015 = vmatmul.bf16.gmra.mxu2 %v6912_v42  ;;  %2193 = vmatmul.bf16.gmra.mxu0 %v6913_v59  ;;  %v4012_v43 = vld [vmem:[%s6700_s1 + $0x170] sm:$0xf]  ;;  %v4000_v51 = vld [vmem:[%s6700_s1 + $0x158] sm:$0xf] }
 0x216   : > { %2104 = vmatmul.bf16.gmra.mxu3 %v6914_v18  ;;  %2337 = vmatpush.bf16.msrb.mxu2 %v3869_v58  ;;  %v4013_v59 = vor.u32 %v4482_v21, %v4012_v43  ;;  %v4108_v21 = vld [vmem:[%s6700_s1 + $0x230] sm:$0xf]  ;;  %v6938_v18 = vld [vmem:[#allocation13_spill] sm:$0xff] }
 0x217   : > { %v2859_v11 = vmax.f32 %v1876_v10, 0.0  ;;  %4228 = vmatmul.msk.bf16.gmra.mxu1 %vm1384_vm1, %v6915_v60 }
 0x218   : > { %v1700_v15 = vpop.f32.mrf.mxu2  ;;  %2422 = vmatpush.bf16.msrb.mxu3 %v4013_v59 }
 0x219   : > { %v1701_v32 = vadd.f32 %v1700_v15, %v6916_v22  ;;  %v1789_v25 = vpop.f32.mrf.mxu3  ;;  %v5871_v2 = vpack.c.bf16 %v2859_v11, %v2856_v7 }
 0x21a   : > { %v1880_v29 = vpop.f32.mrf.mxu0 }
 0x21b   : > { %6917 = vst [vmem:[#allocation54_spill] sm:$0xff] %v5871_v2  ;;  %v1790_v10 = vadd.f32 %v1789_v25, %v1701_v32  ;;  %v6920_v25 = vld [vmem:[#allocation32_spill] sm:$0xff]  ;;  %v6921_v2 = vld [vmem:[#allocation55_spill] sm:$0xff] }
 0x21c   : > { %v5879_v60 = vpop.f32.mrf.mxu1 }
 0x21d   : > { %6918 = vst [vmem:[#allocation92_spill] sm:$0xff] %v5879_v60  ;;  %v1879_v45 = vadd.f32 %v1878_v48, %v1790_v10  ;;  %v6922_v10 = vld [vmem:[#allocation56_spill] sm:$0xff]  ;;  %v6927_v60 = vld [vmem:[#allocation7_spill] sm:$0xff] }
 0x21f   : > { %v2862_v48 = vmax.f32 %v1879_v45, 0.0  ;;  %v4530_v45 = vld [vmem:[%s6700_s1 + $0x2f8] sm:$0xf0] }
 0x220   : > { %v1702_v23 = vpop.f32.mrf.mxu2 }
 0x221   : > { %v1703_v7 = vadd.f32 %v1702_v23, %v5428_v56  ;;  %v1791_v11 = vpop.f32.mrf.mxu3  ;;  %v4506_v56 = vld [vmem:[%s6700_s1 + $0x238] sm:$0xf0]  ;;  %v6923_v23 = vld [vmem:[#allocation58_spill] sm:$0xff] }
 0x222   : > { %v1883_v15 = vpop.f32.mrf.mxu0 }
 0x223   : > { %v1792_v58 = vadd.f32 %v1791_v11, %v1703_v7 }
 0x224   : > { %v5882_v22 = vpop.f32.mrf.mxu1 }
 0x225   : > { %6919 = vst [vmem:[#allocation93_spill] sm:$0xff] %v5882_v22  ;;  %v1881_v32 = vadd.f32 %v1880_v29, %v1792_v58  ;;  %2020 = vmatmul.bf16.gmra.mxu2 %v6920_v25  ;;  %2198 = vmatmul.bf16.gmra.mxu0 %v5426_v5  ;;  %v4109_v29 = vor.u32 %v4506_v56, %v4108_v21  ;;  %v4204_v25 = vld [vmem:[%s6700_s1 + $0x2f0] sm:$0xf] }
 0x226   : > { %2109 = vmatmul.bf16.gmra.mxu3 %v6921_v2  ;;  %v4205_v21 = vor.u32 %v4530_v45, %v4204_v25  ;;  %v4443_v25 = vld [vmem:[%s6700_s1 + $0x40] sm:$0xf0]  ;;  %v6930_v45 = vld [vmem:[#allocation63_spill] sm:$0xff] }
 0x227   : > { %v2865_v59 = vmax.f32 %v1881_v32, 0.0  ;;  %4229 = vmatmul.msk.bf16.gmra.mxu1 %vm1384_vm1, %v6922_v10  ;;  %2511 = vmatpush.bf16.msrb.mxu0 %v4109_v29 }
 0x228   : > { %v1705_v43 = vpop.f32.mrf.mxu2  ;;  %2600 = vmatpush.bf16.msrb.mxu1 %v4205_v21 }
 0x229   : > { %v1706_v7 = vadd.f32 %v1705_v43, %v6923_v23  ;;  %v1794_v11 = vpop.f32.mrf.mxu3  ;;  %v5896_v58 = vpack.c.bf16 %v2865_v59, %v2862_v48  ;;  %v6926_v23 = vld [vmem:[#allocation62_spill] sm:$0xff] }
 0x22a   : > { %v1885_v5 = vpop.f32.mrf.mxu0 }
 0x22b   : > { %6924 = vst [vmem:[#allocation58_spill] sm:$0xff] %v5896_v58  ;;  %v1795_v22 = vadd.f32 %v1794_v11, %v1706_v7  ;;  %v4615_v7 = vld [vmem:[%s6701_s2] sm:$0x7] }
 0x22c   : > { %v5904_v32 = vpop.f32.mrf.mxu1  ;;  %v5910_v11 = vperm.slane %v4615_v7, 1 }
 0x22d   : > { %6925 = vst [vmem:[#allocation94_spill] sm:$0xff] %v5904_v32  ;;  %v1884_v56 = vadd.f32 %v1883_v15, %v1795_v22  ;;  %v6928_v32 = vld [vmem:[#allocation61_spill] sm:$0xff]  ;;  %v6929_v15 = vld [vmem:[#allocation59_spill] sm:$0xff]  ;;  %v3856_v22 = vld [vmem:[%s6700_s1 + $0x38] sm:$0xf] }
 0x22e   : > { %v1898_v21 = vadd.f32 %v6930_v45, %v5910_v11 }
 0x230   : > { %v1707_v43 = vpop.f32.mrf.mxu2 }
 0x231   : > { %v1708_v29 = vadd.f32 %v1707_v43, %v6926_v23  ;;  %v1796_v48 = vpop.f32.mrf.mxu3  ;;  %v2868_v43 = vmax.f32 %v1884_v56, 0.0 }
 0x232   : > { %v2164_v59 = vpop.f32.mrf.mxu0 }
 0x233   : > { %v1797_v58 = vadd.f32 %v1796_v48, %v1708_v29 }
 0x234   : > { %v2253_v10 = vpop.f32.mrf.mxu1 }
 0x235   : > { %v1886_v2 = vadd.f32 %v1885_v5, %v1797_v58  ;;  %2025 = vmatmul.bf16.gmra.mxu2 %v6927_v60  ;;  %2203 = vmatmul.bf16.gmra.mxu0 %v6928_v32  ;;  %v6931_v5 = vld [vmem:[#allocation60_spill] sm:$0xff]  ;;  %v3857_v58 = vor.u32 %v4443_v25, %v3856_v22 }
 0x236   : > { %2114 = vmatmul.bf16.gmra.mxu3 %v6929_v15  ;;  %v6933_v22 = vld [vmem:[#allocation64_spill] sm:$0xff] }
 0x237   : > { %v2871_v23 = vmax.f32 %v1886_v2, 0.0  ;;  %4230 = vmatmul.msk.bf16.gmra.mxu1 %vm1384_vm1, %v6931_v5  ;;  %2338 = vmatpush.bf16.msrb.mxu2 %v3857_v58  ;;  %v4479_v2 = vld [vmem:[%s6700_s1 + $0x160] sm:$0xf0]  ;;  %v1900_v25 = vadd.f32 %v6933_v22, %v5910_v11 }
 0x238   : > { %v1986_v29 = vpop.f32.mrf.mxu2  ;;  %v4001_v45 = vor.u32 %v4479_v2, %v4000_v51  ;;  %v4096_v51 = vld [vmem:[%s6700_s1 + $0x218] sm:$0xf]  ;;  %v6936_v2 = vld [vmem:[#allocation66_spill] sm:$0xff] }
 0x239   : > { %v1987_v48 = vadd.f32 %v1986_v29, %v1898_v21  ;;  %v2075_v7 = vpop.f32.mrf.mxu3  ;;  %v5925_v32 = vpack.c.bf16 %v2871_v23, %v2868_v43 }
 0x23a   : > { %v2166_v60 = vpop.f32.mrf.mxu0  ;;  %2423 = vmatpush.bf16.msrb.mxu3 %v4001_v45 }
 0x23b   : > { %6932 = vst [vmem:[#allocation62_spill] sm:$0xff] %v5925_v32  ;;  %v2076_v15 = vadd.f32 %v2075_v7, %v1987_v48  ;;  %v6934_v32 = vld [vmem:[#allocation10_spill] sm:$0xff] }
 0x23c   : > { %v2255_v56 = vpop.f32.mrf.mxu1 }
 0x23d   : > { %v2165_v5 = vadd.f32 %v2164_v59, %v2076_v15  ;;  %v6935_v59 = vld [vmem:[#allocation68_spill] sm:$0xff] }
 0x23e   : > { %v1903_v15 = vadd.f32 %v6935_v59, %v5910_v11 }
 0x23f   : > { %v2254_v21 = vadd.f32 %v2253_v10, %v2165_v5  ;;  %v4503_v10 = vld [vmem:[%s6700_s1 + $0x220] sm:$0xf0] }
 0x240   : > { %v1988_v43 = vpop.f32.mrf.mxu2  ;;  %v4097_v45 = vor.u32 %v4503_v10, %v4096_v51  ;;  %v1905_v10 = vadd.f32 %v5518_v8, %v5910_v11  ;;  %v4440_v8 = vld [vmem:[%s6700_s1 + $0x28] sm:$0xf0] }
 0x241   : > { %v1989_v23 = vadd.f32 %v1988_v43, %v1900_v25  ;;  %v2077_v58 = vpop.f32.mrf.mxu3 }
 0x242   : > { %v2169_v29 = vpop.f32.mrf.mxu0  ;;  %2512 = vmatpush.bf16.msrb.mxu0 %v4097_v45 }
 0x243   : > { %v2078_v48 = vadd.f32 %v2077_v58, %v1989_v23  ;;  %v4192_v58 = vld [vmem:[%s6700_s1 + $0x2d8] sm:$0xf] }
 0x244   : > { %v2258_v7 = vpop.f32.mrf.mxu1 }
 0x245   : > { %2030 = vmatmul.bf16.gmra.mxu2 %v6934_v32  ;;  %2208 = vmatmul.bf16.gmra.mxu0 %v5500_v63  ;;  %v2167_v42 = vadd.f32 %v2166_v60, %v2078_v48  ;;  %v2779_v60 = vmax.f32 %v2254_v21, 0.0  ;;  %v4527_v48 = vld [vmem:[%s6700_s1 + $0x2e0] sm:$0xf0] }
 0x246   : > { %2119 = vmatmul.bf16.gmra.mxu3 %v5496_v9 }
 0x247   : > { %v2256_v5 = vadd.f32 %v2255_v56, %v2167_v42  ;;  %4231 = vmatmul.msk.bf16.gmra.mxu1 %vm1384_vm1, %v6936_v2  ;;  %v4193_v42 = vor.u32 %v4527_v48, %v4192_v58 }
 0x248   : > { %v1991_v22 = vpop.f32.mrf.mxu2 }
 0x249   : > { %v2782_v25 = vmax.f32 %v2256_v5, 0.0  ;;  %v1992_v43 = vadd.f32 %v1991_v22, %v1903_v15  ;;  %v2080_v23 = vpop.f32.mrf.mxu3  ;;  %2601 = vmatpush.bf16.msrb.mxu1 %v4193_v42 }
 0x24a   : > { %v2171_v59 = vpop.f32.mrf.mxu0 }
 0x24b   : > { %v5954_v56 = vpack.c.bf16 %v2782_v25, %v2779_v60  ;;  %v2081_v2 = vadd.f32 %v2080_v23, %v1992_v43  ;;  %v6939_v25 = vld [vmem:[#allocation70_spill] sm:$0xff] }
 0x24c   : > { %v2260_v51 = vpop.f32.mrf.mxu1 }
 0x24d   : > { %6937 = vst [vmem:[#allocation63_spill] sm:$0xff] %v5954_v56  ;;  %v2170_v21 = vadd.f32 %v2169_v29, %v2081_v2  ;;  %v3844_v29 = vld [vmem:[%s6700_s1 + $0x20] sm:$0xf]  ;;  %v6946_v56 = vld [vmem:[#allocation19_spill] sm:$0xff] }
 0x24e   : > { %v3845_v43 = vor.u32 %v4440_v8, %v3844_v29 }
 0x24f   : > { %v2259_v15 = vadd.f32 %v2258_v7, %v2170_v21  ;;  %v1908_v7 = vadd.f32 %v5533_v1, %v5910_v11  ;;  %v4476_v1 = vld [vmem:[%s6700_s1 + $0x148] sm:$0xf0] }
 0x250   : > { %v1993_v5 = vpop.f32.mrf.mxu2  ;;  %2339 = vmatpush.bf16.msrb.mxu2 %v3845_v43 }
 0x251   : > { %v1994_v45 = vadd.f32 %v1993_v5, %v1905_v10  ;;  %v2082_v22 = vpop.f32.mrf.mxu3  ;;  %v3988_v10 = vld [vmem:[%s6700_s1 + $0x140] sm:$0xf] }
 0x252   : > { %v2174_v63 = vpop.f32.mrf.mxu0 }
 0x253   : > { %v2083_v32 = vadd.f32 %v2082_v22, %v1994_v45  ;;  %v3989_v45 = vor.u32 %v4476_v1, %v3988_v10  ;;  %v6944_v1 = vld [vmem:[#allocation73_spill] sm:$0xff] }
 0x254   : > { %v2263_v9 = vpop.f32.mrf.mxu1 }
 0x255   : > { %2035 = vmatmul.bf16.gmra.mxu2 %v6938_v18  ;;  %2213 = vmatmul.bf16.gmra.mxu0 %v5531_v35  ;;  %v2172_v60 = vadd.f32 %v2171_v59, %v2083_v32  ;;  %v2785_v32 = vmax.f32 %v2259_v15, 0.0  ;;  %v6941_v15 = vld [vmem:[#allocation72_spill] sm:$0xff] }
 0x256   : > { %2124 = vmatmul.bf16.gmra.mxu3 %v5527_v38 }
 0x257   : > { %v2261_v2 = vadd.f32 %v2260_v51, %v2172_v60  ;;  %4232 = vmatmul.msk.bf16.gmra.mxu1 %vm1384_vm1, %v6939_v25  ;;  %2424 = vmatpush.bf16.msrb.mxu3 %v3989_v45  ;;  %v1910_v60 = vadd.f32 %v6941_v15, %v5910_v11 }
 0x258   : > { %v1996_v23 = vpop.f32.mrf.mxu2 }
 0x259   : > { %v2788_v58 = vmax.f32 %v2261_v2, 0.0  ;;  %v1997_v48 = vadd.f32 %v1996_v23, %v1908_v7  ;;  %v2085_v59 = vpop.f32.mrf.mxu3 }
 0x25a   : > { %v2176_v42 = vpop.f32.mrf.mxu0 }
 0x25b   : > { %v2086_v21 = vadd.f32 %v2085_v59, %v1997_v48  ;;  %v5977_v51 = vpack.c.bf16 %v2788_v58, %v2785_v32  ;;  %v6942_v59 = vld [vmem:[#allocation16_spill] sm:$0xff]  ;;  %v6943_v58 = vld [vmem:[#allocation74_spill] sm:$0xff] }
 0x25c   : > { %v2265_v5 = vpop.f32.mrf.mxu1 }
 0x25d   : > { %6940 = vst [vmem:[#allocation64_spill] sm:$0xff] %v5977_v51  ;;  %v2175_v22 = vadd.f32 %v2174_v63, %v2086_v21  ;;  %v4084_v63 = vld [vmem:[%s6700_s1 + $0x200] sm:$0xf]  ;;  %v1913_v21 = vadd.f32 %v6943_v58, %v5910_v11 }
 0x25f   : > { %v2264_v29 = vadd.f32 %v2263_v9, %v2175_v22  ;;  %v4500_v9 = vld [vmem:[%s6700_s1 + $0x208] sm:$0xf0] }
 0x260   : > { %v1998_v8 = vpop.f32.mrf.mxu2  ;;  %v4085_v45 = vor.u32 %v4500_v9, %v4084_v63  ;;  %v1915_v9 = vadd.f32 %v5586_v4, %v5910_v11  ;;  %v4437_v4 = vld [vmem:[%s6700_s1 + $0x10] sm:$0xf0] }
 0x261   : > { %v1999_v7 = vadd.f32 %v1998_v8, %v1910_v60  ;;  %v2087_v2 = vpop.f32.mrf.mxu3 }
 0x262   : > { %v2179_v43 = vpop.f32.mrf.mxu0  ;;  %2513 = vmatpush.bf16.msrb.mxu0 %v4085_v45 }
 0x263   : > { %v2088_v23 = vadd.f32 %v2087_v2, %v1999_v7  ;;  %v4180_v7 = vld [vmem:[%s6700_s1 + $0x2c0] sm:$0xf]  ;;  %v4524_v2 = vld [vmem:[%s6700_s1 + $0x2c8] sm:$0xf0] }
 0x264   : > { %v2268_v48 = vpop.f32.mrf.mxu1 }
 0x265   : > { %2040 = vmatmul.bf16.gmra.mxu2 %v6942_v59  ;;  %2218 = vmatmul.bf16.gmra.mxu0 %v5568_v50  ;;  %v2177_v32 = vadd.f32 %v2176_v42, %v2088_v23  ;;  %v2791_v42 = vmax.f32 %v2264_v29, 0.0 }
 0x266   : > { %2129 = vmatmul.bf16.gmra.mxu3 %v5564_v13 }
 0x267   : > { %v2266_v10 = vadd.f32 %v2265_v5, %v2177_v32  ;;  %4233 = vmatmul.msk.bf16.gmra.mxu1 %vm1384_vm1, %v6944_v1  ;;  %v4181_v5 = vor.u32 %v4524_v2, %v4180_v7 }
 0x268   : > { %v2001_v22 = vpop.f32.mrf.mxu2 }
 0x269   : > { %v2794_v15 = vmax.f32 %v2266_v10, 0.0  ;;  %v2002_v60 = vadd.f32 %v2001_v22, %v1913_v21  ;;  %v2090_v8 = vpop.f32.mrf.mxu3  ;;  %2602 = vmatpush.bf16.msrb.mxu1 %v4181_v5 }
 0x26a   : > { %v2181_v23 = vpop.f32.mrf.mxu0 }
 0x26b   : > { %v2091_v32 = vadd.f32 %v2090_v8, %v2002_v60  ;;  %v6000_v58 = vpack.c.bf16 %v2794_v15, %v2791_v42  ;;  %v6948_v8 = vld [vmem:[#allocation76_spill] sm:$0xff] }
 0x26c   : > { %v2270_v63 = vpop.f32.mrf.mxu1 }
 0x26d   : > { %6945 = vst [vmem:[#allocation68_spill] sm:$0xff] %v6000_v58  ;;  %v2180_v29 = vadd.f32 %v2179_v43, %v2091_v32  ;;  %v3832_v43 = vld [vmem:[%s6700_s1 + $0x8] sm:$0xf]  ;;  %v4132_v58 = vld [vmem:[%s6700_s1 + $0x260] sm:$0xf] }
 0x26e   : > { %v3833_v7 = vor.u32 %v4437_v4, %v3832_v43 }
 0x26f   : > { %v2269_v21 = vadd.f32 %v2268_v48, %v2180_v29  ;;  %v6947_v48 = vld [vmem:[#allocation77_spill] sm:$0xff] }
 0x270   : > { %v2003_v10 = vpop.f32.mrf.mxu2  ;;  %v1918_v42 = vadd.f32 %v6947_v48, %v5910_v11  ;;  %2340 = vmatpush.bf16.msrb.mxu2 %v3833_v7  ;;  %v4497_v7 = vld [vmem:[%s6700_s1 + $0x1f0] sm:$0xf0] }
 0x271   : > { %v2004_v45 = vadd.f32 %v2003_v10, %v1915_v9  ;;  %v2092_v22 = vpop.f32.mrf.mxu3  ;;  %v3976_v10 = vld [vmem:[%s6700_s1 + $0x128] sm:$0xf] }
 0x272   : > { %v2184_v1 = vpop.f32.mrf.mxu0 }
 0x273   : > { %v2093_v25 = vadd.f32 %v2092_v22, %v2004_v45 }
 0x274   : > { %v2273_v51 = vpop.f32.mrf.mxu1 }
 0x275   : > { %2045 = vmatmul.bf16.gmra.mxu2 %v6946_v56  ;;  %2223 = vmatmul.bf16.gmra.mxu0 %v5599_v33  ;;  %v2182_v60 = vadd.f32 %v2181_v23, %v2093_v25  ;;  %v2797_v25 = vmax.f32 %v2269_v21, 0.0  ;;  %v6950_v21 = vld [vmem:[#allocation79_spill] sm:$0xff] }
 0x276   : > { %2134 = vmatmul.bf16.gmra.mxu3 %v5595_v61  ;;  %v1920_v4 = vadd.f32 %v6950_v21, %v5910_v11  ;;  %v4494_v21 = vld [vmem:[%s6700_s1 + $0x1d8] sm:$0xf0] }
 0x277   : > { %v2271_v15 = vadd.f32 %v2270_v63, %v2182_v60  ;;  %4234 = vmatmul.msk.bf16.gmra.mxu1 %vm1384_vm1, %v6948_v8  ;;  %v4473_v63 = vld [vmem:[%s6700_s1 + $0x130] sm:$0xf0]  ;;  %v4491_v8 = vld [vmem:[%s6700_s1 + $0x1c0] sm:$0xf0] }
 0x278   : > { %v2006_v2 = vpop.f32.mrf.mxu2  ;;  %v3977_v60 = vor.u32 %v4473_v63, %v3976_v10  ;;  %v4060_v10 = vld [vmem:[%s6700_s1 + $0x1d0] sm:$0xf] }
 0x279   : > { %v2800_v23 = vmax.f32 %v2271_v15, 0.0  ;;  %v2007_v5 = vadd.f32 %v2006_v2, %v1918_v42  ;;  %v2095_v32 = vpop.f32.mrf.mxu3  ;;  %v4072_v15 = vld [vmem:[%s6700_s1 + $0x1e8] sm:$0xf]  ;;  %v6951_v63 = vld [vmem:[#allocation23_spill] sm:$0xff] }
 0x27a   : > { %v2186_v29 = vpop.f32.mrf.mxu0  ;;  %2425 = vmatpush.bf16.msrb.mxu3 %v3977_v60 }
 0x27b   : > { %v2096_v9 = vadd.f32 %v2095_v32, %v2007_v5  ;;  %v6023_v45 = vpack.c.bf16 %v2800_v23, %v2797_v25  ;;  %v4073_v23 = vor.u32 %v4497_v7, %v4072_v15  ;;  %v6953_v15 = vld [vmem:[#allocation82_spill] sm:$0xff] }
 0x27c   : > { %v2275_v22 = vpop.f32.mrf.mxu1  ;;  %v1923_v7 = vadd.f32 %v6953_v15, %v5910_v11 }
 0x27d   : > { %6949 = vst [vmem:[#allocation13_spill] sm:$0xff] %v6023_v45  ;;  %v2185_v43 = vadd.f32 %v2184_v1, %v2096_v9  ;;  %2514 = vmatpush.bf16.msrb.mxu0 %v4073_v23  ;;  %v4470_v9 = vld [vmem:[%s6700_s1 + $0x118] sm:$0xf0] }
 0x27f   : > { %v2274_v48 = vadd.f32 %v2273_v51, %v2185_v43  ;;  %v3964_v51 = vld [vmem:[%s6700_s1 + $0x110] sm:$0xf] }
 0x280   : > { %v2008_v42 = vpop.f32.mrf.mxu2  ;;  %v3965_v43 = vor.u32 %v4470_v9, %v3964_v51  ;;  %v4048_v51 = vld [vmem:[%s6700_s1 + $0x1b8] sm:$0xf] }
 0x281   : > { %v2009_v2 = vadd.f32 %v2008_v42, %v1920_v4  ;;  %v2097_v25 = vpop.f32.mrf.mxu3  ;;  %v6952_v4 = vld [vmem:[#allocation80_spill] sm:$0xff]  ;;  %v4061_v42 = vor.u32 %v4494_v21, %v4060_v10  ;;  %v2803_v9 = vmax.f32 %v2274_v48, 0.0  ;;  %v4521_v21 = vld [vmem:[%s6700_s1 + $0x2b0] sm:$0xf0]  ;;  %v4049_v48 = vor.u32 %v4491_v8, %v4048_v51  ;;  %v4488_v8 = vld [vmem:[%s6700_s1 + $0x1a8] sm:$0xf0] }
 0x282   : > { %v2189_v5 = vpop.f32.mrf.mxu0  ;;  %2426 = vmatpush.bf16.msrb.mxu3 %v3965_v43  ;;  %v4168_v43 = vld [vmem:[%s6700_s1 + $0x2a8] sm:$0xf]  ;;  %v6956_v51 = vld [vmem:[#allocation84_spill] sm:$0xff] }
 0x283   : > { %v2098_v32 = vadd.f32 %v2097_v25, %v2009_v2  ;;  %v6954_v25 = vld [vmem:[#allocation81_spill] sm:$0xff]  ;;  %2515 = vmatpush.bf16.msrb.mxu0 %v4061_v42 }
 0x284   : > { %v2278_v1 = vpop.f32.mrf.mxu1 }
 0x285   : > { %2050 = vmatmul.bf16.gmra.mxu2 %v6951_v63  ;;  %2228 = vmatmul.bf16.gmra.mxu0 %v5642_v28  ;;  %v2187_v60 = vadd.f32 %v2186_v29, %v2098_v32  ;;  %v3952_v29 = vld [vmem:[%s6700_s1 + $0xf8] sm:$0xf]  ;;  %v4467_v32 = vld [vmem:[%s6700_s1 + $0x100] sm:$0xf0] }
 0x286   : > { %2139 = vmatmul.bf16.gmra.mxu3 %v6952_v4  ;;  %v3953_v42 = vor.u32 %v4467_v32, %v3952_v29  ;;  %v4464_v29 = vld [vmem:[%s6700_s1 + $0xe8] sm:$0xf0]  ;;  %v4036_v32 = vld [vmem:[%s6700_s1 + $0x1a0] sm:$0xf] }
 0x287   : > { %v2276_v2 = vadd.f32 %v2275_v22, %v2187_v60  ;;  %4235 = vmatmul.msk.bf16.gmra.mxu1 %vm1384_vm1, %v6954_v25  ;;  %v4169_v25 = vor.u32 %v4521_v21, %v4168_v43  ;;  %2516 = vmatpush.bf16.msrb.mxu0 %v4049_v48  ;;  %v3928_v21 = vld [vmem:[%s6700_s1 + $0xc8] sm:$0xf] }
 0x288   : > { %v2011_v23 = vpop.f32.mrf.mxu2  ;;  %2427 = vmatpush.bf16.msrb.mxu3 %v3953_v42 }
 0x289   : > { %v2806_v22 = vmax.f32 %v2276_v2, 0.0  ;;  %v2012_v10 = vadd.f32 %v2011_v23, %v1923_v7  ;;  %v2100_v60 = vpop.f32.mrf.mxu3  ;;  %2603 = vmatpush.bf16.msrb.mxu1 %v4169_v25  ;;  %v3940_v23 = vld [vmem:[%s6700_s1 + $0xe0] sm:$0xf]  ;;  %v4037_v25 = vor.u32 %v4488_v8, %v4036_v32 }
 0x28a   : > { %v2191_v15 = vpop.f32.mrf.mxu0 }
 0x28b   : > { %v2101_v45 = vadd.f32 %v2100_v60, %v2012_v10  ;;  %v6070_v7 = vpack.c.bf16 %v2806_v22, %v2803_v9  ;;  %v3941_v10 = vor.u32 %v4464_v29, %v3940_v23  ;;  %v1925_v9 = vadd.f32 %v6956_v51, %v5910_v11  ;;  %2517 = vmatpush.bf16.msrb.mxu0 %v4037_v25  ;;  %v4156_v29 = vld [vmem:[%s6700_s1 + $0x290] sm:$0xf] }
 0x28c   : > { %v2280_v2 = vpop.f32.mrf.mxu1  ;;  %v6957_v25 = vld [vmem:[#allocation27_spill] sm:$0xff] }
 0x28d   : > { %6955 = vst [vmem:[#allocation72_spill] sm:$0xff] %v6070_v7  ;;  %v2190_v43 = vadd.f32 %v2189_v5, %v2101_v45  ;;  %2428 = vmatpush.bf16.msrb.mxu3 %v3941_v10  ;;  %v4461_v45 = vld [vmem:[%s6700_s1 + $0xd0] sm:$0xf0]  ;;  %v4024_v5 = vld [vmem:[%s6700_s1 + $0x188] sm:$0xf] }
 0x28e   : > { %v3929_v23 = vor.u32 %v4461_v45, %v3928_v21  ;;  %v4518_v10 = vld [vmem:[%s6700_s1 + $0x298] sm:$0xf0]  ;;  %v4144_v21 = vld [vmem:[%s6700_s1 + $0x278] sm:$0xf]  ;;  %v4515_v45 = vld [vmem:[%s6700_s1 + $0x280] sm:$0xf0] }
 0x28f   : > { %v2279_v22 = vadd.f32 %v2278_v1, %v2190_v43  ;;  %v4485_v1 = vld [vmem:[%s6700_s1 + $0x190] sm:$0xf0] }
 0x290   : > { %v2013_v60 = vpop.f32.mrf.mxu2  ;;  %v4025_v43 = vor.u32 %v4485_v1, %v4024_v5  ;;  %v455_v5 = vld [vmem:[%s6700_s1 + $0x308] sm:$0xf]  ;;  %v4145_v1 = vor.u32 %v4515_v45, %v4144_v21 }
 0x291   : > { %v2014_v42 = vadd.f32 %v2013_v60, %v1925_v9  ;;  %v2102_v48 = vpop.f32.mrf.mxu3  ;;  %2429 = vmatpush.bf16.msrb.mxu3 %v3929_v23  ;;  %v4157_v9 = vor.u32 %v4518_v10, %v4156_v29  ;;  %v2809_v29 = vmax.f32 %v2279_v22, 0.0  ;;  %v4120_v45 = vld [vmem:[%s6700_s1 + $0x248] sm:$0xf] }
 0x292   : > { %v2194_v32 = vpop.f32.mrf.mxu0  ;;  %2518 = vmatpush.bf16.msrb.mxu0 %v4025_v43 }
 0x293   : > { %v2103_v8 = vadd.f32 %v2102_v48, %v2014_v42  ;;  %v1928_v42 = vadd.f32 %v5717_v14, %v5910_v11  ;;  %2604 = vmatpush.bf16.msrb.mxu1 %v4157_v9  ;;  %v4512_v14 = vld [vmem:[%s6700_s1 + $0x268] sm:$0xf0] }
 0x294   : > { %v2283_v51 = vpop.f32.mrf.mxu1  ;;  %v4133_v22 = vor.u32 %v4512_v14, %v4132_v58 }
 0x295   : > { %2055 = vmatmul.bf16.gmra.mxu2 %v6957_v25  ;;  %2233 = vmatmul.bf16.gmra.mxu0 %v5715_v19  ;;  %v2192_v60 = vadd.f32 %v2191_v15, %v2103_v8  ;;  %v1188_v15 = vunpack.c.l.b16 %v455_v5 }
 0x296   : > { %2144 = vmatmul.bf16.gmra.mxu3 %v5708_v3 }
 0x297   : > { %v2281_v48 = vadd.f32 %v2280_v2, %v2192_v60  ;;  %4236 = vmatmul.msk.bf16.gmra.mxu1 %vm1384_vm1, %v5710_v53  ;;  %v1287_v43 = vpack.c.b16 %v1188_v15, %v1188_v15 }
 0x298   : > { %v2016_v23 = vpop.f32.mrf.mxu2  ;;  %2605 = vmatpush.bf16.msrb.mxu1 %v4145_v1 }
 0x299   : > { %v2812_v10 = vmax.f32 %v2281_v48, 0.0  ;;  %v2017_v8 = vadd.f32 %v2016_v23, %v1928_v42  ;;  %v2105_v7 = vpop.f32.mrf.mxu3  ;;  %v1441_v5 = vsel %vm1433_vm0, %v1287_v43, 0  ;;  %v4509_v42 = vld [vmem:[%s6700_s1 + $0x250] sm:$0xf0] }
 0x29a   : > { %v2196_v2 = vpop.f32.mrf.mxu0  ;;  %2696 = vmatpush.bf16.msra.mxu2 %v1441_v5  ;;  %v4121_v23 = vor.u32 %v4509_v42, %v4120_v45 }
 0x29b   : > { %v2106_v60 = vadd.f32 %v2105_v7, %v2017_v8  ;;  %v6127_v53 = vpack.c.bf16 %v2812_v10, %v2809_v29  ;;  %v1930_v7 = vadd.f32 %v5733_v36, %v5910_v11  ;;  %v6958_v8 = vld [vmem:[#allocation31_spill] sm:$0xff]  ;;  %v1933_v36 = vadd.f32 %v5748_v52, %v5910_v11 }
 0x29c   : > { %v2285_v9 = vpop.f32.mrf.mxu1  ;;  %2606 = vmatpush.bf16.msrb.mxu1 %v4133_v22 }
 0x29d   : > { %v2195_v21 = vadd.f32 %v2194_v32, %v2106_v60 }
 0x29f   : > { %v2284_v48 = vadd.f32 %v2283_v51, %v2195_v21 }
 0x2a0   : > { %v2018_v15 = vpop.f32.mrf.mxu2  ;;  %2607 = vmatpush.bf16.msrb.mxu1 %v4121_v23  ;;  %v1935_v23 = vadd.f32 %v5758_v62, %v5910_v11 }
 0x2a1   : > { %v2019_v29 = vadd.f32 %v2018_v15, %v1930_v7  ;;  %v2107_v10 = vpop.f32.mrf.mxu3  ;;  %v2815_v60 = vmax.f32 %v2284_v48, 0.0  ;;  %v6959_v48 = vld [vmem:[#allocation5_spill] sm:$0xff] }
 0x2a2   : > { %v2199_v1 = vpop.f32.mrf.mxu0 }
 0x2a3   : > { %v2108_v58 = vadd.f32 %v2107_v10, %v2019_v29 }
 0x2a4   : > { %v2288_v32 = vpop.f32.mrf.mxu1 }
 0x2a5   : > { %2060 = vmatmul.bf16.gmra.mxu2 %v6958_v8  ;;  %2238 = vmatmul.bf16.gmra.mxu0 %v5746_v12  ;;  %v2197_v43 = vadd.f32 %v2196_v2, %v2108_v58 }
 0x2a6   : > { %2149 = vmatmul.bf16.gmra.mxu3 %v5742_v26 }
 0x2a7   : > { %v2286_v51 = vadd.f32 %v2285_v9, %v2197_v43  ;;  %4237 = vmatmul.msk.bf16.gmra.mxu1 %vm1384_vm1, %v5744_v27 }
 0x2a8   : > { %v2021_v14 = vpop.f32.mrf.mxu2 }
 0x2a9   : > { %v2818_v5 = vmax.f32 %v2286_v51, 0.0  ;;  %v2022_v22 = vadd.f32 %v2021_v14, %v1933_v36  ;;  %v2110_v21 = vpop.f32.mrf.mxu3 }
 0x2aa   : > { %v2201_v45 = vpop.f32.mrf.mxu0 }
 0x2ab   : > { %v2111_v42 = vadd.f32 %v2110_v21, %v2022_v22  ;;  %v6144_v7 = vpack.c.bf16 %v2818_v5, %v2815_v60 }
 0x2ac   : > { %v2290_v15 = vpop.f32.mrf.mxu1 }
 0x2ad   : > { %v2200_v2 = vadd.f32 %v2199_v1, %v2111_v42  ;;  %v1938_v1 = vadd.f32 %v5761_v37, %v5910_v11 }
 0x2af   : > { %v2289_v29 = vadd.f32 %v2288_v32, %v2200_v2 }
 0x2b0   : > { %v2023_v52 = vpop.f32.mrf.mxu2 }
 0x2b1   : > { %v2024_v9 = vadd.f32 %v2023_v52, %v1935_v23  ;;  %v2112_v10 = vpop.f32.mrf.mxu3  ;;  %v2821_v32 = vmax.f32 %v2289_v29, 0.0  ;;  %v6960_v29 = vld [vmem:[#allocation8_spill] sm:$0xff] }
 0x2b2   : > { %v2204_v58 = vpop.f32.mrf.mxu0 }
 0x2b3   : > { %v2113_v43 = vadd.f32 %v2112_v10, %v2024_v9 }
 0x2b4   : > { %v2293_v27 = vpop.f32.mrf.mxu1 }
 0x2b5   : > { %2341 = vmatmul.bf16.vlgmr.msrb.gmra.mxu2 %v6959_v48  ;;  %2519 = vmatmul.bf16.vlgmr.msrb.gmra.mxu0 %v5191_v34  ;;  %v2202_v36 = vadd.f32 %v2201_v45, %v2113_v43 }
 0x2b6   : > { %2430 = vmatmul.bf16.vlgmr.msrb.gmra.mxu3 %v4889_v0  ;;  %v1940_v0 = vadd.f32 %v5777_v20, %v5910_v11 }
 0x2b7   : > { %v2291_v51 = vadd.f32 %v2290_v15, %v2202_v36  ;;  %2608 = vmatmul.bf16.vlgmr.msrb.gmra.mxu1 %v5195_v47 }
 0x2b8   : > { %v2026_v62 = vpop.f32.mrf.mxu2 }
 0x2b9   : > { %v2824_v14 = vmax.f32 %v2291_v51, 0.0  ;;  %v2027_v60 = vadd.f32 %v2026_v62, %v1938_v1  ;;  %v2115_v5 = vpop.f32.mrf.mxu3 }
 0x2ba   : > { %v2206_v22 = vpop.f32.mrf.mxu0 }
 0x2bb   : > { %v2116_v21 = vadd.f32 %v2115_v5, %v2027_v60  ;;  %v6154_v42 = vpack.c.bf16 %v2824_v14, %v2821_v32 }
 0x2bc   : > { %v2295_v2 = vpop.f32.mrf.mxu1 }
 0x2bd   : > { %v2205_v34 = vadd.f32 %v2204_v58, %v2116_v21  ;;  %v1943_v58 = vadd.f32 %v5780_v17, %v5910_v11 }
 0x2bf   : > { %v2294_v45 = vadd.f32 %v2293_v27, %v2205_v34  ;;  %v6961_v34 = vld [vmem:[#allocation11_spill] sm:$0xff] }
 0x2c0   : > { %v2028_v23 = vpop.f32.mrf.mxu2 }
 0x2c1   : > { %v2029_v37 = vadd.f32 %v2028_v23, %v1940_v0  ;;  %v2117_v15 = vpop.f32.mrf.mxu3  ;;  %v2827_v20 = vmax.f32 %v2294_v45, 0.0  ;;  %v1948_v45 = vadd.f32 %v5793_v44, %v5910_v11 }
 0x2c2   : > { %v2209_v52 = vpop.f32.mrf.mxu0 }
 0x2c3   : > { %v2118_v47 = vadd.f32 %v2117_v15, %v2029_v37 }
 0x2c4   : > { %v2298_v9 = vpop.f32.mrf.mxu1 }
 0x2c5   : > { %2346 = vmatmul.bf16.gmra.mxu2 %v6960_v29  ;;  %2524 = vmatmul.bf16.gmra.mxu0 %v5224_v24  ;;  %v2207_v10 = vadd.f32 %v2206_v22, %v2118_v47 }
 0x2c6   : > { %2435 = vmatmul.bf16.gmra.mxu3 %v4915_v16  ;;  %v1945_v16 = vadd.f32 %v5790_v40, %v5910_v11 }
 0x2c7   : > { %v2296_v43 = vadd.f32 %v2295_v2, %v2207_v10  ;;  %2613 = vmatmul.bf16.gmra.mxu1 %v5228_v41 }
 0x2c8   : > { %v2031_v27 = vpop.f32.mrf.mxu2 }
 0x2c9   : > { %v2830_v48 = vmax.f32 %v2296_v43, 0.0  ;;  %v2032_v36 = vadd.f32 %v2031_v27, %v1943_v58  ;;  %v2120_v1 = vpop.f32.mrf.mxu3 }
 0x2ca   : > { %v2211_v51 = vpop.f32.mrf.mxu0 }
 0x2cb   : > { %v2121_v62 = vadd.f32 %v2120_v1, %v2032_v36  ;;  %v6164_v32 = vpack.c.bf16 %v2830_v48, %v2827_v20  ;;  %v6962_v1 = vld [vmem:[#allocation14_spill] sm:$0xff] }
 0x2cc   : > { %v2300_v14 = vpop.f32.mrf.mxu1 }
 0x2cd   : > { %v2210_v24 = vadd.f32 %v2209_v52, %v2121_v62  ;;  %v1953_v62 = vadd.f32 %v5812_v39, %v5910_v11 }
 0x2cf   : > { %v2299_v60 = vadd.f32 %v2298_v9, %v2210_v24  ;;  %v6963_v24 = vld [vmem:[#allocation38_spill] sm:$0xff] }
 0x2d0   : > { %v2033_v5 = vpop.f32.mrf.mxu2 }
 0x2d1   : > { %v2034_v17 = vadd.f32 %v2033_v5, %v1945_v16  ;;  %v2122_v22 = vpop.f32.mrf.mxu3  ;;  %v2833_v37 = vmax.f32 %v2299_v60, 0.0 }
 0x2d2   : > { %v2214_v21 = vpop.f32.mrf.mxu0 }
 0x2d3   : > { %v2123_v41 = vadd.f32 %v2122_v22, %v2034_v17 }
 0x2d4   : > { %v2303_v2 = vpop.f32.mrf.mxu1 }
 0x2d5   : > { %2351 = vmatmul.bf16.gmra.mxu2 %v6961_v34  ;;  %2529 = vmatmul.bf16.gmra.mxu0 %v5253_v49  ;;  %v2212_v0 = vadd.f32 %v2211_v51, %v2123_v41  ;;  %v6964_v34 = vld [vmem:[#allocation39_spill] sm:$0xff] }
 0x2d6   : > { %2440 = vmatmul.bf16.gmra.mxu3 %v4941_v31  ;;  %v1950_v31 = vadd.f32 %v5809_v30, %v5910_v11 }
 0x2d7   : > { %v2301_v23 = vadd.f32 %v2300_v14, %v2212_v0  ;;  %2618 = vmatmul.bf16.gmra.mxu1 %v5257_v54 }
 0x2d8   : > { %v2036_v40 = vpop.f32.mrf.mxu2 }
 0x2d9   : > { %v2836_v15 = vmax.f32 %v2301_v23, 0.0  ;;  %v2037_v52 = vadd.f32 %v2036_v40, %v1948_v45  ;;  %v2125_v47 = vpop.f32.mrf.mxu3 }
 0x2da   : > { %v2216_v9 = vpop.f32.mrf.mxu0 }
 0x2db   : > { %v2126_v29 = vadd.f32 %v2125_v47, %v2037_v52  ;;  %v6174_v10 = vpack.c.bf16 %v2836_v15, %v2833_v37  ;;  %v6965_v52 = vld [vmem:[#allocation17_spill] sm:$0xff]  ;;  %v6966_v47 = vld [vmem:[#allocation40_spill] sm:$0xff] }
 0x2dc   : > { %v2305_v58 = vpop.f32.mrf.mxu1 }
 0x2dd   : > { %v2215_v49 = vadd.f32 %v2214_v21, %v2126_v29  ;;  %v6967_v29 = vld [vmem:[#allocation20_spill] sm:$0xff] }
 0x2df   : > { %v2304_v43 = vadd.f32 %v2303_v2, %v2215_v49 }
 0x2e0   : > { %v2038_v27 = vpop.f32.mrf.mxu2 }
 0x2e1   : > { %v2039_v44 = vadd.f32 %v2038_v27, %v1950_v31  ;;  %v2127_v20 = vpop.f32.mrf.mxu3  ;;  %v2839_v16 = vmax.f32 %v2304_v43, 0.0  ;;  %v6969_v43 = vld [vmem:[#allocation42_spill] sm:$0xff] }
 0x2e2   : > { %v2219_v48 = vpop.f32.mrf.mxu0 }
 0x2e3   : > { %v2128_v54 = vadd.f32 %v2127_v20, %v2039_v44 }
 0x2e4   : > { %v2308_v36 = vpop.f32.mrf.mxu1 }
 0x2e5   : > { %2356 = vmatmul.bf16.gmra.mxu2 %v6962_v1  ;;  %2534 = vmatmul.bf16.gmra.mxu0 %v6889_v57  ;;  %v2217_v51 = vadd.f32 %v2216_v9, %v2128_v54 }
 0x2e6   : > { %2445 = vmatmul.bf16.gmra.mxu3 %v4967_v46  ;;  %v1955_v46 = vadd.f32 %v6964_v34, %v5910_v11 }
 0x2e7   : > { %v2306_v14 = vadd.f32 %v2305_v58, %v2217_v51  ;;  %2623 = vmatmul.bf16.gmra.mxu1 %v6963_v24  ;;  %v6968_v58 = vld [vmem:[#allocation43_spill] sm:$0xff]  ;;  %v1960_v24 = vadd.f32 %v5841_v55, %v5910_v11 }
 0x2e8   : > { %v2041_v30 = vpop.f32.mrf.mxu2  ;;  %v1958_v49 = vadd.f32 %v6968_v58, %v5910_v11 }
 0x2e9   : > { %v2842_v60 = vmax.f32 %v2306_v14, 0.0  ;;  %v2042_v5 = vadd.f32 %v2041_v30, %v1953_v62  ;;  %v2130_v17 = vpop.f32.mrf.mxu3 }
 0x2ea   : > { %v2221_v22 = vpop.f32.mrf.mxu0 }
 0x2eb   : > { %v2131_v21 = vadd.f32 %v2130_v17, %v2042_v5  ;;  %v6184_v41 = vpack.c.bf16 %v2842_v60, %v2839_v16 }
 0x2ec   : > { %v2310_v2 = vpop.f32.mrf.mxu1 }
 0x2ed   : > { %v2220_v57 = vadd.f32 %v2219_v48, %v2131_v21 }
 0x2ef   : > { %v2309_v0 = vadd.f32 %v2308_v36, %v2220_v57  ;;  %v6971_v57 = vld [vmem:[#allocation45_spill] sm:$0xff] }
 0x2f0   : > { %v2043_v45 = vpop.f32.mrf.mxu2 }
 0x2f1   : > { %v2044_v39 = vadd.f32 %v2043_v45, %v1955_v46  ;;  %v2132_v23 = vpop.f32.mrf.mxu3  ;;  %v2845_v44 = vmax.f32 %v2309_v0, 0.0  ;;  %v6972_v46 = vld [vmem:[#allocation24_spill] sm:$0xff] }
 0x2f2   : > { %v2224_v40 = vpop.f32.mrf.mxu0  ;;  %v6973_v0 = vld [vmem:[#allocation48_spill] sm:$0xff] }
 0x2f3   : > { %v2133_v37 = vadd.f32 %v2132_v23, %v2044_v39  ;;  %v1963_v45 = vadd.f32 %v6973_v0, %v5910_v11  ;;  %v6974_v23 = vld [vmem:[#allocation47_spill] sm:$0xff] }
 0x2f4   : > { %v2313_v15 = vpop.f32.mrf.mxu1 }
 0x2f5   : > { %2361 = vmatmul.bf16.gmra.mxu2 %v6965_v52  ;;  %2539 = vmatmul.bf16.gmra.mxu0 %v6966_v47  ;;  %v2222_v9 = vadd.f32 %v2221_v22, %v2133_v37 }
 0x2f6   : > { %2450 = vmatmul.bf16.gmra.mxu3 %v6967_v29 }
 0x2f7   : > { %v2311_v31 = vadd.f32 %v2310_v2, %v2222_v9  ;;  %2628 = vmatmul.bf16.gmra.mxu1 %v6969_v43  ;;  %v6970_v2 = vld [vmem:[#allocation21_spill] sm:$0xff] }
 0x2f8   : > { %v2046_v27 = vpop.f32.mrf.mxu2 }
 0x2f9   : > { %v2848_v20 = vmax.f32 %v2311_v31, 0.0  ;;  %v2047_v48 = vadd.f32 %v2046_v27, %v1958_v49  ;;  %v2135_v54 = vpop.f32.mrf.mxu3  ;;  %v1965_v31 = vadd.f32 %v5854_v6, %v5910_v11 }
 0x2fa   : > { %v2226_v36 = vpop.f32.mrf.mxu0 }
 0x2fb   : > { %v2136_v1 = vadd.f32 %v2135_v54, %v2047_v48  ;;  %v6194_v51 = vpack.c.bf16 %v2848_v20, %v2845_v44 }
 0x2fc   : > { %v2315_v62 = vpop.f32.mrf.mxu1 }
 0x2fd   : > { %v2225_v14 = vadd.f32 %v2224_v40, %v2136_v1  ;;  %v6975_v1 = vld [vmem:[#allocation25_spill] sm:$0xff] }
 0x2ff   : > { %v2314_v30 = vadd.f32 %v2313_v15, %v2225_v14 }
 0x300   : > { %v2048_v16 = vpop.f32.mrf.mxu2 }
 0x301   : > { %v2049_v60 = vadd.f32 %v2048_v16, %v1960_v24  ;;  %v2137_v5 = vpop.f32.mrf.mxu3  ;;  %v2851_v40 = vmax.f32 %v2314_v30, 0.0  ;;  %v6977_v24 = vld [vmem:[#allocation28_spill] sm:$0xff]  ;;  %v6978_v30 = vld [vmem:[#allocation53_spill] sm:$0xff] }
 0x302   : > { %v2229_v17 = vpop.f32.mrf.mxu0  ;;  %v1968_v16 = vadd.f32 %v6978_v30, %v5910_v11 }
 0x303   : > { %v2138_v22 = vadd.f32 %v2137_v5, %v2049_v60  ;;  %v6979_v5 = vld [vmem:[#allocation52_spill] sm:$0xff] }
 0x304   : > { %v2318_v21 = vpop.f32.mrf.mxu1 }
 0x305   : > { %2366 = vmatmul.bf16.gmra.mxu2 %v6970_v2  ;;  %2544 = vmatmul.bf16.gmra.mxu0 %v6971_v57  ;;  %v2227_v34 = vadd.f32 %v2226_v36, %v2138_v22 }
 0x306   : > { %2455 = vmatmul.bf16.gmra.mxu3 %v6972_v46  ;;  %v4538_v46 = vld [vmem:[%s6702_s3 + $0x38] sm:$0xff] }
 0x307   : > { %v2316_v39 = vadd.f32 %v2315_v62, %v2227_v34  ;;  %2633 = vmatmul.bf16.gmra.mxu1 %v6974_v23  ;;  %v6976_v62 = vld [vmem:[#allocation50_spill] sm:$0xff]  ;;  %3118 = vmatpush.bf16.msra.mxu3 %v4538_v46  ;;  %v6980_v23 = vld [vmem:[#allocation92_spill] sm:$0xff] }
 0x308   : > { %v2051_v55 = vpop.f32.mrf.mxu2 }
 0x309   : > { %v2854_v37 = vmax.f32 %v2316_v39, 0.0  ;;  %v2052_v15 = vadd.f32 %v2051_v55, %v1963_v45  ;;  %v2140_v52 = vpop.f32.mrf.mxu3  ;;  %v1970_v55 = vadd.f32 %v6980_v23, %v5910_v11 }
 0x30a   : > { %v2231_v47 = vpop.f32.mrf.mxu0 }
 0x30b   : > { %v2141_v9 = vadd.f32 %v2140_v52, %v2052_v15  ;;  %v6204_v29 = vpack.c.bf16 %v2854_v37, %v2851_v40 }
 0x30c   : > { %v2320_v58 = vpop.f32.mrf.mxu1 }
 0x30d   : > { %v2230_v49 = vadd.f32 %v2229_v17, %v2141_v9 }
 0x30f   : > { %v2319_v43 = vadd.f32 %v2318_v21, %v2230_v49  ;;  %v6981_v49 = vld [vmem:[#allocation29_spill] sm:$0xff] }
 0x310   : > { %v2053_v27 = vpop.f32.mrf.mxu2 }
 0x311   : > { %v2054_v44 = vadd.f32 %v2053_v27, %v1965_v31  ;;  %v2142_v20 = vpop.f32.mrf.mxu3  ;;  %v2857_v17 = vmax.f32 %v2319_v43, 0.0  ;;  %v6982_v31 = vld [vmem:[#allocation55_spill] sm:$0xff]  ;;  %v6983_v27 = vld [vmem:[#allocation32_spill] sm:$0xff] }
 0x312   : > { %v2234_v48 = vpop.f32.mrf.mxu0 }
 0x313   : > { %v2143_v54 = vadd.f32 %v2142_v20, %v2054_v44  ;;  %v4546_v44 = vld [vmem:[%s6702_s3 + $0x78] sm:$0xff]  ;;  %v6984_v20 = vld [vmem:[#allocation93_spill] sm:$0xff] }
 0x314   : > { %v2323_v36 = vpop.f32.mrf.mxu1  ;;  %3207 = vmatpush.bf16.msra.mxu0 %v4546_v44 }
 0x315   : > { %2371 = vmatmul.bf16.gmra.mxu2 %v6975_v1  ;;  %2549 = vmatmul.bf16.gmra.mxu0 %v6976_v62  ;;  %v2232_v14 = vadd.f32 %v2231_v47, %v2143_v54  ;;  %v4554_v1 = vld [vmem:[%s6702_s3 + $0xb8] sm:$0xff] }
 0x316   : > { %2460 = vmatmul.bf16.gmra.mxu3 %v6977_v24  ;;  %3296 = vmatpush.bf16.msra.mxu1 %v4554_v1 }
 0x317   : > { %v2321_v60 = vadd.f32 %v2320_v58, %v2232_v14  ;;  %2638 = vmatmul.bf16.gmra.mxu1 %v6979_v5 }
 0x318   : > { %v2056_v6 = vpop.f32.mrf.mxu2 }
 0x319   : > { %v2860_v22 = vmax.f32 %v2321_v60, 0.0  ;;  %v2057_v21 = vadd.f32 %v2056_v6, %v1968_v16  ;;  %v2145_v2 = vpop.f32.mrf.mxu3 }
 0x31a   : > { %v2236_v57 = vpop.f32.mrf.mxu0 }
 0x31b   : > { %v2146_v34 = vadd.f32 %v2145_v2, %v2057_v21  ;;  %v6217_v0 = vpack.c.bf16 %v2860_v22, %v2857_v17  ;;  %v6986_v21 = vld [vmem:[#allocation94_spill] sm:$0xff] }
 0x31c   : > { %v2325_v45 = vpop.f32.mrf.mxu1  ;;  %v1975_v2 = vadd.f32 %v6986_v21, %v5910_v11  ;;  %v6992_v21 = vld [vmem:[#allocation65_spill] sm:$0xff] }
 0x31d   : > { %v2235_v39 = vadd.f32 %v2234_v48, %v2146_v34  ;;  %v1973_v48 = vadd.f32 %v6984_v20, %v5910_v11 }
 0x31f   : > { %v2324_v40 = vadd.f32 %v2323_v36, %v2235_v39  ;;  %v6985_v36 = vld [vmem:[#allocation57_spill] sm:$0xff] }
 0x320   : > { %v2058_v37 = vpop.f32.mrf.mxu2 }
 0x321   : > { %v2059_v15 = vadd.f32 %v2058_v37, %v1970_v55  ;;  %v2147_v52 = vpop.f32.mrf.mxu3  ;;  %v2863_v14 = vmax.f32 %v2324_v40, 0.0  ;;  %v6987_v40 = vld [vmem:[#allocation6_spill] sm:$0xff]  ;;  %v6988_v37 = vld [vmem:[#allocation59_spill] sm:$0xff] }
 0x322   : > { %v2239_v47 = vpop.f32.mrf.mxu0 }
 0x323   : > { %v2148_v9 = vadd.f32 %v2147_v52, %v2059_v15  ;;  %v4616_v52 = vld [vmem:[%s6701_s2] sm:$0x7] }
 0x324   : > { %v2328_v58 = vpop.f32.mrf.mxu1 }
 0x325   : > { %2376 = vmatmul.bf16.gmra.mxu2 %v6981_v49  ;;  %2554 = vmatmul.bf16.gmra.mxu0 %v6982_v31  ;;  %v2237_v43 = vadd.f32 %v2236_v57, %v2148_v9  ;;  %v6989_v9 = vld [vmem:[#allocation7_spill] sm:$0xff] }
 0x326   : > { %2465 = vmatmul.bf16.gmra.mxu3 %v6983_v27 }
 0x327   : > { %v2326_v54 = vadd.f32 %v2325_v45, %v2237_v43  ;;  %2643 = vmatmul.bf16.gmra.mxu1 %v6985_v36 }
 0x328   : > { %v2061_v62 = vpop.f32.mrf.mxu2 }
 0x329   : > { %v2866_v24 = vmax.f32 %v2326_v54, 0.0  ;;  %v2062_v30 = vadd.f32 %v2061_v62, %v1973_v48  ;;  %v2150_v16 = vpop.f32.mrf.mxu3  ;;  %v4537_v54 = vld [vmem:[%s6702_s3 + $0x30] sm:$0xff] }
 0x32a   : > { %v2241_v60 = vpop.f32.mrf.mxu0  ;;  %3119 = vmatpush.bf16.msra.mxu3 %v4537_v54 }
 0x32b   : > { %v2151_v5 = vadd.f32 %v2150_v16, %v2062_v30  ;;  %v6233_v6 = vpack.c.bf16 %v2866_v24, %v2863_v14 }
 0x32c   : > { %v2330_v17 = vpop.f32.mrf.mxu1 }
 0x32d   : > { %v2240_v22 = vadd.f32 %v2239_v47, %v2151_v5  ;;  %v6242_v47 = vperm.slane %v4616_v52, 2 }
 0x32f   : > { %v2329_v57 = vadd.f32 %v2328_v58, %v2240_v22  ;;  %v6990_v58 = vld [vmem:[#allocation61_spill] sm:$0xff] }
 0x330   : > { %v2063_v34 = vpop.f32.mrf.mxu2  ;;  %v6991_v22 = vld [vmem:[#allocation9_spill] sm:$0xff] }
 0x331   : > { %v2064_v46 = vadd.f32 %v2063_v34, %v1975_v2  ;;  %v2152_v45 = vpop.f32.mrf.mxu3  ;;  %v2869_v31 = vmax.f32 %v2329_v57, 0.0  ;;  %v6993_v57 = vld [vmem:[#allocation10_spill] sm:$0xff]  ;;  %v4545_v34 = vld [vmem:[%s6702_s3 + $0x70] sm:$0xff] }
 0x332   : > { %v2520_v39 = vpop.f32.mrf.mxu0  ;;  %3208 = vmatpush.bf16.msra.mxu0 %v4545_v34  ;;  %v6996_v34 = vld [vmem:[#allocation15_spill] sm:$0xff] }
 0x333   : > { %v2153_v23 = vadd.f32 %v2152_v45, %v2064_v46  ;;  %v6994_v45 = vld [vmem:[#allocation67_spill] sm:$0xff] }
 0x334   : > { %v2609_v55 = vpop.f32.mrf.mxu1 }
 0x335   : > { %2381 = vmatmul.bf16.gmra.mxu2 %v6987_v40  ;;  %2559 = vmatmul.bf16.gmra.mxu0 %v6988_v37  ;;  %v2242_v15 = vadd.f32 %v2241_v60, %v2153_v23 }
 0x336   : > { %2470 = vmatmul.bf16.gmra.mxu3 %v6989_v9 }
 0x337   : > { %v2331_v11 = vadd.f32 %v2330_v17, %v2242_v15  ;;  %2648 = vmatmul.bf16.gmra.mxu1 %v6990_v58 }
 0x338   : > { %v2342_v49 = vpop.f32.mrf.mxu2 }
 0x339   : > { %v2872_v43 = vmax.f32 %v2331_v11, 0.0  ;;  %v2343_v27 = vadd.f32 %v2342_v49, %v6242_v47  ;;  %v2431_v44 = vpop.f32.mrf.mxu3 }
 0x33a   : > { %v2522_v20 = vpop.f32.mrf.mxu0 }
 0x33b   : > { %v2432_v48 = vadd.f32 %v2431_v44, %v2343_v27  ;;  %v6250_v36 = vpack.c.bf16 %v2872_v43, %v2869_v31 }
 0x33c   : > { %v2611_v1 = vpop.f32.mrf.mxu1 }
 0x33d   : > { %v2521_v62 = vadd.f32 %v2520_v39, %v2432_v48  ;;  %v4553_v39 = vld [vmem:[%s6702_s3 + $0xb0] sm:$0xff] }
 0x33e   : > { %3297 = vmatpush.bf16.msra.mxu1 %v4553_v39  ;;  %v4544_v39 = vld [vmem:[%s6702_s3 + $0x68] sm:$0xff] }
 0x33f   : > { %v6252_v14 = vadd.f32 %v2609_v55, %v2521_v62  ;;  %3209 = vmatpush.bf16.msra.mxu0 %v4544_v39  ;;  %v4534_v39 = vld [vmem:[%s6702_s3 + $0x18] sm:$0xff] }
 0x340   : > { %v2344_v24 = vpop.f32.mrf.mxu2 }
 0x341   : > { %v2345_v30 = vadd.f32 %v2344_v24, %v6242_v47  ;;  %v2433_v16 = vpop.f32.mrf.mxu3 }
 0x342   : > { %v2525_v60 = vpop.f32.mrf.mxu0 }
 0x343   : > { %v2434_v5 = vadd.f32 %v2433_v16, %v2345_v30 }
 0x344   : > { %v2614_v17 = vpop.f32.mrf.mxu1 }
 0x345   : > { %2386 = vmatmul.bf16.gmra.mxu2 %v6991_v22  ;;  %2564 = vmatmul.bf16.gmra.mxu0 %v6992_v21  ;;  %v2523_v2 = vadd.f32 %v2522_v20, %v2434_v5  ;;  %v6995_v20 = vld [vmem:[#allocation12_spill] sm:$0xff] }
 0x346   : > { %2475 = vmatmul.bf16.gmra.mxu3 %v6993_v57 }
 0x347   : > { %v6261_v46 = vadd.f32 %v2611_v1, %v2523_v2  ;;  %2653 = vmatmul.bf16.gmra.mxu1 %v6994_v45 }
 0x348   : > { %v2347_v23 = vpop.f32.mrf.mxu2 }
 0x349   : > { %v2348_v55 = vadd.f32 %v2347_v23, %v6242_v47  ;;  %v2436_v40 = vpop.f32.mrf.mxu3 }
 0x34a   : > { %v2527_v37 = vpop.f32.mrf.mxu0 }
 0x34b   : > { %v2437_v15 = vadd.f32 %v2436_v40, %v2348_v55  ;;  %v4552_v55 = vld [vmem:[%s6702_s3 + $0xa8] sm:$0xff] }
 0x34c   : > { %v2616_v52 = vpop.f32.mrf.mxu1  ;;  %3298 = vmatpush.bf16.msra.mxu1 %v4552_v55  ;;  %v4542_v55 = vld [vmem:[%s6702_s3 + $0x58] sm:$0xff] }
 0x34d   : > { %v2526_v9 = vadd.f32 %v2525_v60, %v2437_v15  ;;  %v4536_v60 = vld [vmem:[%s6702_s3 + $0x28] sm:$0xff] }
 0x34e   : > { %3120 = vmatpush.bf16.msra.mxu3 %v4536_v60 }
 0x34f   : > { %v6268_v11 = vadd.f32 %v2614_v17, %v2526_v9 }
 0x350   : > { %v2349_v58 = vpop.f32.mrf.mxu2 }
 0x351   : > { %v2350_v49 = vadd.f32 %v2349_v58, %v6242_v47  ;;  %v2438_v31 = vpop.f32.mrf.mxu3 }
 0x352   : > { %v2530_v43 = vpop.f32.mrf.mxu0 }
 0x353   : > { %v2439_v27 = vadd.f32 %v2438_v31, %v2350_v49 }
 0x354   : > { %v2619_v44 = vpop.f32.mrf.mxu1 }
 0x355   : > { %2391 = vmatmul.bf16.gmra.mxu2 %v6995_v20  ;;  %2569 = vmatmul.bf16.gmra.mxu0 %v5527_v38  ;;  %v2528_v48 = vadd.f32 %v2527_v37, %v2439_v27  ;;  %v6997_v20 = vld [vmem:[#allocation18_spill] sm:$0xff] }
 0x356   : > { %2480 = vmatmul.bf16.gmra.mxu3 %v6938_v18 }
 0x357   : > { %v6274_v54 = vadd.f32 %v2616_v52, %v2528_v48  ;;  %2658 = vmatmul.bf16.gmra.mxu1 %v5531_v35 }
 0x358   : > { %v2352_v1 = vpop.f32.mrf.mxu2 }
 0x359   : > { %v2353_v62 = vadd.f32 %v2352_v1, %v6242_v47  ;;  %v2441_v24 = vpop.f32.mrf.mxu3 }
 0x35a   : > { %v2532_v30 = vpop.f32.mrf.mxu0 }
 0x35b   : > { %v2442_v16 = vadd.f32 %v2441_v24, %v2353_v62 }
 0x35c   : > { %v2621_v5 = vpop.f32.mrf.mxu1 }
 0x35d   : > { %v2531_v17 = vadd.f32 %v2530_v43, %v2442_v16 }
 0x35f   : > { %v6281_v38 = vadd.f32 %v2619_v44, %v2531_v17 }
 0x360   : > { %v2354_v18 = vpop.f32.mrf.mxu2 }
 0x361   : > { %v2355_v22 = vadd.f32 %v2354_v18, %v6242_v47  ;;  %v2443_v21 = vpop.f32.mrf.mxu3 }
 0x362   : > { %v2535_v35 = vpop.f32.mrf.mxu0 }
 0x363   : > { %v2444_v2 = vadd.f32 %v2443_v21, %v2355_v22  ;;  %v4543_v21 = vld [vmem:[%s6702_s3 + $0x60] sm:$0xff] }
 0x364   : > { %v2624_v57 = vpop.f32.mrf.mxu1  ;;  %3210 = vmatpush.bf16.msra.mxu0 %v4543_v21 }
 0x365   : > { %2396 = vmatmul.bf16.gmra.mxu2 %v6996_v34  ;;  %2574 = vmatmul.bf16.gmra.mxu0 %v5564_v13  ;;  %v2533_v45 = vadd.f32 %v2532_v30, %v2444_v2  ;;  %v6998_v34 = vld [vmem:[#allocation22_spill] sm:$0xff] }
 0x366   : > { %2485 = vmatmul.bf16.gmra.mxu3 %v6942_v59 }
 0x367   : > { %v6290_v23 = vadd.f32 %v2621_v5, %v2533_v45  ;;  %2663 = vmatmul.bf16.gmra.mxu1 %v5568_v50  ;;  %v4535_v5 = vld [vmem:[%s6702_s3 + $0x20] sm:$0xff] }
 0x368   : > { %v2357_v40 = vpop.f32.mrf.mxu2  ;;  %3121 = vmatpush.bf16.msra.mxu3 %v4535_v5  ;;  %3211 = vmatpush.bf16.msra.mxu0 %v4542_v55 }
 0x369   : > { %v2358_v37 = vadd.f32 %v2357_v40, %v6242_v47  ;;  %v2446_v13 = vpop.f32.mrf.mxu3  ;;  %v4551_v40 = vld [vmem:[%s6702_s3 + $0xa0] sm:$0xff] }
 0x36a   : > { %v2537_v15 = vpop.f32.mrf.mxu0  ;;  %3299 = vmatpush.bf16.msra.mxu1 %v4551_v40  ;;  %v7000_v40 = vld [vmem:[#allocation30_spill] sm:$0xff] }
 0x36b   : > { %v2447_v59 = vadd.f32 %v2446_v13, %v2358_v37 }
 0x36c   : > { %v2626_v52 = vpop.f32.mrf.mxu1  ;;  %3122 = vmatpush.bf16.msra.mxu3 %v4534_v39 }
 0x36d   : > { %v2536_v9 = vadd.f32 %v2535_v35, %v2447_v59 }
 0x36f   : > { %v6297_v58 = vadd.f32 %v2624_v57, %v2536_v9 }
 0x370   : > { %v2359_v49 = vpop.f32.mrf.mxu2 }
 0x371   : > { %v2360_v31 = vadd.f32 %v2359_v49, %v6242_v47  ;;  %v2448_v50 = vpop.f32.mrf.mxu3  ;;  %v4532_v49 = vld [vmem:[%s6702_s3 + $0x8] sm:$0xff] }
 0x372   : > { %v2540_v43 = vpop.f32.mrf.mxu0 }
 0x373   : > { %v2449_v27 = vadd.f32 %v2448_v50, %v2360_v31  ;;  %v4540_v31 = vld [vmem:[%s6702_s3 + $0x48] sm:$0xff] }
 0x374   : > { %v2629_v44 = vpop.f32.mrf.mxu1 }
 0x375   : > { %2401 = vmatmul.bf16.gmra.mxu2 %v6997_v20  ;;  %2579 = vmatmul.bf16.gmra.mxu0 %v5595_v61  ;;  %v2538_v48 = vadd.f32 %v2537_v15, %v2449_v27  ;;  %v4533_v15 = vld [vmem:[%s6702_s3 + $0x10] sm:$0xff]  ;;  %v4531_v20 = vld [vmem:[%s6702_s3] sm:$0xff] }
 0x376   : > { %2490 = vmatmul.bf16.gmra.mxu3 %v6946_v56 }
 0x377   : > { %v6303_v1 = vadd.f32 %v2626_v52, %v2538_v48  ;;  %2668 = vmatmul.bf16.gmra.mxu1 %v5599_v33  ;;  %3123 = vmatpush.bf16.msra.mxu3 %v4533_v15  ;;  %v4539_v48 = vld [vmem:[%s6702_s3 + $0x40] sm:$0xff] }
 0x378   : > { %v2362_v62 = vpop.f32.mrf.mxu2 }
 0x379   : > { %v2363_v24 = vadd.f32 %v2362_v62, %v6242_v47  ;;  %v2451_v30 = vpop.f32.mrf.mxu3 }
 0x37a   : > { %v2542_v16 = vpop.f32.mrf.mxu0 }
 0x37b   : > { %v2452_v60 = vadd.f32 %v2451_v30, %v2363_v24  ;;  %3124 = vmatpush.bf16.msra.mxu3 %v4532_v49 }
 0x37c   : > { %v6310_v17 = vpop.f32.mrf.mxu1 }
 0x37d   : > { %v2541_v61 = vadd.f32 %v2540_v43, %v2452_v60 }
 0x37f   : > { %v6312_v18 = vadd.f32 %v2629_v44, %v2541_v61  ;;  %3125 = vmatpush.bf16.msra.mxu3 %v4531_v20  ;;  %v7002_v20 = vld [vmem:[#allocation63_spill] sm:$0xff] }
 0x380   : > { %v2364_v56 = vpop.f32.mrf.mxu2 }
 0x381   : > { %v2365_v22 = vadd.f32 %v2364_v56, %v6242_v47  ;;  %v2453_v33 = vpop.f32.mrf.mxu3 }
 0x382   : > { %v2545_v35 = vpop.f32.mrf.mxu0 }
 0x383   : > { %v2454_v2 = vadd.f32 %v2453_v33, %v2365_v22 }
 0x384   : > { %v2634_v57 = vpop.f32.mrf.mxu1 }
 0x385   : > { %2406 = vmatmul.bf16.gmra.mxu2 %v6998_v34  ;;  %2584 = vmatmul.bf16.gmra.mxu0 %v6952_v4  ;;  %v6320_v45 = vadd.f32 %v2542_v16, %v2454_v2  ;;  %v6999_v16 = vld [vmem:[#allocation26_spill] sm:$0xff] }
 0x386   : > { %2495 = vmatmul.bf16.gmra.mxu3 %v6951_v63  ;;  %v4541_v63 = vld [vmem:[%s6702_s3 + $0x50] sm:$0xff] }
 0x387   : > { %2673 = vmatmul.bf16.gmra.mxu1 %v5642_v28  ;;  %3212 = vmatpush.bf16.msra.mxu0 %v4541_v63 }
 0x388   : > { %v2367_v4 = vpop.f32.mrf.mxu2 }
 0x389   : > { %v2368_v37 = vadd.f32 %v2367_v4, %v6242_v47  ;;  %v2456_v13 = vpop.f32.mrf.mxu3  ;;  %v4550_v4 = vld [vmem:[%s6702_s3 + $0x98] sm:$0xff] }
 0x38a   : > { %v2547_v28 = vpop.f32.mrf.mxu0  ;;  %3300 = vmatpush.bf16.msra.mxu1 %v4550_v4 }
 0x38b   : > { %v2457_v59 = vadd.f32 %v2456_v13, %v2368_v37  ;;  %3213 = vmatpush.bf16.msra.mxu0 %v4540_v31 }
 0x38c   : > { %v6340_v52 = vpop.f32.mrf.mxu1 }
 0x38d   : > { %v2546_v9 = vadd.f32 %v2545_v35, %v2457_v59 }
 0x38f   : > { %v6348_v50 = vadd.f32 %v2634_v57, %v2546_v9  ;;  %3214 = vmatpush.bf16.msra.mxu0 %v4539_v48 }
 0x390   : > { %v2369_v43 = vpop.f32.mrf.mxu2 }
 0x391   : > { %v2370_v27 = vadd.f32 %v2369_v43, %v6242_v47  ;;  %v2458_v44 = vpop.f32.mrf.mxu3 }
 0x392   : > { %v2550_v62 = vpop.f32.mrf.mxu0 }
 0x393   : > { %v2459_v24 = vadd.f32 %v2458_v44, %v2370_v27  ;;  %v7001_v44 = vld [vmem:[#allocation33_spill] sm:$0xff] }
 0x394   : > { %v2639_v30 = vpop.f32.mrf.mxu1 }
 0x395   : > { %2411 = vmatmul.bf16.gmra.mxu2 %v6999_v16  ;;  %2589 = vmatmul.bf16.gmra.mxu0 %v5708_v3  ;;  %v6359_v60 = vadd.f32 %v2547_v28, %v2459_v24 }
 0x396   : > { %2500 = vmatmul.bf16.gmra.mxu3 %v6957_v25 }
 0x397   : > { %2678 = vmatmul.bf16.gmra.mxu1 %v5715_v19 }
 0x398   : > { %v2372_v5 = vpop.f32.mrf.mxu2 }
 0x399   : > { %v2373_v61 = vadd.f32 %v2372_v5, %v6242_v47  ;;  %v2461_v56 = vpop.f32.mrf.mxu3 }
 0x39a   : > { %v2552_v22 = vpop.f32.mrf.mxu0 }
 0x39b   : > { %v2462_v33 = vadd.f32 %v2461_v56, %v2373_v61 }
 0x39c   : > { %v6364_v21 = vpop.f32.mrf.mxu1 }
 0x39d   : > { %v2551_v35 = vadd.f32 %v2550_v62, %v2462_v33  ;;  %v7003_v62 = vld [vmem:[#allocation69_spill] sm:$0xff] }
 0x39f   : > { %v6366_v2 = vadd.f32 %v2639_v30, %v2551_v35 }
 0x3a0   : > { %v2374_v57 = vpop.f32.mrf.mxu2 }
 0x3a1   : > { %v2375_v3 = vadd.f32 %v2374_v57, %v6242_v47  ;;  %v2463_v34 = vpop.f32.mrf.mxu3 }
 0x3a2   : > { %v2555_v39 = vpop.f32.mrf.mxu0 }
 0x3a3   : > { %v2464_v55 = vadd.f32 %v2463_v34, %v2375_v3 }
 0x3a4   : > { %v2644_v25 = vpop.f32.mrf.mxu1 }
 0x3a5   : > { %2416 = vmatmul.bf16.gmra.mxu2 %v7000_v40  ;;  %2594 = vmatmul.bf16.gmra.mxu0 %v5742_v26  ;;  %v6371_v19 = vadd.f32 %v2552_v22, %v2464_v55  ;;  %v7005_v40 = vld [vmem:[#allocation64_spill] sm:$0xff] }
 0x3a6   : > { %2505 = vmatmul.bf16.gmra.mxu3 %v6958_v8 }
 0x3a7   : > { %2683 = vmatmul.bf16.gmra.mxu1 %v5746_v12 }
 0x3a8   : > { %v2377_v37 = vpop.f32.mrf.mxu2 }
 0x3a9   : > { %v2378_v13 = vadd.f32 %v2377_v37, %v6242_v47  ;;  %v2466_v15 = vpop.f32.mrf.mxu3  ;;  %v7006_v37 = vld [vmem:[#allocation71_spill] sm:$0xff] }
 0x3aa   : > { %v2557_v63 = vpop.f32.mrf.mxu0 }
 0x3ab   : > { %v2467_v28 = vadd.f32 %v2466_v15, %v2378_v13  ;;  %v4549_v13 = vld [vmem:[%s6702_s3 + $0x90] sm:$0xff] }
 0x3ac   : > { %v6379_v59 = vpop.f32.mrf.mxu1  ;;  %3301 = vmatpush.bf16.msra.mxu1 %v4549_v13 }
 0x3ad   : > { %v2556_v26 = vadd.f32 %v2555_v39, %v2467_v28 }
 0x3af   : > { %v6381_v9 = vadd.f32 %v2644_v25, %v2556_v26  ;;  %v7004_v25 = vld [vmem:[#allocation34_spill] sm:$0xff] }
 0x3b0   : > { %v2379_v49 = vpop.f32.mrf.mxu2 }
 0x3b1   : > { %v2380_v8 = vadd.f32 %v2379_v49, %v6242_v47  ;;  %v2468_v12 = vpop.f32.mrf.mxu3 }
 0x3b2   : > { %v2560_v31 = vpop.f32.mrf.mxu0 }
 0x3b3   : > { %v2469_v43 = vadd.f32 %v2468_v12, %v2380_v8 }
 0x3b4   : > { %v2649_v27 = vpop.f32.mrf.mxu1 }
 0x3b5   : > { %4238 = vmatmul.msk.bf16.vlgmr.msra.gmra.mxu2 %vm1384_vm1, %v7001_v44  ;;  %3215 = vmatmul.bf16.vlgmr.msra.gmra.mxu0 %v7002_v20  ;;  %v6387_v48 = vadd.f32 %v2557_v63, %v2469_v43 }
 0x3b6   : > { %3126 = vmatmul.bf16.vlgmr.msra.gmra.mxu3 %v7003_v62 }
 0x3b8   : > { %v2382_v24 = vpop.f32.mrf.mxu2 }
 0x3b9   : > { %v2383_v30 = vadd.f32 %v2382_v24, %v6242_v47  ;;  %v2471_v16 = vpop.f32.mrf.mxu3 }
 0x3ba   : > { %v2562_v5 = vpop.f32.mrf.mxu0 }
 0x3bb   : > { %v2472_v61 = vadd.f32 %v2471_v16, %v2383_v30  ;;  %v7007_v30 = vld [vmem:[#allocation35_spill] sm:$0xff]  ;;  %v7008_v16 = vld [vmem:[#allocation68_spill] sm:$0xff] }
 0x3bc   : > { %v6391_v56 = vpop.f32.mrf.mxu1 }
 0x3bd   : > { %v2561_v22 = vadd.f32 %v2560_v31, %v2472_v61  ;;  %v7009_v61 = vld [vmem:[#allocation75_spill] sm:$0xff] }
 0x3bf   : > { %v6393_v33 = vadd.f32 %v2649_v27, %v2561_v22 }
 0x3c0   : > { %v2384_v35 = vpop.f32.mrf.mxu2 }
 0x3c1   : > { %v2385_v57 = vadd.f32 %v2384_v35, %v6242_v47  ;;  %v2473_v3 = vpop.f32.mrf.mxu3 }
 0x3c2   : > { %v2565_v34 = vpop.f32.mrf.mxu0 }
 0x3c3   : > { %v2474_v39 = vadd.f32 %v2473_v3, %v2385_v57 }
 0x3c4   : > { %v2654_v55 = vpop.f32.mrf.mxu1 }
 0x3c5   : > { %4239 = vmatmul.msk.bf16.gmra.mxu2 %vm1384_vm1, %v7004_v25  ;;  %3220 = vmatmul.bf16.gmra.mxu0 %v7005_v40  ;;  %v6399_v4 = vadd.f32 %v2562_v5, %v2474_v39 }
 0x3c6   : > { %3131 = vmatmul.bf16.gmra.mxu3 %v7006_v37 }
 0x3c8   : > { %v2387_v15 = vpop.f32.mrf.mxu2 }
 0x3c9   : > { %v2388_v63 = vadd.f32 %v2387_v15, %v6242_v47  ;;  %v2476_v28 = vpop.f32.mrf.mxu3 }
 0x3ca   : > { %v2567_v26 = vpop.f32.mrf.mxu0 }
 0x3cb   : > { %v2477_v49 = vadd.f32 %v2476_v28, %v2388_v63 }
 0x3cc   : > { %v6406_v8 = vpop.f32.mrf.mxu1 }
 0x3cd   : > { %v2566_v12 = vadd.f32 %v2565_v34, %v2477_v49  ;;  %v7011_v49 = vld [vmem:[#allocation13_spill] sm:$0xff] }
 0x3cf   : > { %v6408_v31 = vadd.f32 %v2654_v55, %v2566_v12 }
 0x3d0   : > { %v2389_v43 = vpop.f32.mrf.mxu2 }
 0x3d1   : > { %v2390_v27 = vadd.f32 %v2389_v43, %v6242_v47  ;;  %v2478_v44 = vpop.f32.mrf.mxu3  ;;  %v7012_v43 = vld [vmem:[#allocation78_spill] sm:$0xff] }
 0x3d2   : > { %v2570_v20 = vpop.f32.mrf.mxu0 }
 0x3d3   : > { %v2479_v62 = vadd.f32 %v2478_v44, %v2390_v27  ;;  %v4548_v27 = vld [vmem:[%s6702_s3 + $0x88] sm:$0xff] }
 0x3d4   : > { %v2659_v24 = vpop.f32.mrf.mxu1  ;;  %3302 = vmatpush.bf16.msra.mxu1 %v4548_v27 }
 0x3d5   : > { %4240 = vmatmul.msk.bf16.gmra.mxu2 %vm1384_vm1, %v7007_v30  ;;  %3225 = vmatmul.bf16.gmra.mxu0 %v7008_v16  ;;  %v6414_v5 = vadd.f32 %v2567_v26, %v2479_v62  ;;  %v7010_v26 = vld [vmem:[#allocation37_spill] sm:$0xff] }
 0x3d6   : > { %3136 = vmatmul.bf16.gmra.mxu3 %v7009_v61 }
 0x3d8   : > { %v2392_v22 = vpop.f32.mrf.mxu2 }
 0x3d9   : > { %v2393_v35 = vadd.f32 %v2392_v22, %v6242_v47  ;;  %v2481_v57 = vpop.f32.mrf.mxu3 }
 0x3da   : > { %v2572_v3 = vpop.f32.mrf.mxu0 }
 0x3db   : > { %v2482_v34 = vadd.f32 %v2481_v57, %v2393_v35 }
 0x3dc   : > { %v6418_v39 = vpop.f32.mrf.mxu1 }
 0x3dd   : > { %v2571_v55 = vadd.f32 %v2570_v20, %v2482_v34 }
 0x3df   : > { %v6420_v25 = vadd.f32 %v2659_v24, %v2571_v55 }
 0x3e0   : > { %v2394_v40 = vpop.f32.mrf.mxu2 }
 0x3e1   : > { %v2395_v37 = vadd.f32 %v2394_v40, %v6242_v47  ;;  %v2483_v13 = vpop.f32.mrf.mxu3 }
 0x3e2   : > { %v2575_v15 = vpop.f32.mrf.mxu0 }
 0x3e3   : > { %v2484_v63 = vadd.f32 %v2483_v13, %v2395_v37  ;;  %v7013_v37 = vld [vmem:[#allocation41_spill] sm:$0xff]  ;;  %v7014_v13 = vld [vmem:[#allocation72_spill] sm:$0xff] }
 0x3e4   : > { %v2664_v28 = vpop.f32.mrf.mxu1 }
 0x3e5   : > { %4241 = vmatmul.msk.bf16.gmra.mxu2 %vm1384_vm1, %v7010_v26  ;;  %3230 = vmatmul.bf16.gmra.mxu0 %v7011_v49  ;;  %v6426_v12 = vadd.f32 %v2572_v3, %v2484_v63  ;;  %v7015_v26 = vld [vmem:[#allocation83_spill] sm:$0xff] }
 0x3e6   : > { %3141 = vmatmul.bf16.gmra.mxu3 %v7012_v43 }
 0x3e8   : > { %v2397_v44 = vpop.f32.mrf.mxu2 }
 0x3e9   : > { %v2398_v20 = vadd.f32 %v2397_v44, %v6242_v47  ;;  %v2486_v62 = vpop.f32.mrf.mxu3 }
 0x3ea   : > { %v2577_v24 = vpop.f32.mrf.mxu0 }
 0x3eb   : > { %v2487_v30 = vadd.f32 %v2486_v62, %v2398_v20 }
 0x3ec   : > { %v6433_v16 = vpop.f32.mrf.mxu1 }
 0x3ed   : > { %v2576_v61 = vadd.f32 %v2575_v15, %v2487_v30 }
 0x3ef   : > { %v6435_v22 = vadd.f32 %v2664_v28, %v2576_v61 }
 0x3f0   : > { %v2399_v35 = vpop.f32.mrf.mxu2 }
 0x3f1   : > { %v2400_v57 = vadd.f32 %v2399_v35, %v6242_v47  ;;  %v2488_v3 = vpop.f32.mrf.mxu3 }
 0x3f2   : > { %v2580_v34 = vpop.f32.mrf.mxu0 }
 0x3f3   : > { %v2489_v55 = vadd.f32 %v2488_v3, %v2400_v57 }
 0x3f4   : > { %v2669_v40 = vpop.f32.mrf.mxu1 }
 0x3f5   : > { %4242 = vmatmul.msk.bf16.gmra.mxu2 %vm1384_vm1, %v7013_v37  ;;  %3235 = vmatmul.bf16.gmra.mxu0 %v7014_v13  ;;  %v6441_v63 = vadd.f32 %v2577_v24, %v2489_v55  ;;  %v7016_v55 = vld [vmem:[#allocation46_spill] sm:$0xff] }
 0x3f6   : > { %3146 = vmatmul.bf16.gmra.mxu3 %v7015_v26  ;;  %v7017_v13 = vld [vmem:[#allocation86_spill] sm:$0xff] }
 0x3f8   : > { %v2402_v49 = vpop.f32.mrf.mxu2 }
 0x3f9   : > { %v2403_v15 = vadd.f32 %v2402_v49, %v6242_v47  ;;  %v2491_v28 = vpop.f32.mrf.mxu3 }
 0x3fa   : > { %v2582_v43 = vpop.f32.mrf.mxu0 }
 0x3fb   : > { %v2492_v27 = vadd.f32 %v2491_v28, %v2403_v15 }
 0x3fc   : > { %v6445_v44 = vpop.f32.mrf.mxu1 }
 0x3fd   : > { %v2581_v20 = vadd.f32 %v2580_v34, %v2492_v27  ;;  %v4547_v34 = vld [vmem:[%s6702_s3 + $0x80] sm:$0xff] }
 0x3fe   : > { %3303 = vmatpush.bf16.msra.mxu1 %v4547_v34  ;;  %v7020_v34 = vld [vmem:[#allocation88_spill] sm:$0xff] }
 0x3ff   : > { %v6447_v62 = vadd.f32 %v2669_v40, %v2581_v20 }
 0x400   : > { %v2404_v30 = vpop.f32.mrf.mxu2 }
 0x401   : > { %v2405_v61 = vadd.f32 %v2404_v30, %v6242_v47  ;;  %v2493_v35 = vpop.f32.mrf.mxu3 }
 0x402   : > { %v2585_v57 = vpop.f32.mrf.mxu0 }
 0x403   : > { %v2494_v24 = vadd.f32 %v2493_v35, %v2405_v61 }
 0x404   : > { %v2674_v3 = vpop.f32.mrf.mxu1 }
 0x405   : > { %4243 = vmatmul.msk.bf16.gmra.mxu2 %vm1384_vm1, %v7016_v55  ;;  %3240 = vmatmul.bf16.gmra.mxu0 %v6127_v53  ;;  %v6453_v37 = vadd.f32 %v2582_v43, %v2494_v24  ;;  %v7019_v55 = vld [vmem:[#allocation51_spill] sm:$0xff] }
 0x406   : > { %3151 = vmatmul.bf16.gmra.mxu3 %v7017_v13 }
 0x408   : > { %v2407_v40 = vpop.f32.mrf.mxu2 }
 0x409   : > { %v2408_v26 = vadd.f32 %v2407_v40, %v6242_v47  ;;  %v2496_v49 = vpop.f32.mrf.mxu3 }
 0x40a   : > { %v2587_v15 = vpop.f32.mrf.mxu0 }
 0x40b   : > { %v2497_v28 = vadd.f32 %v2496_v49, %v2408_v26 }
 0x40c   : > { %v6460_v20 = vpop.f32.mrf.mxu1 }
 0x40d   : > { %v2586_v27 = vadd.f32 %v2585_v57, %v2497_v28 }
 0x40f   : > { %v6462_v30 = vadd.f32 %v2674_v3, %v2586_v27 }
 0x410   : > { %v2409_v53 = vpop.f32.mrf.mxu2 }
 0x411   : > { %7018 = vst [vmem:[#allocation16_spill] sm:$0xff] %v6462_v30  ;;  %v2410_v43 = vadd.f32 %v2409_v53, %v6242_v47  ;;  %v2498_v61 = vpop.f32.mrf.mxu3 }
 0x412   : > { %v2590_v35 = vpop.f32.mrf.mxu0 }
 0x413   : > { %v2499_v24 = vadd.f32 %v2498_v61, %v2410_v43 }
 0x414   : > { %v2679_v40 = vpop.f32.mrf.mxu1 }
 0x415   : > { %4244 = vmatmul.msk.bf16.gmra.mxu2 %vm1384_vm1, %v7019_v55  ;;  %3245 = vmatmul.bf16.gmra.mxu0 %v6144_v7  ;;  %v6468_v13 = vadd.f32 %v2587_v15, %v2499_v24  ;;  %v7023_v24 = vld [vmem:[#allocation56_spill] sm:$0xff] }
 0x416   : > { %3156 = vmatmul.bf16.gmra.mxu3 %v7020_v34 }
 0x418   : > { %v2412_v57 = vpop.f32.mrf.mxu2 }
 0x419   : > { %v2413_v3 = vadd.f32 %v2412_v57, %v6242_v47  ;;  %v2501_v26 = vpop.f32.mrf.mxu3  ;;  %v7024_v57 = vld [vmem:[#allocation89_spill] sm:$0xff] }
 0x41a   : > { %v2592_v49 = vpop.f32.mrf.mxu0 }
 0x41b   : > { %v2502_v28 = vadd.f32 %v2501_v26, %v2413_v3 }
 0x41c   : > { %v6475_v7 = vpop.f32.mrf.mxu1 }
 0x41d   : > { %v2591_v27 = vadd.f32 %v2590_v35, %v2502_v28  ;;  %7022 = vst [vmem:[#allocation19_spill] sm:$0xff] %v6475_v7 }
 0x41f   : > { %v6472_v53 = vadd.f32 %v2679_v40, %v2591_v27 }
 0x420   : > { %v2414_v43 = vpop.f32.mrf.mxu2 }
 0x421   : > { %7021 = vst [vmem:[#allocation74_spill] sm:$0xff] %v6472_v53  ;;  %v2415_v61 = vadd.f32 %v2414_v43, %v6242_v47  ;;  %v2503_v55 = vpop.f32.mrf.mxu3 }
 0x422   : > { %v2595_v30 = vpop.f32.mrf.mxu0 }
 0x423   : > { %v2504_v15 = vadd.f32 %v2503_v55, %v2415_v61 }
 0x424   : > { %v2684_v27 = vpop.f32.mrf.mxu1 }
 0x425   : > { %4245 = vmatmul.msk.bf16.gmra.mxu2 %vm1384_vm1, %v7023_v24  ;;  %3250 = vmatmul.bf16.gmra.mxu0 %v6154_v42  ;;  %v6480_v34 = vadd.f32 %v2592_v49, %v2504_v15  ;;  %v7026_v49 = vld [vmem:[#allocation60_spill] sm:$0xff] }
 0x426   : > { %3161 = vmatmul.bf16.gmra.mxu3 %v7024_v57  ;;  %v7027_v57 = vld [vmem:[#allocation90_spill] sm:$0xff] }
 0x428   : > { %v2417_v35 = vpop.f32.mrf.mxu2 }
 0x429   : > { %v2418_v40 = vadd.f32 %v2417_v35, %v6242_v47  ;;  %v2506_v3 = vpop.f32.mrf.mxu3 }
 0x42a   : > { %v2597_v26 = vpop.f32.mrf.mxu0 }
 0x42b   : > { %v2507_v28 = vadd.f32 %v2506_v3, %v2418_v40 }
 0x42d   : > { %v2596_v43 = vadd.f32 %v2595_v30, %v2507_v28  ;;  %v6496_v30 = vld [vmem:[%s6703_s4] ss:$0 sm:$0xff] }
 0x42f   : > { %v6484_v53 = vadd.f32 %v2684_v27, %v2596_v43 }
 0x430   : > { %v2419_v61 = vpop.f32.mrf.mxu2 }
 0x431   : > { %7025 = vst [vmem:[#allocation77_spill] sm:$0xff] %v6484_v53  ;;  %v2420_v55 = vadd.f32 %v2419_v61, %v6242_v47  ;;  %v2508_v24 = vpop.f32.mrf.mxu3  ;;  %v7028_v53 = vld [vmem:[#allocation66_spill] sm:$0xff] }
 0x432   : > { %v3216_v7 = vpop.f32.mrf.mxu0 }
 0x433   : > { %v2509_v42 = vadd.f32 %v2508_v24, %v2420_v55 }
 0x435   : > { %4246 = vmatmul.msk.bf16.gmra.mxu2 %vm1384_vm1, %v7026_v49  ;;  %3255 = vmatmul.bf16.gmra.mxu0 %v6164_v32  ;;  %v6490_v15 = vadd.f32 %v2597_v26, %v2509_v42 }
 0x436   : > { %3166 = vmatmul.bf16.gmra.mxu3 %v7027_v57 }
 0x438   : > { %v2698_v35 = vpop.f32.mrf.mxu2 }
 0x439   : > { %v3127_v40 = vpop.f32.mrf.mxu3  ;;  %v2699_v27 = vadd.f32 %v2698_v35, %v6252_v14 }
 0x43a   : > { %v3128_v47 = vadd.f32 %v6496_v30, %v3127_v40  ;;  %v3218_v3 = vpop.f32.mrf.mxu0 }
 0x43b   : > { %v2780_v24 = vmax.f32 %v2699_v27, 0.0 }
 0x43c   : > { %v6499_v28 = vadd.f32 %v3216_v7, %v3128_v47  ;;  %v7029_v7 = vld [vmem:[#allocation91_spill] sm:$0xff] }
 0x440   : > { %v2700_v43 = vpop.f32.mrf.mxu2 }
 0x441   : > { %v2701_v32 = vadd.f32 %v2700_v43, %v6261_v46  ;;  %v3129_v26 = vpop.f32.mrf.mxu3 }
 0x442   : > { %v3130_v61 = vadd.f32 %v6496_v30, %v3129_v26  ;;  %v3221_v55 = vpop.f32.mrf.mxu0 }
 0x443   : > { %v2783_v42 = vmax.f32 %v2701_v32, 0.0 }
 0x444   : > { %v6504_v49 = vadd.f32 %v3218_v3, %v3130_v61 }
 0x445   : > { %v2876_v57 = vpack.c.bf16 %v2783_v42, %v2780_v24  ;;  %4247 = vmatmul.msk.bf16.gmra.mxu2 %vm1384_vm1, %v7028_v53  ;;  %3260 = vmatmul.bf16.gmra.mxu0 %v6174_v10  ;;  %v7030_v42 = vld [vmem:[#allocation70_spill] sm:$0xff] }
 0x446   : > { %3171 = vmatmul.bf16.gmra.mxu3 %v7029_v7 }
 0x447   : > { %3304 = vmatmul.bf16.vlgmr.msra.gmra.mxu1 %v2876_v57  ;;  %v7031_v57 = vld [vmem:[#allocation36_spill] sm:$0xff] }
 0x448   : > { %v2703_v14 = vpop.f32.mrf.mxu2 }
 0x449   : > { %v3132_v35 = vpop.f32.mrf.mxu3  ;;  %v2704_v27 = vadd.f32 %v2703_v14, %v6268_v11 }
 0x44a   : > { %v3133_v46 = vadd.f32 %v6496_v30, %v3132_v35  ;;  %v3223_v40 = vpop.f32.mrf.mxu0 }
 0x44b   : > { %v2786_v26 = vmax.f32 %v2704_v27, 0.0 }
 0x44c   : > { %v6511_v47 = vadd.f32 %v3221_v55, %v3133_v46 }
 0x450   : > { %v2705_v3 = vpop.f32.mrf.mxu2 }
 0x451   : > { %v2706_v43 = vadd.f32 %v2705_v3, %v6274_v54  ;;  %v3134_v32 = vpop.f32.mrf.mxu3 }
 0x452   : > { %v3135_v53 = vadd.f32 %v6496_v30, %v3134_v32  ;;  %v3226_v24 = vpop.f32.mrf.mxu0 }
 0x453   : > { %v2789_v10 = vmax.f32 %v2706_v43, 0.0 }
 0x454   : > { %v6516_v61 = vadd.f32 %v3223_v40, %v3135_v53 }
 0x455   : > { %4248 = vmatmul.msk.bf16.gmra.mxu2 %vm1384_vm1, %v7030_v42  ;;  %3265 = vmatmul.bf16.gmra.mxu0 %v6184_v41  ;;  %v2879_v55 = vpack.c.bf16 %v2789_v10, %v2786_v26  ;;  %v7032_v26 = vld [vmem:[#allocation73_spill] sm:$0xff] }
 0x456   : > { %3176 = vmatmul.bf16.gmra.mxu3 %v7031_v57 }
 0x457   : > { %3309 = vmatmul.bf16.gmra.mxu1 %v2879_v55 }
 0x458   : > { %v2708_v11 = vpop.f32.mrf.mxu2 }
 0x459   : > { %v3137_v7 = vpop.f32.mrf.mxu3  ;;  %v2709_v35 = vadd.f32 %v2708_v11, %v6281_v38 }
 0x45a   : > { %v3138_v54 = vadd.f32 %v6496_v30, %v3137_v7  ;;  %v3228_v46 = vpop.f32.mrf.mxu0 }
 0x45b   : > { %v2792_v41 = vmax.f32 %v2709_v35, 0.0 }
 0x45c   : > { %v6523_v14 = vadd.f32 %v3226_v24, %v3138_v54  ;;  %v7033_v24 = vld [vmem:[#allocation44_spill] sm:$0xff] }
 0x460   : > { %v2710_v40 = vpop.f32.mrf.mxu2 }
 0x461   : > { %v2711_v27 = vadd.f32 %v2710_v40, %v6290_v23  ;;  %v3139_v3 = vpop.f32.mrf.mxu3 }
 0x462   : > { %v3140_v43 = vadd.f32 %v6496_v30, %v3139_v3  ;;  %v3231_v42 = vpop.f32.mrf.mxu0 }
 0x463   : > { %v2795_v32 = vmax.f32 %v2711_v27, 0.0 }
 0x464   : > { %v6528_v53 = vadd.f32 %v3228_v46, %v3140_v43  ;;  %v7034_v43 = vld [vmem:[#allocation76_spill] sm:$0xff] }
 0x465   : > { %4249 = vmatmul.msk.bf16.gmra.mxu2 %vm1384_vm1, %v7032_v26  ;;  %3270 = vmatmul.bf16.gmra.mxu0 %v6194_v51  ;;  %v2882_v10 = vpack.c.bf16 %v2795_v32, %v2792_v41  ;;  %v7035_v32 = vld [vmem:[#allocation49_spill] sm:$0xff] }
 0x466   : > { %3181 = vmatmul.bf16.gmra.mxu3 %v7033_v24 }
 0x467   : > { %3314 = vmatmul.bf16.gmra.mxu1 %v2882_v10 }
 0x468   : > { %v2713_v38 = vpop.f32.mrf.mxu2 }
 0x469   : > { %v3142_v55 = vpop.f32.mrf.mxu3  ;;  %v2714_v11 = vadd.f32 %v2713_v38, %v6297_v58 }
 0x46a   : > { %v3143_v23 = vadd.f32 %v6496_v30, %v3142_v55  ;;  %v3233_v40 = vpop.f32.mrf.mxu0 }
 0x46b   : > { %v2798_v51 = vmax.f32 %v2714_v11, 0.0 }
 0x46c   : > { %v6535_v57 = vadd.f32 %v3231_v42, %v3143_v23  ;;  %v7036_v23 = vld [vmem:[#allocation81_spill] sm:$0xff] }
 0x470   : > { %v2715_v7 = vpop.f32.mrf.mxu2 }
 0x471   : > { %v2716_v54 = vadd.f32 %v2715_v7, %v6303_v1  ;;  %v3144_v35 = vpop.f32.mrf.mxu3  ;;  %v2632_v1 = vadd.f32 %v6310_v17, %v6320_v45  ;;  %v2637_v7 = vadd.f32 %v6340_v52, %v6359_v60 }
 0x472   : > { %v3145_v46 = vadd.f32 %v6496_v30, %v3144_v35 }
 0x473   : > { %v2801_v27 = vmax.f32 %v2716_v54, 0.0 }
 0x474   : > { %v6540_v3 = vadd.f32 %v3233_v40, %v3145_v46 }
 0x475   : > { %4250 = vmatmul.msk.bf16.gmra.mxu2 %vm1384_vm1, %v7034_v43  ;;  %3275 = vmatmul.bf16.gmra.mxu0 %v6204_v29  ;;  %v2885_v41 = vpack.c.bf16 %v2801_v27, %v2798_v51  ;;  %v7037_v29 = vld [vmem:[#allocation54_spill] sm:$0xff]  ;;  %v7038_v51 = vld [vmem:[#allocation85_spill] sm:$0xff]  ;;  %v2642_v27 = vadd.f32 %v6364_v21, %v6371_v19  ;;  %v2647_v21 = vadd.f32 %v6379_v59, %v6387_v48 }
 0x476   : > { %3186 = vmatmul.bf16.gmra.mxu3 %v7035_v32 }
 0x477   : > { %3319 = vmatmul.bf16.gmra.mxu1 %v2885_v41 }
 0x478   : > { %v2718_v58 = vpop.f32.mrf.mxu2 }
 0x479   : > { %v2719_v26 = vadd.f32 %v2718_v58, %v6312_v18  ;;  %v7040_v58 = vld [vmem:[#allocation87_spill] sm:$0xff] }
 0x47b   : > { %v2804_v38 = vmax.f32 %v2719_v26, 0.0 }
 0x480   : > { %v2720_v10 = vpop.f32.mrf.mxu2 }
 0x481   : > { %v2721_v24 = vadd.f32 %v2720_v10, %v2632_v1 }
 0x483   : > { %v2807_v42 = vmax.f32 %v2721_v24, 0.0 }
 0x485   : > { %v2888_v55 = vpack.c.bf16 %v2807_v42, %v2804_v38  ;;  %4251 = vmatmul.msk.bf16.gmra.mxu2 %vm1384_vm1, %v7036_v23  ;;  %3280 = vmatmul.bf16.gmra.mxu0 %v6217_v0  ;;  %v7039_v0 = vld [vmem:[#allocation58_spill] sm:$0xff] }
 0x486   : > { %3191 = vmatmul.bf16.gmra.mxu3 %v7037_v29 }
 0x487   : > { %3324 = vmatmul.bf16.gmra.mxu1 %v2888_v55  ;;  %v6570_v55 = vpop.f32.mrf.mxu1 }
 0x488   : > { %v2723_v11 = vpop.f32.mrf.mxu2 }
 0x489   : > { %v2724_v17 = vadd.f32 %v2723_v11, %v6348_v50 }
 0x48b   : > { %v2810_v54 = vmax.f32 %v2724_v17, 0.0 }
 0x490   : > { %v2725_v18 = vpop.f32.mrf.mxu2 }
 0x491   : > { %v2726_v45 = vadd.f32 %v2725_v18, %v2637_v7  ;;  %v3147_v18 = vpop.f32.mrf.mxu3 }
 0x493   : > { %v2813_v35 = vmax.f32 %v2726_v45, 0.0  ;;  %v2657_v45 = vadd.f32 %v6406_v8, %v6414_v5  ;;  %v2662_v5 = vadd.f32 %v6418_v39, %v6426_v12  ;;  %v2667_v12 = vadd.f32 %v6433_v16, %v6441_v63 }
 0x494   : > { %v3148_v63 = vadd.f32 %v6496_v30, %v3147_v18 }
 0x495   : > { %v2891_v46 = vpack.c.bf16 %v2813_v35, %v2810_v54  ;;  %4252 = vmatmul.msk.bf16.gmra.mxu2 %vm1384_vm1, %v7038_v51  ;;  %3285 = vmatmul.bf16.gmra.mxu0 %v6233_v6  ;;  %v7041_v6 = vld [vmem:[#allocation62_spill] sm:$0xff] }
 0x496   : > { %3196 = vmatmul.bf16.gmra.mxu3 %v7039_v0  ;;  %v3236_v0 = vpop.f32.mrf.mxu0 }
 0x497   : > { %3329 = vmatmul.bf16.gmra.mxu1 %v2891_v46 }
 0x498   : > { %v2728_v40 = vpop.f32.mrf.mxu2 }
 0x499   : > { %v2729_v52 = vadd.f32 %v2728_v40, %v6366_v2 }
 0x49b   : > { %v2816_v43 = vmax.f32 %v2729_v52, 0.0 }
 0x4a0   : > { %v2730_v50 = vpop.f32.mrf.mxu2 }
 0x4a1   : > { %v2731_v60 = vadd.f32 %v2730_v50, %v2642_v27 }
 0x4a3   : > { %v2819_v41 = vmax.f32 %v2731_v60, 0.0 }
 0x4a5   : > { %v2894_v32 = vpack.c.bf16 %v2819_v41, %v2816_v43  ;;  %4253 = vmatmul.msk.bf16.gmra.mxu2 %vm1384_vm1, %v7040_v58  ;;  %3290 = vmatmul.bf16.gmra.mxu0 %v6250_v36  ;;  %v2652_v36 = vadd.f32 %v6391_v56, %v6399_v4 }
 0x4a6   : > { %3201 = vmatmul.bf16.gmra.mxu3 %v7041_v6 }
 0x4a7   : > { %3334 = vmatmul.bf16.gmra.mxu1 %v2894_v32 }
 0x4a8   : > { %v2733_v1 = vpop.f32.mrf.mxu2 }
 0x4a9   : > { %v2734_v2 = vadd.f32 %v2733_v1, %v6381_v9 }
 0x4ab   : > { %v2822_v10 = vmax.f32 %v2734_v2, 0.0 }
 0x4b0   : > { %v2735_v19 = vpop.f32.mrf.mxu2 }
 0x4b1   : > { %v2736_v26 = vadd.f32 %v2735_v19, %v2647_v21 }
 0x4b3   : > { %v2825_v24 = vmax.f32 %v2736_v26, 0.0 }
 0x4b5   : > { %v2897_v38 = vpack.c.bf16 %v2825_v24, %v2822_v10 }
 0x4b7   : > { %3339 = vmatmul.bf16.gmra.mxu1 %v2897_v38 }
 0x4b8   : > { %v2738_v42 = vpop.f32.mrf.mxu2 }
 0x4b9   : > { %v2739_v23 = vadd.f32 %v2738_v42, %v6393_v33 }
 0x4bb   : > { %v2828_v59 = vmax.f32 %v2739_v23, 0.0 }
 0x4c0   : > { %v2740_v29 = vpop.f32.mrf.mxu2 }
 0x4c1   : > { %v2741_v11 = vadd.f32 %v2740_v29, %v2652_v36 }
 0x4c3   : > { %v2831_v9 = vmax.f32 %v2741_v11, 0.0 }
 0x4c4   : > { %v3305_v48 = vpop.f32.mrf.mxu1 }
 0x4c5   : > { %v2900_v7 = vpack.c.bf16 %v2831_v9, %v2828_v59  ;;  %v3306_v17 = vadd.f32 %v3305_v48, %v6499_v28 }
 0x4c7   : > { %3385 = vst [vmem:[%s6579_s6] sm:$0xff] %v3306_v17  ;;  %3344 = vmatmul.bf16.gmra.mxu1 %v2900_v7 }
 0x4c8   : > { %v2743_v56 = vpop.f32.mrf.mxu2 }
 0x4c9   : > { %v2744_v54 = vadd.f32 %v2743_v56, %v6408_v31  ;;  %v3238_v31 = vpop.f32.mrf.mxu0 }
 0x4cb   : > { %v2834_v46 = vmax.f32 %v2744_v54, 0.0 }
 0x4cc   : > { %v3307_v4 = vpop.f32.mrf.mxu1 }
 0x4cd   : > { %v3308_v33 = vadd.f32 %v3307_v4, %v6504_v49  ;;  %v3149_v49 = vpop.f32.mrf.mxu3 }
 0x4cf   : > { %3386 = vst [vmem:[%s6579_s6 + $0x8] sm:$0xff] %v3308_v33 }
 0x4d0   : > { %v2745_v35 = vpop.f32.mrf.mxu2 }
 0x4d1   : > { %v2746_v28 = vadd.f32 %v2745_v35, %v2657_v45  ;;  %v3237_v45 = vadd.f32 %v3236_v0, %v3148_v63  ;;  %v2687_v63 = vadd.f32 %v6570_v55, %v6490_v15 }
 0x4d3   : > { %v2837_v51 = vmax.f32 %v2746_v28, 0.0 }
 0x4d4   : > { %v3310_v40 = vpop.f32.mrf.mxu1 }
 0x4d5   : > { %v2903_v27 = vpack.c.bf16 %v2837_v51, %v2834_v46  ;;  %v3311_v52 = vadd.f32 %v3310_v40, %v6511_v47  ;;  %v3152_v58 = vpop.f32.mrf.mxu3  ;;  %v3150_v46 = vadd.f32 %v6496_v30, %v3149_v49  ;;  %v2677_v40 = vadd.f32 %v6460_v20, %v6468_v13 }
 0x4d6   : > { %v3153_v0 = vadd.f32 %v6496_v30, %v3152_v58 }
 0x4d7   : > { %3387 = vst [vmem:[%s6579_s6 + $0x10] sm:$0xff] %v3311_v52  ;;  %3349 = vmatmul.bf16.gmra.mxu1 %v2903_v27  ;;  %v3239_v18 = vadd.f32 %v3238_v31, %v3150_v46  ;;  %v7042_v27 = vld [vmem:[#allocation16_spill] sm:$0xff] }
 0x4d8   : > { %v2748_v50 = vpop.f32.mrf.mxu2 }
 0x4d9   : > { %v2749_v43 = vadd.f32 %v2748_v50, %v6420_v25 }
 0x4db   : > { %v2840_v47 = vmax.f32 %v2749_v43, 0.0 }
 0x4dc   : > { %v3312_v60 = vpop.f32.mrf.mxu1 }
 0x4dd   : > { %v3313_v8 = vadd.f32 %v3312_v60, %v6516_v61  ;;  %v3241_v61 = vpop.f32.mrf.mxu0  ;;  %v3154_v26 = vpop.f32.mrf.mxu3 }
 0x4de   : > { %v3242_v43 = vadd.f32 %v3241_v61, %v3153_v0 }
 0x4df   : > { %3388 = vst [vmem:[%s6579_s6 + $0x18] sm:$0xff] %v3313_v8 }
 0x4e0   : > { %v2750_v41 = vpop.f32.mrf.mxu2 }
 0x4e1   : > { %v2751_v32 = vadd.f32 %v2750_v41, %v2662_v5 }
 0x4e3   : > { %v2843_v6 = vmax.f32 %v2751_v32, 0.0 }
 0x4e4   : > { %v3315_v1 = vpop.f32.mrf.mxu1 }
 0x4e5   : > { %v2906_v21 = vpack.c.bf16 %v2843_v6, %v2840_v47  ;;  %v3316_v2 = vadd.f32 %v3315_v1, %v6523_v14  ;;  %v3243_v42 = vpop.f32.mrf.mxu0  ;;  %v3157_v59 = vpop.f32.mrf.mxu3  ;;  %v3155_v6 = vadd.f32 %v6496_v30, %v3154_v26 }
 0x4e6   : > { %v3158_v61 = vadd.f32 %v6496_v30, %v3157_v59 }
 0x4e7   : > { %3389 = vst [vmem:[%s6579_s6 + $0x20] sm:$0xff] %v3316_v2  ;;  %3354 = vmatmul.bf16.gmra.mxu1 %v2906_v21  ;;  %v3244_v58 = vadd.f32 %v3243_v42, %v3155_v6 }
 0x4e8   : > { %v2753_v19 = vpop.f32.mrf.mxu2 }
 0x4e9   : > { %v2754_v10 = vadd.f32 %v2753_v19, %v6435_v22  ;;  %v2672_v22 = vadd.f32 %v6445_v44, %v6453_v37  ;;  %v7043_v19 = vld [vmem:[#allocation19_spill] sm:$0xff] }
 0x4eb   : > { %v2846_v14 = vmax.f32 %v2754_v10, 0.0 }
 0x4ec   : > { %v3317_v39 = vpop.f32.mrf.mxu1 }
 0x4ed   : > { %v3318_v25 = vadd.f32 %v3317_v39, %v6528_v53  ;;  %v3246_v9 = vpop.f32.mrf.mxu0  ;;  %v3159_v17 = vpop.f32.mrf.mxu3  ;;  %v2682_v39 = vadd.f32 %v7043_v19, %v6480_v34 }
 0x4ef   : > { %3390 = vst [vmem:[%s6579_s6 + $0x28] sm:$0xff] %v3318_v25  ;;  %v7044_v25 = vld [vmem:[#allocation74_spill] sm:$0xff] }
 0x4f0   : > { %v2755_v24 = vpop.f32.mrf.mxu2 }
 0x4f1   : > { %v2756_v38 = vadd.f32 %v2755_v24, %v2667_v12 }
 0x4f3   : > { %v2849_v36 = vmax.f32 %v2756_v38, 0.0 }
 0x4f4   : > { %v3320_v23 = vpop.f32.mrf.mxu1 }
 0x4f5   : > { %v2909_v29 = vpack.c.bf16 %v2849_v36, %v2846_v14  ;;  %v3321_v11 = vadd.f32 %v3320_v23, %v6535_v57  ;;  %v3162_v37 = vpop.f32.mrf.mxu3  ;;  %v3247_v14 = vadd.f32 %v3246_v9, %v3158_v61 }
 0x4f6   : > { %v3163_v9 = vadd.f32 %v6496_v30, %v3162_v37 }
 0x4f7   : > { %3391 = vst [vmem:[%s6579_s6 + $0x30] sm:$0xff] %v3321_v11  ;;  %3359 = vmatmul.bf16.gmra.mxu1 %v2909_v29  ;;  %v3160_v11 = vadd.f32 %v6496_v30, %v3159_v17 }
 0x4f8   : > { %v2758_v53 = vpop.f32.mrf.mxu2 }
 0x4f9   : > { %v2759_v7 = vadd.f32 %v2758_v53, %v6447_v62 }
 0x4fb   : > { %v2852_v4 = vmax.f32 %v2759_v7, 0.0  ;;  %v7045_v7 = vld [vmem:[#allocation77_spill] sm:$0xff] }
 0x4fc   : > { %v3322_v48 = vpop.f32.mrf.mxu1 }
 0x4fd   : > { %v3323_v16 = vadd.f32 %v3322_v48, %v6540_v3  ;;  %v3248_v3 = vpop.f32.mrf.mxu0  ;;  %v3164_v41 = vpop.f32.mrf.mxu3 }
 0x4fe   : > { %v3249_v59 = vadd.f32 %v3248_v3, %v3160_v11  ;;  %v3165_v46 = vadd.f32 %v6496_v30, %v3164_v41 }
 0x4ff   : > { %3392 = vst [vmem:[%s6579_s6 + $0x38] sm:$0xff] %v3323_v16 }
 0x500   : > { %v2760_v56 = vpop.f32.mrf.mxu2 }
 0x501   : > { %v2761_v57 = vadd.f32 %v2760_v56, %v2672_v22 }
 0x503   : > { %v2855_v33 = vmax.f32 %v2761_v57, 0.0 }
 0x504   : > { %v3325_v54 = vpop.f32.mrf.mxu1 }
 0x505   : > { %v2912_v35 = vpack.c.bf16 %v2855_v33, %v2852_v4  ;;  %v3326_v28 = vadd.f32 %v3325_v54, %v3237_v45  ;;  %v3251_v50 = vpop.f32.mrf.mxu0  ;;  %v3167_v2 = vpop.f32.mrf.mxu3 }
 0x506   : > { %v3252_v54 = vadd.f32 %v3251_v50, %v3163_v9 }
 0x507   : > { %3393 = vst [vmem:[%s6579_s6 + $0x40] sm:$0xff] %v3326_v28  ;;  %3364 = vmatmul.bf16.gmra.mxu1 %v2912_v35 }
 0x508   : > { %v2763_v44 = vpop.f32.mrf.mxu2 }
 0x509   : > { %v2764_v52 = vadd.f32 %v2763_v44, %v7042_v27 }
 0x50b   : > { %v2858_v49 = vmax.f32 %v2764_v52, 0.0 }
 0x50c   : > { %v3327_v62 = vpop.f32.mrf.mxu1 }
 0x50d   : > { %v3328_v51 = vadd.f32 %v3327_v62, %v3239_v18  ;;  %v3253_v13 = vpop.f32.mrf.mxu0  ;;  %v3169_v34 = vpop.f32.mrf.mxu3  ;;  %v3168_v62 = vadd.f32 %v6496_v30, %v3167_v2 }
 0x50e   : > { %v3254_v55 = vadd.f32 %v3253_v13, %v3165_v46  ;;  %v3170_v50 = vadd.f32 %v6496_v30, %v3169_v34 }
 0x50f   : > { %3394 = vst [vmem:[%s6579_s6 + $0x48] sm:$0xff] %v3328_v51 }
 0x510   : > { %v2765_v60 = vpop.f32.mrf.mxu2 }
 0x511   : > { %v2766_v8 = vadd.f32 %v2765_v60, %v2677_v40 }
 0x513   : > { %v2861_v5 = vmax.f32 %v2766_v8, 0.0 }
 0x514   : > { %v3330_v31 = vpop.f32.mrf.mxu1 }
 0x515   : > { %v2915_v32 = vpack.c.bf16 %v2861_v5, %v2858_v49  ;;  %v3331_v47 = vadd.f32 %v3330_v31, %v3242_v43  ;;  %v3256_v36 = vpop.f32.mrf.mxu0  ;;  %v3172_v17 = vpop.f32.mrf.mxu3 }
 0x516   : > { %v3257_v40 = vadd.f32 %v3256_v36, %v3168_v62  ;;  %v3173_v43 = vadd.f32 %v6496_v30, %v3172_v17 }
 0x517   : > { %3395 = vst [vmem:[%s6579_s6 + $0x50] sm:$0xff] %v3331_v47  ;;  %3369 = vmatmul.bf16.gmra.mxu1 %v2915_v32 }
 0x518   : > { %v2768_v20 = vpop.f32.mrf.mxu2 }
 0x519   : > { %v2769_v12 = vadd.f32 %v2768_v20, %v7044_v25 }
 0x51b   : > { %v2864_v26 = vmax.f32 %v2769_v12, 0.0 }
 0x51c   : > { %v3332_v1 = vpop.f32.mrf.mxu1 }
 0x51d   : > { %v3333_v21 = vadd.f32 %v3332_v1, %v3244_v58  ;;  %v3258_v22 = vpop.f32.mrf.mxu0  ;;  %v3174_v44 = vpop.f32.mrf.mxu3 }
 0x51e   : > { %v3259_v60 = vadd.f32 %v3258_v22, %v3170_v50  ;;  %v3175_v20 = vadd.f32 %v6496_v30, %v3174_v44 }
 0x51f   : > { %3396 = vst [vmem:[%s6579_s6 + $0x58] sm:$0xff] %v3333_v21 }
 0x520   : > { %v2770_v10 = vpop.f32.mrf.mxu2 }
 0x521   : > { %v2771_v24 = vadd.f32 %v2770_v10, %v2682_v39 }
 0x523   : > { %v2867_v38 = vmax.f32 %v2771_v24, 0.0 }
 0x524   : > { %v3335_v42 = vpop.f32.mrf.mxu1 }
 0x525   : > { %v2918_v23 = vpack.c.bf16 %v2867_v38, %v2864_v26  ;;  %v3336_v29 = vadd.f32 %v3335_v42, %v3247_v14  ;;  %v3261_v15 = vpop.f32.mrf.mxu0  ;;  %v3177_v52 = vpop.f32.mrf.mxu3 }
 0x526   : > { %v3262_v31 = vadd.f32 %v3261_v15, %v3173_v43  ;;  %v3178_v2 = vadd.f32 %v6496_v30, %v3177_v52 }
 0x527   : > { %3397 = vst [vmem:[%s6579_s6 + $0x60] sm:$0xff] %v3336_v29  ;;  %3374 = vmatmul.bf16.gmra.mxu1 %v2918_v23 }
 0x528   : > { %v2773_v53 = vpop.f32.mrf.mxu2 }
 0x529   : > { %v2774_v56 = vadd.f32 %v2773_v53, %v7045_v7 }
 0x52b   : > { %v2870_v33 = vmax.f32 %v2774_v56, 0.0 }
 0x52c   : > { %v3337_v48 = vpop.f32.mrf.mxu1 }
 0x52d   : > { %v3338_v16 = vadd.f32 %v3337_v48, %v3249_v59  ;;  %v3263_v51 = vpop.f32.mrf.mxu0  ;;  %v3179_v41 = vpop.f32.mrf.mxu3 }
 0x52e   : > { %v3264_v58 = vadd.f32 %v3263_v51, %v3175_v20  ;;  %v3180_v10 = vadd.f32 %v6496_v30, %v3179_v41 }
 0x52f   : > { %3398 = vst [vmem:[%s6579_s6 + $0x68] sm:$0xff] %v3338_v16 }
 0x530   : > { %v2775_v57 = vpop.f32.mrf.mxu2 }
 0x531   : > { %v2776_v4 = vadd.f32 %v2775_v57, %v2687_v63 }
 0x533   : > { %v2873_v45 = vmax.f32 %v2776_v4, 0.0 }
 0x534   : > { %v3340_v35 = vpop.f32.mrf.mxu1 }
 0x535   : > { %v2921_v28 = vpack.c.bf16 %v2873_v45, %v2870_v33  ;;  %v3341_v3 = vadd.f32 %v3340_v35, %v3252_v54  ;;  %v3266_v8 = vpop.f32.mrf.mxu0  ;;  %v3182_v13 = vpop.f32.mrf.mxu3 }
 0x536   : > { %v3267_v39 = vadd.f32 %v3266_v8, %v3178_v2  ;;  %v3183_v42 = vadd.f32 %v6496_v30, %v3182_v13 }
 0x537   : > { %3399 = vst [vmem:[%s6579_s6 + $0x70] sm:$0xff] %v3341_v3  ;;  %3379 = vmatmul.bf16.gmra.mxu1 %v2921_v28 }
 0x53c   : > { %v3342_v37 = vpop.f32.mrf.mxu1 }
 0x53d   : > { %v3343_v18 = vadd.f32 %v3342_v37, %v3254_v55  ;;  %v3268_v6 = vpop.f32.mrf.mxu0  ;;  %v3184_v61 = vpop.f32.mrf.mxu3 }
 0x53e   : > { %v3269_v26 = vadd.f32 %v3268_v6, %v3180_v10  ;;  %v3185_v53 = vadd.f32 %v6496_v30, %v3184_v61 }
 0x53f   : > { %3400 = vst [vmem:[%s6579_s6 + $0x78] sm:$0xff] %v3343_v18 }
 0x544   : > { %v3345_v0 = vpop.f32.mrf.mxu1 }
 0x545   : > { %v3346_v27 = vadd.f32 %v3345_v0, %v3257_v40  ;;  %v3271_v19 = vpop.f32.mrf.mxu0  ;;  %v3187_v36 = vpop.f32.mrf.mxu3 }
 0x546   : > { %v3272_v23 = vadd.f32 %v3271_v19, %v3183_v42  ;;  %v3188_v9 = vadd.f32 %v6496_v30, %v3187_v36 }
 0x547   : > { %3401 = vst [vmem:[%s6579_s6 + $0x80] sm:$0xff] %v3346_v27 }
 0x54c   : > { %v3347_v49 = vpop.f32.mrf.mxu1 }
 0x54d   : > { %v3348_v5 = vadd.f32 %v3347_v49, %v3259_v60  ;;  %v3273_v24 = vpop.f32.mrf.mxu0  ;;  %v3189_v59 = vpop.f32.mrf.mxu3 }
 0x54e   : > { %v3274_v48 = vadd.f32 %v3273_v24, %v3185_v53  ;;  %v3190_v17 = vadd.f32 %v6496_v30, %v3189_v59 }
 0x54f   : > { %3402 = vst [vmem:[%s6579_s6 + $0x88] sm:$0xff] %v3348_v5 }
 0x554   : > { %v3350_v32 = vpop.f32.mrf.mxu1 }
 0x555   : > { %v3351_v47 = vadd.f32 %v3350_v32, %v3262_v31  ;;  %v3276_v29 = vpop.f32.mrf.mxu0  ;;  %v3192_v7 = vpop.f32.mrf.mxu3 }
 0x556   : > { %v3277_v56 = vadd.f32 %v3276_v29, %v3188_v9  ;;  %v3193_v3 = vadd.f32 %v6496_v30, %v3192_v7 }
 0x557   : > { %3403 = vst [vmem:[%s6579_s6 + $0x90] sm:$0xff] %v3351_v47 }
 0x55c   : > { %v3352_v1 = vpop.f32.mrf.mxu1 }
 0x55d   : > { %v3353_v21 = vadd.f32 %v3352_v1, %v3264_v58  ;;  %v3278_v63 = vpop.f32.mrf.mxu0  ;;  %v3194_v54 = vpop.f32.mrf.mxu3 }
 0x55e   : > { %v3279_v45 = vadd.f32 %v3278_v63, %v3190_v17  ;;  %v3195_v18 = vadd.f32 %v6496_v30, %v3194_v54 }
 0x55f   : > { %3404 = vst [vmem:[%s6579_s6 + $0x98] sm:$0xff] %v3353_v21 }
 0x564   : > { %v3355_v25 = vpop.f32.mrf.mxu1 }
 0x565   : > { %v3356_v12 = vadd.f32 %v3355_v25, %v3267_v39  ;;  %v3281_v33 = vpop.f32.mrf.mxu0  ;;  %v3197_v37 = vpop.f32.mrf.mxu3 }
 0x566   : > { %v3282_v15 = vadd.f32 %v3281_v33, %v3193_v3  ;;  %v3198_v27 = vadd.f32 %v6496_v30, %v3197_v37 }
 0x567   : > { %3405 = vst [vmem:[%s6579_s6 + $0xa0] sm:$0xff] %v3356_v12 }
 0x56c   : > { %v3357_v38 = vpop.f32.mrf.mxu1 }
 0x56d   : > { %v3358_v14 = vadd.f32 %v3357_v38, %v3269_v26  ;;  %v3283_v46 = vpop.f32.mrf.mxu0  ;;  %v3199_v52 = vpop.f32.mrf.mxu3 }
 0x56e   : > { %v3284_v62 = vadd.f32 %v3283_v46, %v3195_v18  ;;  %v3200_v5 = vadd.f32 %v6496_v30, %v3199_v52 }
 0x56f   : > { %3406 = vst [vmem:[%s6579_s6 + $0xa8] sm:$0xff] %v3358_v14 }
 0x574   : > { %v3360_v11 = vpop.f32.mrf.mxu1 }
 0x575   : > { %v3361_v34 = vadd.f32 %v3360_v11, %v3272_v23  ;;  %v3286_v51 = vpop.f32.mrf.mxu0  ;;  %v3202_v43 = vpop.f32.mrf.mxu3 }
 0x576   : > { %v3287_v50 = vadd.f32 %v3286_v51, %v3198_v27  ;;  %v3203_v47 = vadd.f32 %v6496_v30, %v3202_v43 }
 0x577   : > { %3407 = vst [vmem:[%s6579_s6 + $0xb0] sm:$0xff] %v3361_v34 }
 0x57c   : > { %v3362_v16 = vpop.f32.mrf.mxu1 }
 0x57d   : > { %v3363_v22 = vadd.f32 %v3362_v16, %v3274_v48  ;;  %v3288_v49 = vpop.f32.mrf.mxu0  ;;  %v3204_v13 = vpop.f32.mrf.mxu3 }
 0x57e   : > { %v3289_v41 = vadd.f32 %v3288_v49, %v3200_v5  ;;  %v3205_v21 = vadd.f32 %v6496_v30, %v3204_v13 }
 0x57f   : > { %3408 = vst [vmem:[%s6579_s6 + $0xb8] sm:$0xff] %v3363_v22 }
 0x584   : > { %v3365_v57 = vpop.f32.mrf.mxu1 }
 0x585   : > { %v3366_v4 = vadd.f32 %v3365_v57, %v3277_v56  ;;  %v3291_v6 = vpop.f32.mrf.mxu0 }
 0x586   : > { %v3292_v20 = vadd.f32 %v3291_v6, %v3203_v47 }
 0x587   : > { %3409 = vst [vmem:[%s6579_s6 + $0xc0] sm:$0xff] %v3366_v4 }
 0x58c   : > { %v3367_v35 = vpop.f32.mrf.mxu1 }
 0x58d   : > { %v3368_v28 = vadd.f32 %v3367_v35, %v3279_v45  ;;  %v3293_v2 = vpop.f32.mrf.mxu0 }
 0x58e   : > { %v3294_v19 = vadd.f32 %v3293_v2, %v3205_v21 }
 0x58f   : > { %3410 = vst [vmem:[%s6579_s6 + $0xc8] sm:$0xff] %v3368_v28 }
 0x594   : > { %v3370_v55 = vpop.f32.mrf.mxu1 }
 0x595   : > { %v3371_v44 = vadd.f32 %v3370_v55, %v3282_v15 }
 0x597   : > { %3411 = vst [vmem:[%s6579_s6 + $0xd0] sm:$0xff] %v3371_v44 }
 0x59c   : > { %v3372_v40 = vpop.f32.mrf.mxu1 }
 0x59d   : > { %v3373_v0 = vadd.f32 %v3372_v40, %v3284_v62 }
 0x59f   : > { %3412 = vst [vmem:[%s6579_s6 + $0xd8] sm:$0xff] %v3373_v0 }
 0x5a4   : > { %v3375_v60 = vpop.f32.mrf.mxu1 }
 0x5a5   : > { %v3376_v8 = vadd.f32 %v3375_v60, %v3287_v50 }
 0x5a7   : > { %3413 = vst [vmem:[%s6579_s6 + $0xe0] sm:$0xff] %v3376_v8 }
 0x5ac   : > { %v3377_v31 = vpop.f32.mrf.mxu1 }
 0x5ad   : > { %v3378_v32 = vadd.f32 %v3377_v31, %v3289_v41 }
 0x5af   : > { %3414 = vst [vmem:[%s6579_s6 + $0xe8] sm:$0xff] %v3378_v32 }
 0x5b4   : > { %v3380_v58 = vpop.f32.mrf.mxu1 }
 0x5b5   : > { %v3381_v1 = vadd.f32 %v3380_v58, %v3292_v20 }
 0x5b7   : > { %3415 = vst [vmem:[%s6579_s6 + $0xf0] sm:$0xff] %v3381_v1 }
 0x5bc   : > { %v3382_v39 = vpop.f32.mrf.mxu1 }
 0x5bd   : > { %v3383_v61 = vadd.f32 %v3382_v39, %v3294_v19 }
 0x5bf   : > { %3416 = vst [vmem:[%s6579_s6 + $0xf8] sm:$0xff] %v3383_v61 }
 0x5c0   : > { %4644 = shalt.err (!%p4641_p3)
}
 0x5c1   : > { %s4681_s25 = smov 128   ;;  %s4682_s26 = smov 8  }
 0x5c2   : > { %4573 = dma.vmem_to_hbm [thread:$0]  (%p4751_p5), %s3431_s11, 4096, %s3433_s12, %s3418_s22, %s4681_s25, %s4681_s25, %s4682_s26  }
 0x5c3 PF: > { %p4579_p4 = scmp.ge.s32.totalorder %s4679_s21, 2  ;;  %s3447_s6 = sand.u32 1, %s4667_s18  }
 0x5c4   : > { %s3448_s8 = scalar_lea.sflag [#allocation3], %s3447_s6 }
 0x5c5   : > { %p4576_p7 = pnand %p4579_p4, %p4755_p6 }
 0x5c7   : > { %p4577_p8 = pneg %p4576_p7 }
 0x5c9   : > { %4662 = dma.done.wait (%p4577_p8), %s3448_s8, 4096  }
 0x5ca   : > { %4664 = vsyncadd (%p4577_p8), %s3448_s8, 4294963200  ;;  %p15_p9 = scmp.ge.s32.totalorder %s4738_s24, 4   ;;  %s7046_s18 = smov %s4671_s19 }
 0x5cb   : > { %s7047_s19 = smov %s4675_s20  ;;  %s7048_s20 = smov %s4749_s27 }
 0x5cc   : > { %s7049_s21 = smov %s4738_s24  ;;  %17 = sbr.rel (!%p15_p9) target bundleno = 3 (0x3), region = 75 }
 0x5d1   :  { %3454 = vsyncpa [#allocation3], 1 }
 0x5d2   :  { %3456 = vsyncpa [#allocation3 + $0x1], 1 }

</bundles_post_ra>
